<compile_context>
chip_gen: v7x
topology: tpu7x:2x2x1
jax: 0.10.0
libtpu: 0.0.40
codegen_flags: <defaults>
</compile_context>

<pallas_src>
import numpy as np
import jax
import jax.numpy as jnp
from jax.experimental import pallas as pl
from jax.experimental.pallas import tpu as pltpu

# ----------------------------------------------------------------------------
# Config (module defaults)
# ----------------------------------------------------------------------------
SAMPLE_RATE = 24000
N_FFT = 1024
HOP_LENGTH = 256
N_MELS = 100
N_FREQS = N_FFT // 2 + 1            # onesided STFT bins = 513
CLIP_VAL = 1e-7                     # vocos safe_log clip value

N_HOPS = N_FFT // HOP_LENGTH        # 4 overlapping hop-chunks per frame
F_PAD = 640                         # cos half: 513 -> 640 (multiple of 128)
F_SIN = 512                         # sin half: freqs 0..511 (sin(0) == sin(Nyquist) == 0)
W_COLS = F_PAD + F_SIN              # 1152 fused-weight lanes = 9 clean MXU N-tiles
MEL_PAD = 128                       # 100 -> 128 (lane-dense output stores)
TILE_M_MAX = 512                    # frame rows per grid step


def _round_up(x, m):
    return ((x + m - 1) // m) * m


def _cdiv(a, b):
    return -(-a // b)


# ----------------------------------------------------------------------------
# Deterministic parameter construction (matches torchaudio defaults)
# ----------------------------------------------------------------------------
def hann_window_periodic(n):
    # torch.hann_window(n), default periodic=True
    k = np.arange(n, dtype=np.float64)
    return (0.5 * (1.0 - np.cos(2.0 * np.pi * k / n))).astype(np.float32)


def dft_matrices(n_fft, n_freqs):
    # X[f] = sum_k x[k] * exp(-2j*pi*k*f/n_fft)  ->  (cos, -sin) bases
    k = np.arange(n_fft, dtype=np.float64)[:, None]
    f = np.arange(n_freqs, dtype=np.float64)[None, :]
    ang = 2.0 * np.pi * k * f / n_fft
    return np.cos(ang).astype(np.float32), (-np.sin(ang)).astype(np.float32)


def melscale_fbanks(n_freqs, n_mels, sample_rate, f_min=0.0, f_max=None):
    # torchaudio.functional.melscale_fbanks, mel_scale='htk', norm=None
    if f_max is None:
        f_max = sample_rate / 2.0

    def hz_to_mel(f):
        return 2595.0 * np.log10(1.0 + f / 700.0)

    def mel_to_hz(m):
        return 700.0 * (10.0 ** (m / 2595.0) - 1.0)

    all_freqs = np.linspace(0.0, sample_rate // 2, n_freqs)
    m_pts = np.linspace(hz_to_mel(f_min), hz_to_mel(f_max), n_mels + 2)
    f_pts = mel_to_hz(m_pts)
    f_diff = f_pts[1:] - f_pts[:-1]                       # (n_mels+1,)
    slopes = f_pts[None, :] - all_freqs[:, None]          # (n_freqs, n_mels+2)
    down = (-slopes[:, :-2]) / f_diff[:-1]
    up = slopes[:, 2:] / f_diff[1:]
    fb = np.maximum(0.0, np.minimum(down, up))            # (n_freqs, n_mels)
    return fb.astype(np.float32)


def build_weights():
    """Fused, lane-padded weights.

    w_fused: (N_FFT, 1152) bf16 = Hann-windowed [cos (freqs 0..512, padded to 640) |
             -sin (freqs 0..511)] DFT basis.
    fb_pad:  (640, 128) f32 mel filterbank, zero-padded rows/cols.
    """
    win = hann_window_periodic(N_FFT)                      # (1024,)
    cos_m, nsin_m = dft_matrices(N_FFT, N_FREQS)           # (1024, 513) each
    w = np.zeros((N_FFT, W_COLS), np.float32)
    w[:, :N_FREQS] = win[:, None] * cos_m
    w[:, F_PAD:F_PAD + F_SIN] = win[:, None] * nsin_m[:, :F_SIN]

    fbank = melscale_fbanks(N_FREQS, N_MELS, SAMPLE_RATE)  # (513, 100)
    fb_p = np.zeros((F_PAD, MEL_PAD), np.float32)
    fb_p[:N_FREQS, :N_MELS] = fbank
    return jnp.asarray(w, dtype=jnp.bfloat16), jnp.asarray(fb_p)


# ----------------------------------------------------------------------------
# Pallas kernel: one (batch, frame-tile) step of mel-spectrogram + safe_log
# ----------------------------------------------------------------------------
def mel_kernel(ca_ref, cb_ref, w_ref, fb_ref, out_ref, frame_ref):
    # ca_ref:    (1, TILE_M, HOP) f32   hop-chunks [m*TILE_M, (m+1)*TILE_M)
    # cb_ref:    (1, TILE_M, HOP) f32   next TILE_M hop-chunks (frame overlap)
    # w_ref:     (N_FFT, 1152)   bf16   fused Hann-windowed [cos | -sin] DFT basis
    # fb_ref:    (640, 128)      f32    mel filterbank (zero-padded)
    # out_ref:   (1, TILE_M, 128) f32   log-mel
    # frame_ref: (TILE_M, N_FFT) bf16   VMEM scratch frame tile
    tile_m = ca_ref.shape[1]

    # Rebuild the overlapped frame tile in VMEM (the 4x-duplicated frame matrix is
    # never materialized in HBM): frame[r, j*HOP:(j+1)*HOP] = chunk[m*tile_m + r + j].
    seg = jnp.concatenate([ca_ref[0], cb_ref[0]], axis=0)            # (2*tile_m, HOP)
    for j in range(N_HOPS):                                          # static unroll (4)
        frame_ref[:, j * HOP_LENGTH:(j + 1) * HOP_LENGTH] = (
            seg[j:j + tile_m, :].astype(jnp.bfloat16))

    # Single K=1024 bf16 matmul with f32 accumulation (the MXU-bound bulk of the work).
    y = jnp.dot(frame_ref[...], w_ref[...], preferred_element_type=jnp.float32)

    re_lo = y[:, :F_SIN]                  # Re, freqs 0..511
    re_hi = y[:, F_SIN:F_PAD]             # Re, freqs 512..639 (Nyquist + zero pad)
    im_lo = y[:, F_PAD:]                  # Im, freqs 0..511
    mag_lo = jnp.sqrt(re_lo * re_lo + im_lo * im_lo)   # power=1 spectrogram
    mag_hi = jnp.abs(re_hi)                            # sin(Nyquist) == 0 -> |Re|

    mel = (jnp.dot(mag_lo, fb_ref[:F_SIN, :], preferred_element_type=jnp.float32)
           + jnp.dot(mag_hi, fb_ref[F_SIN:, :], preferred_element_type=jnp.float32))
    out_ref[0] = jnp.log(jnp.maximum(mel, CLIP_VAL))   # safe_log


def _vmem_limit_bytes():
    # Generation-aware VMEM budget: ~half of physical VMEM, capped at 64 MiB
    # (v7x has only 64 MiB per TensorCore; v5e/v6e have 128 MiB).
    try:
        cap = int(pltpu.get_tpu_info().vmem_capacity_bytes)
        return int(min(64 << 20, cap // 2))
    except Exception:
        return 32 << 20


_VMEM_LIMIT = _vmem_limit_bytes()


@jax.jit
def mel_spectrogram_features_stage2(audio, w_fused, fb_pad):
    """audio: (B, T) float32  ->  features: (B, n_mels, n_frames) float32."""
    # TODO(synk): stage1_model (CosyvoiceVocos pretrained vocoder) has no in-script
    # definition/checkpoint; audio_hat := audio (identity stand-in).
    audio_hat = audio

    B, T = audio_hat.shape
    # Framing / reflect-pad assumptions: T must be a multiple of hop_length, >= n_fft.
    assert T % HOP_LENGTH == 0 and T >= N_FFT, (
        "mel kernel assumes T % hop_length == 0 and T >= n_fft")

    pad = N_FFT // 2
    n_frames = T // HOP_LENGTH + 1

    tile_m = min(TILE_M_MAX, _round_up(n_frames, 16))
    if B == 1 and n_frames > 32 and tile_m >= n_frames:
        # v7x has 2 TensorCores/chip: guarantee >= 2 grid steps on single-batch input.
        tile_m = max(16, _round_up(_cdiv(n_frames, 2), 16))
    nt = _cdiv(n_frames, tile_m)
    n_frames_pad = nt * tile_m
    chunk_rows = (nt + 1) * tile_m    # +1 tile so the (m + 1) index_map stays in bounds

    # center=True reflect padding (torch.stft pad_mode='reflect') fused with the zero
    # tail in ONE concatenate; the reshape into hop-sized chunks is free.
    left = audio_hat[:, 1:pad + 1][:, ::-1]
    right = audio_hat[:, T - pad - 1:T - 1][:, ::-1]
    tail = jnp.zeros((B, chunk_rows * HOP_LENGTH - (T + 2 * pad)), audio_hat.dtype)
    chunks = jnp.concatenate([left, audio_hat, right, tail], axis=1)
    chunks = chunks.reshape(B, chunk_rows, HOP_LENGTH)

    out = pl.pallas_call(
        mel_kernel,
        out_shape=jax.ShapeDtypeStruct((B, n_frames_pad, MEL_PAD), jnp.float32),
        grid_spec=pltpu.PrefetchScalarGridSpec(
            num_scalar_prefetch=0,
            grid=(B, nt),
            in_specs=[
                pl.BlockSpec((1, tile_m, HOP_LENGTH), lambda b, m: (b, m, 0)),
                pl.BlockSpec((1, tile_m, HOP_LENGTH), lambda b, m: (b, m + 1, 0)),
                # Constant index maps -> fetched once, never re-DMA'd across the grid.
                pl.BlockSpec((N_FFT, W_COLS), lambda b, m: (0, 0)),
                pl.BlockSpec((F_PAD, MEL_PAD), lambda b, m: (0, 0)),
            ],
            out_specs=pl.BlockSpec((1, tile_m, MEL_PAD), lambda b, m: (b, m, 0)),
            scratch_shapes=[pltpu.VMEM((tile_m, N_FFT), jnp.bfloat16)],
        ),
        compiler_params=pltpu.CompilerParams(
            dimension_semantics=("parallel", "parallel"),
            vmem_limit_bytes=_VMEM_LIMIT,
        ),
    )(chunks, chunks, w_fused, fb_pad)

    # Drop frame/mel padding, transpose to PyTorch (B, C, L) == (B, n_mels, n_frames).
    return jnp.transpose(out[:, :n_frames, :N_MELS], (0, 2, 1))


# ----------------------------------------------------------------------------
# Pure-JAX reference (independent construction; DFT path bf16-rounded like the kernel)
# ----------------------------------------------------------------------------
def reference(audio):
    win = hann_window_periodic(N_FFT)
    cos_np, nsin_np = dft_matrices(N_FFT, N_FREQS)
    w_cos = jnp.asarray(win[:, None] * cos_np).astype(jnp.bfloat16)
    w_sin = jnp.asarray(win[:, None] * nsin_np).astype(jnp.bfloat16)
    fb = jnp.asarray(melscale_fbanks(N_FREQS, N_MELS, SAMPLE_RATE))

    B, T = audio.shape
    pad = N_FFT // 2
    padded = jnp.pad(audio, ((0, 0), (pad, pad)), mode="reflect")
    n_frames = T // HOP_LENGTH + 1
    idx = (np.arange(n_frames)[:, None] * HOP_LENGTH
           + np.arange(N_FFT)[None, :])
    frames = padded[:, idx].astype(jnp.bfloat16)            # (B, nF, n_fft)
    re = jnp.einsum("bfk,kq->bfq", frames, w_cos, preferred_element_type=jnp.float32)
    im = jnp.einsum("bfk,kq->bfq", frames, w_sin, preferred_element_type=jnp.float32)
    mag = jnp.sqrt(re * re + im * im)
    mel = jnp.einsum("bfq,qm->bfm", mag, fb, precision=jax.lax.Precision.HIGHEST)
    return jnp.transpose(jnp.log(jnp.maximum(mel, CLIP_VAL)), (0, 2, 1))


# ----------------------------------------------------------------------------
if __name__ == "__main__":
    B = 2
    T = 2048  # small audio length -> n_frames = T // hop + 1 = 9

    key = jax.random.PRNGKey(0)
    audio = jax.random.normal(key, (B, T), dtype=jnp.float32) * 0.1

    w_fused, fb_pad = build_weights()

    feats = mel_spectrogram_features_stage2(audio, w_fused, fb_pad)
    feats = jax.block_until_ready(feats)

    ref = jax.block_until_ready(reference(audio))
    assert feats.shape == (B, N_MELS, T // HOP_LENGTH + 1), feats.shape
    # Kernel and reference share the same bf16-rounded DFT path (f32 accumulation),
    # so residual mismatch is only accumulation-order / sqrt / log ulps.
    np.testing.assert_allclose(np.asarray(feats), np.asarray(ref),
                               rtol=1e-2, atol=1e-2)

    print("KERNEL_OK")
</pallas_src>

<mosaic_0001>
module attributes {stable_mosaic.version = 11 : i64} {
  func.func @mel_kernel(%arg0: i32, %arg1: i32, %arg2: memref<1x16x256xf32, #tpu.memory_space<vmem>>, %arg3: memref<1x16x256xf32, #tpu.memory_space<vmem>>, %arg4: memref<1024x1152xbf16, #tpu.memory_space<vmem>>, %arg5: memref<640x128xf32, #tpu.memory_space<vmem>>, %arg6: memref<1x16x128xf32, #tpu.memory_space<vmem>>, %arg7: memref<16x1024xbf16, #tpu.memory_space<vmem>>) attributes {dimension_semantics = [#tpu.dimension_semantics<parallel>, #tpu.dimension_semantics<parallel>], iteration_bounds = array<i64: 2, 1>, scalar_prefetch = 0 : i64, scratch_operands = 1 : i64, tpu.core_type = #tpu.core_type<tc>, window_params = [{transform_indices = @transform_0, window_bounds = array<i64: 1, 16, 256>}, {transform_indices = @transform_1, window_bounds = array<i64: 1, 16, 256>}, {pipeline_mode = #tpu.pipeline_mode<synchronous>, transform_indices = @transform_2, window_bounds = array<i64: 1024, 1152>}, {pipeline_mode = #tpu.pipeline_mode<synchronous>, transform_indices = @transform_3, window_bounds = array<i64: 640, 128>}, {transform_indices = @transform_4, window_bounds = array<i64: 1, 16, 128>}]} {
    %c0 = arith.constant 0 : index
    %c0_0 = arith.constant 0 : index
    %c0_1 = arith.constant 0 : index
    %0 = vector.load %arg2[%c0, %c0_0, %c0_1] : memref<1x16x256xf32, #tpu.memory_space<vmem>>, vector<1x16x256xf32>
    %1 = vector.shape_cast %0 : vector<1x16x256xf32> to vector<16x256xf32>
    %c0_2 = arith.constant 0 : index
    %c0_3 = arith.constant 0 : index
    %c0_4 = arith.constant 0 : index
    %2 = vector.load %arg3[%c0_2, %c0_3, %c0_4] : memref<1x16x256xf32, #tpu.memory_space<vmem>>, vector<1x16x256xf32>
    %3 = vector.shape_cast %2 : vector<1x16x256xf32> to vector<16x256xf32>
    %4 = tpu.concatenate %1, %3 in 0 : vector<16x256xf32>, vector<16x256xf32> -> vector<32x256xf32>
    %5 = vector.extract_strided_slice %4 {offsets = [0, 0], sizes = [16, 256], strides = [1, 1]} : vector<32x256xf32> to vector<16x256xf32>
    %6 = arith.truncf %5 : vector<16x256xf32> to vector<16x256xbf16>
    %c0_5 = arith.constant 0 : index
    %c0_6 = arith.constant 0 : index
    %7 = vector.load %arg7[%c0_5, %c0_6] : memref<16x1024xbf16, #tpu.memory_space<vmem>>, vector<16x256xbf16>
    tpu.vector_store %arg7[%c0_5, %c0_6], %6 {strides = array<i32>} : memref<16x1024xbf16, #tpu.memory_space<vmem>>, vector<16x256xbf16>,
    %8 = vector.extract_strided_slice %4 {offsets = [1, 0], sizes = [16, 256], strides = [1, 1]} : vector<32x256xf32> to vector<16x256xf32>
    %9 = arith.truncf %8 : vector<16x256xf32> to vector<16x256xbf16>
    %c0_7 = arith.constant 0 : index
    %c256 = arith.constant 256 : index
    %10 = vector.load %arg7[%c0_7, %c256] : memref<16x1024xbf16, #tpu.memory_space<vmem>>, vector<16x256xbf16>
    tpu.vector_store %arg7[%c0_7, %c256], %9 {strides = array<i32>} : memref<16x1024xbf16, #tpu.memory_space<vmem>>, vector<16x256xbf16>,
    %11 = vector.extract_strided_slice %4 {offsets = [2, 0], sizes = [16, 256], strides = [1, 1]} : vector<32x256xf32> to vector<16x256xf32>
    %12 = arith.truncf %11 : vector<16x256xf32> to vector<16x256xbf16>
    %c0_8 = arith.constant 0 : index
    %c512 = arith.constant 512 : index
    %13 = vector.load %arg7[%c0_8, %c512] : memref<16x1024xbf16, #tpu.memory_space<vmem>>, vector<16x256xbf16>
    tpu.vector_store %arg7[%c0_8, %c512], %12 {strides = array<i32>} : memref<16x1024xbf16, #tpu.memory_space<vmem>>, vector<16x256xbf16>,
    %14 = vector.extract_strided_slice %4 {offsets = [3, 0], sizes = [16, 256], strides = [1, 1]} : vector<32x256xf32> to vector<16x256xf32>
    %15 = arith.truncf %14 : vector<16x256xf32> to vector<16x256xbf16>
    %c0_9 = arith.constant 0 : index
    %c768 = arith.constant 768 : index
    %16 = vector.load %arg7[%c0_9, %c768] : memref<16x1024xbf16, #tpu.memory_space<vmem>>, vector<16x256xbf16>
    tpu.vector_store %arg7[%c0_9, %c768], %15 {strides = array<i32>} : memref<16x1024xbf16, #tpu.memory_space<vmem>>, vector<16x256xbf16>,
    %c0_10 = arith.constant 0 : index
    %c0_11 = arith.constant 0 : index
    %17 = vector.load %arg7[%c0_10, %c0_11] : memref<16x1024xbf16, #tpu.memory_space<vmem>>, vector<16x1024xbf16>
    %c0_12 = arith.constant 0 : index
    %c0_13 = arith.constant 0 : index
    %18 = vector.load %arg4[%c0_12, %c0_13] : memref<1024x1152xbf16, #tpu.memory_space<vmem>>, vector<1024x1152xbf16>
    %cst = arith.constant dense<0.000000e+00> : vector<16x1152xf32>
    %19 = tpu.matmul %17, %18, %cst {dimension_numbers = #tpu.dot_dimension_numbers<[1], [0], [0], [1], [0, 0, 1, 1], [], []>} : vector<16x1024xbf16>, vector<1024x1152xbf16>, vector<16x1152xf32> -> vector<16x1152xf32>
    %20 = vector.extract_strided_slice %19 {offsets = [0, 0], sizes = [16, 512], strides = [1, 1]} : vector<16x1152xf32> to vector<16x512xf32>
    %21 = vector.extract_strided_slice %19 {offsets = [0, 512], sizes = [16, 128], strides = [1, 1]} : vector<16x1152xf32> to vector<16x128xf32>
    %22 = vector.extract_strided_slice %19 {offsets = [0, 640], sizes = [16, 512], strides = [1, 1]} : vector<16x1152xf32> to vector<16x512xf32>
    %23 = arith.mulf %20, %20 : vector<16x512xf32>
    %24 = arith.mulf %22, %22 : vector<16x512xf32>
    %25 = arith.addf %23, %24 : vector<16x512xf32>
    %26 = math.sqrt %25 : vector<16x512xf32>
    %27 = math.absf %21 : vector<16x128xf32>
    %c0_14 = arith.constant 0 : index
    %c0_15 = arith.constant 0 : index
    %28 = vector.load %arg5[%c0_14, %c0_15] : memref<640x128xf32, #tpu.memory_space<vmem>>, vector<512x128xf32>
    %cst_16 = arith.constant dense<0.000000e+00> : vector<16x128xf32>
    %29 = tpu.matmul %26, %28, %cst_16 {dimension_numbers = #tpu.dot_dimension_numbers<[1], [0], [0], [1], [0, 0, 1, 1], [], []>} : vector<16x512xf32>, vector<512x128xf32>, vector<16x128xf32> -> vector<16x128xf32>
    %c512_17 = arith.constant 512 : index
    %c0_18 = arith.constant 0 : index
    %30 = vector.load %arg5[%c512_17, %c0_18] : memref<640x128xf32, #tpu.memory_space<vmem>>, vector<128x128xf32>
    %cst_19 = arith.constant dense<0.000000e+00> : vector<16x128xf32>
    %31 = tpu.matmul %27, %30, %cst_19 {dimension_numbers = #tpu.dot_dimension_numbers<[1], [0], [0], [1], [0, 0, 1, 1], [], []>} : vector<16x128xf32>, vector<128x128xf32>, vector<16x128xf32> -> vector<16x128xf32>
    %32 = arith.addf %29, %31 : vector<16x128xf32>
    %cst_20 = arith.constant 1.000000e-07 : f32
    %33 = vector.broadcast %cst_20 : f32 to vector<16x128xf32>
    %34 = arith.maximumf %32, %33 : vector<16x128xf32>
    %35 = math.log %34 : vector<16x128xf32>
    %c0_21 = arith.constant 0 : index
    %c0_22 = arith.constant 0 : index
    %c0_23 = arith.constant 0 : index
    %36 = vector.load %arg6[%c0_21, %c0_22, %c0_23] : memref<1x16x128xf32, #tpu.memory_space<vmem>>, vector<1x16x128xf32>
    %37 = vector.shape_cast %36 : vector<1x16x128xf32> to vector<16x128xf32>
    %38 = vector.shape_cast %35 : vector<16x128xf32> to vector<1x16x128xf32>
    tpu.vector_store %arg6[%c0_21, %c0_22, %c0_23], %38 {strides = array<i32>} : memref<1x16x128xf32, #tpu.memory_space<vmem>>, vector<1x16x128xf32>,
    return
  }
  func.func @transform_0(%arg0: i32, %arg1: i32) -> (i32, i32, i32) {
    %c0_i32 = arith.constant 0 : i32
    %c0_i32_0 = arith.constant 0 : i32
    return %arg0, %arg1, %c0_i32 : i32, i32, i32
  }
  func.func @transform_1(%arg0: i32, %arg1: i32) -> (i32, i32, i32) {
    %c1_i32 = arith.constant 1 : i32
    %0 = arith.addi %arg1, %c1_i32 : i32
    %c0_i32 = arith.constant 0 : i32
    %c0_i32_0 = arith.constant 0 : i32
    return %arg0, %0, %c0_i32 : i32, i32, i32
  }
  func.func @transform_2(%arg0: i32, %arg1: i32) -> (i32, i32) {
    %c0_i32 = arith.constant 0 : i32
    %c0_i32_0 = arith.constant 0 : i32
    %c0_i32_1 = arith.constant 0 : i32
    return %c0_i32, %c0_i32_0 : i32, i32
  }
  func.func @transform_3(%arg0: i32, %arg1: i32) -> (i32, i32) {
    %c0_i32 = arith.constant 0 : i32
    %c0_i32_0 = arith.constant 0 : i32
    %c0_i32_1 = arith.constant 0 : i32
    return %c0_i32, %c0_i32_0 : i32, i32
  }
  func.func @transform_4(%arg0: i32, %arg1: i32) -> (i32, i32, i32) {
    %c0_i32 = arith.constant 0 : i32
    %c0_i32_0 = arith.constant 0 : i32
    return %arg0, %arg1, %c0_i32 : i32, i32, i32
  }
}

</mosaic_0001>

<bundles_post_ra>
// kernel: mel_spectrogram_features_stage2.1
= control target key start
LH: loop header
LB: loop body
LE: loop exit
PB: predicated region body
PF: predicated region fallthrough
CT: control target
= control target key end

     0   :  { %9 = vsyncpa [#allocation4], 0  ;;  %s7721_s0 = inlined_call_operand.vmem [shape: f32[2,32,256], index: 0, kind: input, shape index: {}, may-alias: {0,1}]   ;;  %s7722_s1 = inlined_call_operand.vmem [shape: f32[2,32,256], index: 1, kind: input, shape index: {}, may-alias: {0,1}]   ;;  %s7723_s2 = inlined_call_operand.hbm [shape: bf16[1024,1152], index: 2, kind: input, shape index: {}]   ;;  %s7724_s3 = inlined_call_operand.hbm [shape: f32[640,128], index: 3, kind: input, shape index: {}]   ;;  %s7725_s4 = inlined_call_operand.vmem [shape: f32[2,16,128], index: 4, kind: output, shape index: {}]  }
   0x1   :  { %10 = vsyncpa [#allocation6], 0  ;;  %s7363_s15 = smov 0   ;;  %s7365_s16 = smov 0  }
   0x2   :  { %s7367_s17 = smov 0  }
   0x3 LB: > { %s5368_s18 = sadd.s32 4294967295, %s7330_s17   ;;  %s28_s19 = sadd.s32 1, %s7326_s16  ;;  %s7330_s17 = sphi %s7367_s17, %s16_s17   ;;  %s7326_s16 = sphi %s7365_s16, %s7735_s16   ;;  %s7322_s15 = sphi %s7363_s15, %s7734_s15  }
   0x4   : > { %p30_p0 = scmp.ge.s32.totalorder %s28_s19, 2  ;;  %p5370_p1 = scmp.ge.s32.totalorder %s7330_s17, 1 }
   0x5   : > { %p161_p2 = scmp.lt.s32.totalorder %s7330_s17, 3  ;;  %p7388_p4 = scmp.eq.s32.totalorder %s5368_s18, 0 }
   0x6   : > { %s7737_s19 = smov (%p30_p0, %s28_s19), 0  ;;  %s7332_s22 = smov [#allocation3]  }
   0x7   : > { %p7384_p3 = pnand %p5370_p1, %p161_p2  ;;  %s173_s23 = sshll.u32 %s7332_s22, 4  ;;  %s174_s23 = int_to_ptr.vmem [resolvable:$true] %s173_s23 }
   0x8   : > { %s7730_s21 = scalar_select %p7388_p4, 1, 0 }
   0x9   : > { %s7729_s20 = scalar_select %p7384_p3, 1, 0 }
   0xa   : > { %p6351_p5 = pneg %p7384_p3  ;;  %s7333_s25 = smov [#allocation5]  }
   0xb   : > { %s186_s26 = sshll.u32 %s7333_s25, 4  ;;  %s7244_s29 = scalar_lea.hbm %s7723_s2, 73728  ;;  %s7400_s26 = int_to_ptr.vmem [resolvable:$true] %s186_s26 }
   0xc   : > { %p7396_p6 = pnand %p7388_p4, %p6351_p5  ;;  %p7245_p7 = scmp.ne.s32.totalorder %s7723_s2, %s7244_s29 }
   0xd   : > { %p7251_p11 = scmp.lt.u32.totalorder %s7244_s29, %s7723_s2 }
   0xe   : > { %p7246_p8 = pneg %p7396_p6 }
  0x10   : > { %p7247_p9 = pnand %p7246_p8, %p7245_p7 }
  0x12   : > { %p7248_p10 = pneg %p7247_p9 }
  0x14   : > { %p7253_p12 = pnand %p7251_p11, %p7248_p10 }
  0x16   : > { %7256 = shalt.err (!%p7253_p12)
}
  0x17   : > { %s7257_s8 = scalar_lea.vmem %s174_s23, 73728  ;;  %p7265_p2 = scmp.lt.s32.totalorder %s174_s23, %s174_s23 }
  0x18   : > { %p7258_p13 = scmp.ne.s32.totalorder %s174_s23, %s7257_s8  ;;  %p7266_p5 = scmp.lt.s32.totalorder %s7257_s8, %s7257_s8 }
  0x1a   : > { %p7260_p0 = pnand %p7258_p13, %p7246_p8  ;;  %p7267_p4 = por %p7266_p5, %p7265_p2 }
  0x1c   : > { %p7261_p1 = pneg %p7260_p0 }
  0x1e   : > { %p7268_p3 = pnand %p7267_p4, %p7261_p1 }
  0x20   : > { %7271 = shalt.err (!%p7268_p3)
}
  0x21   : > { %s7334_s9 = smov 576   ;;  %s7335_s10 = smov 36  }
  0x22   : > { %6354 = dma.hbm_to_vmem [thread:$0]  (!%p7396_p6), %s7723_s2, 73728, %s174_s23, [#allocation4], %s7334_s9, %s7334_s9, %s7335_s10  }
  0x23   : > { %s7272_s18 = scalar_lea.hbm %s7724_s3, 10240 }
  0x24   : > { %p7273_p7 = scmp.ne.s32.totalorder %s7724_s3, %s7272_s18  ;;  %p7279_p9 = scmp.lt.u32.totalorder %s7272_s18, %s7724_s3 }
  0x26   : > { %p7275_p3 = pnand %p7273_p7, %p7246_p8 }
  0x28   : > { %p7276_p4 = pneg %p7275_p3 }
  0x2a   : > { %p7281_p10 = pnand %p7279_p9, %p7276_p4 }
  0x2c   : > { %7284 = shalt.err (!%p7281_p10)
}
  0x2d   : > { %s7285_s23 = scalar_lea.vmem %s7400_s26, 10240  ;;  %p7293_p0 = scmp.lt.s32.totalorder %s7400_s26, %s7400_s26 }
  0x2e   : > { %p7286_p11 = scmp.ne.s32.totalorder %s7400_s26, %s7285_s23  ;;  %p7294_p1 = scmp.lt.s32.totalorder %s7285_s23, %s7285_s23 }
  0x30   : > { %p7288_p12 = pnand %p7286_p11, %p7246_p8  ;;  %p7295_p2 = por %p7294_p1, %p7293_p0 }
  0x32   : > { %p7289_p13 = pneg %p7288_p12 }
  0x34   : > { %p7296_p5 = pnand %p7295_p2, %p7289_p13 }
  0x36   : > { %7299 = shalt.err (!%p7296_p5)
}
  0x37   : > { %s7336_s29 = smov 128   ;;  %s7337_s30 = smov 8  }
  0x38   : > { %6357 = dma.hbm_to_vmem [thread:$0]  (!%p7396_p6), %s7724_s3, 10240, %s7400_s26, [#allocation6], %s7336_s29, %s7336_s29, %s7337_s30  }
  0x39   : > { %p7732_p7 = scmp.ne.s32.totalorder %s7729_s20, 0 }
  0x3a   : > { %p7733_p8 = scmp.ne.s32.totalorder (!%p7732_p7), %s7730_s21, 0 }
  0x3b   : > { %232 = sbr.rel (%p7732_p7) target bundleno = 1120 (0x460), region = 36 }
  0x42   : > { %7313 = dma.done.wait (%p7733_p8), [#allocation4], 73728  }
  0x43   : > { %7315 = vsyncadd (%p7733_p8), [#allocation4], 4294893568 }
  0x44   : > { %7317 = dma.done.wait (%p7733_p8), [#allocation6], 10240  }
  0x45   : > { %7319 = vsyncadd (%p7733_p8), [#allocation6], 4294957056  ;;  %v6392_v0 = vld [vmem:[#allocation3 + $0x4] ss:$36 sps:$4 sm:$0xff]   ;;  %v6394_v1 = vld [vmem:[#allocation3 + $0xc] ss:$36 sps:$4 sm:$0xff]  }
  0x46   : > { %3988 = vmatprep.subr.bf16.mxu0 %v6392_v0  ;;  %v6396_v2 = vld [vmem:[#allocation3] ss:$36 sps:$4 sm:$0xff]   ;;  %v6397_v3 = vld [vmem:[#allocation3 + $0x8] ss:$36 sps:$4 sm:$0xff]   ;;  %4160 = vmatprep.subr.bf16.mxu1 %v6394_v1  ;;  %v6400_v5 = vld [vmem:[#allocation3 + $0x54] ss:$36 sps:$4 sm:$0xff]  }
  0x47   : > { %v6398_v4 = vld [vmem:[#allocation3 + $0x4c] ss:$36 sps:$4 sm:$0xff]   ;;  %3989 = vmatpush1.bf16.msra.mxu0 %v6396_v2  ;;  %4161 = vmatpush1.bf16.msra.mxu1 %v6397_v3  ;;  %v6404_v8 = vld [vmem:[#allocation3 + $0x94] ss:$36 sps:$4 sm:$0xff]   ;;  %v6406_v9 = vld [vmem:[#allocation3 + $0x9c] ss:$36 sps:$4 sm:$0xff]  }
  0x48   : > { %v6402_v6 = vld [vmem:[#allocation3 + $0x48] ss:$36 sps:$4 sm:$0xff]   ;;  %3990 = vmatprep.subr.bf16.mxu0 %v6398_v4  ;;  %v6403_v7 = vld [vmem:[#allocation3 + $0x50] ss:$36 sps:$4 sm:$0xff]   ;;  %4162 = vmatprep.subr.bf16.mxu1 %v6400_v5  ;;  %v6409_v11 = vld [vmem:[#allocation3 + $0x98] ss:$36 sps:$4 sm:$0xff]  }
  0x49   : > { %v6408_v10 = vld [vmem:[#allocation3 + $0x90] ss:$36 sps:$4 sm:$0xff]   ;;  %v6410_v12 = vld [vmem:[#allocation3 + $0xdc] ss:$36 sps:$4 sm:$0xff]   ;;  %v6412_v13 = vld [vmem:[#allocation3 + $0xe4] ss:$36 sps:$4 sm:$0xff]  }
  0x4a   : > { %v6414_v14 = vld [vmem:[#allocation3 + $0xd8] ss:$36 sps:$4 sm:$0xff]   ;;  %v6415_v15 = vld [vmem:[#allocation3 + $0xe0] ss:$36 sps:$4 sm:$0xff]   ;;  %v6418_v17 = vld [vmem:[#allocation3 + $0x12c] ss:$36 sps:$4 sm:$0xff]  }
  0x4b   : > { %3991 = vmatpush1.bf16.msra.mxu0 %v6402_v6  ;;  %4163 = vmatpush1.bf16.msra.mxu1 %v6403_v7  ;;  %v6416_v16 = vld [vmem:[#allocation3 + $0x124] ss:$36 sps:$4 sm:$0xff]   ;;  %v6422_v20 = vld [vmem:[#allocation3 + $0x16c] ss:$36 sps:$4 sm:$0xff]   ;;  %v6424_v21 = vld [vmem:[#allocation3 + $0x174] ss:$36 sps:$4 sm:$0xff]  }
  0x4c   : > { %3992 = vmatprep.subr.bf16.mxu0 %v6404_v8  ;;  %4164 = vmatprep.subr.bf16.mxu1 %v6406_v9  ;;  %v6420_v18 = vld [vmem:[#allocation3 + $0x120] ss:$36 sps:$4 sm:$0xff]   ;;  %v6421_v19 = vld [vmem:[#allocation3 + $0x128] ss:$36 sps:$4 sm:$0xff]   ;;  %v6427_v23 = vld [vmem:[#allocation3 + $0x170] ss:$36 sps:$4 sm:$0xff]  }
  0x4d   : > { %v6426_v22 = vld [vmem:[#allocation3 + $0x168] ss:$36 sps:$4 sm:$0xff]   ;;  %v6428_v24 = vld [vmem:[#allocation3 + $0x1b4] ss:$36 sps:$4 sm:$0xff]   ;;  %v6430_v25 = vld [vmem:[#allocation3 + $0x1bc] ss:$36 sps:$4 sm:$0xff]  }
  0x4e   : > { %v6432_v26 = vld [vmem:[#allocation3 + $0x1b0] ss:$36 sps:$4 sm:$0xff]   ;;  %v6433_v27 = vld [vmem:[#allocation3 + $0x1b8] ss:$36 sps:$4 sm:$0xff]   ;;  %v6436_v29 = vld [vmem:[#allocation3 + $0x204] ss:$36 sps:$4 sm:$0xff]  }
  0x4f   : > { %3993 = vmatpush1.bf16.msra.mxu0 %v6408_v10  ;;  %4165 = vmatpush1.bf16.msra.mxu1 %v6409_v11  ;;  %v6434_v28 = vld [vmem:[#allocation3 + $0x1fc] ss:$36 sps:$4 sm:$0xff]   ;;  %v6440_v32 = vld [vmem:[#allocation3 + $0x244] ss:$36 sps:$4 sm:$0xff]   ;;  %p283_p6 = scmp.lt.s32.totalorder %s7322_s15, 1  ;;  %vm362_vm1 = vcmask 1046528  }
  0x50   : > { %3994 = vmatprep.subr.bf16.mxu0 %v6410_v12  ;;  %4166 = vmatprep.subr.bf16.mxu1 %v6412_v13  ;;  %v6438_v30 = vld [vmem:[#allocation3 + $0x1f8] ss:$36 sps:$4 sm:$0xff]   ;;  %v6439_v31 = vld [vmem:[#allocation3 + $0x200] ss:$36 sps:$4 sm:$0xff]   ;;  %v6442_v33 = vld [vmem:[#allocation3 + $0x24c] ss:$36 sps:$4 sm:$0xff]  }
  0x51   : > { %v6444_v34 = vld [vmem:[#allocation3 + $0x240] ss:$36 sps:$4 sm:$0xff]   ;;  %v6445_v35 = vld [vmem:[#allocation3 + $0x248] ss:$36 sps:$4 sm:$0xff]   ;;  %s7739_s15 = smov (!%p283_p6, %s7322_s15), 1 }
  0x52   : > { %v6446_v36 = vld [vmem:[#allocation3 + $0x28c] ss:$36 sps:$4 sm:$0xff]   ;;  %v6448_v37 = vld [vmem:[#allocation3 + $0x294] ss:$36 sps:$4 sm:$0xff]   ;;  %s5961_s20 = sshll.u32 %s7739_s15, 6  ;;  %s5964_s11 = sshll.u32 %s7739_s15, 4 }
  0x53   : > { %3995 = vmatpush1.bf16.msra.mxu0 %v6414_v14  ;;  %4167 = vmatpush1.bf16.msra.mxu1 %v6415_v15  ;;  %v6450_v38 = vld [vmem:[#allocation3 + $0x288] ss:$36 sps:$4 sm:$0xff]   ;;  %v6451_v39 = vld [vmem:[#allocation3 + $0x290] ss:$36 sps:$4 sm:$0xff]   ;;  %v6454_v41 = vld [vmem:[#allocation3 + $0x2dc] ss:$36 sps:$4 sm:$0xff]   ;;  %s7469_s26 = scalar_lea.vmem %s7721_s0, %s5961_s20  ;;  %s314_s14 = scalar_lea.vmem %s7725_s4, %s5964_s11 }
  0x54   : > { %3996 = vmatprep.subr.bf16.mxu0 %v6416_v16  ;;  %4168 = vmatprep.subr.bf16.mxu1 %v6418_v17  ;;  %v6452_v40 = vld [vmem:[#allocation3 + $0x2d4] ss:$36 sps:$4 sm:$0xff]   ;;  %v6458_v44 = vld [vmem:[#allocation3 + $0x31c] ss:$36 sps:$4 sm:$0xff]   ;;  %v6460_v45 = vld [vmem:[#allocation3 + $0x324] ss:$36 sps:$4 sm:$0xff]  }
  0x55   : > { %v6456_v42 = vld [vmem:[#allocation3 + $0x2d0] ss:$36 sps:$4 sm:$0xff]   ;;  %v6457_v43 = vld [vmem:[#allocation3 + $0x2d8] ss:$36 sps:$4 sm:$0xff]   ;;  %v318_v46 = vld [vmem:[%s7469_s26 + $0x8] sm:$0xff]  ;;  %s5963_s7 = sadd.s32 32, %s5961_s20 }
  0x56   : > { %v320_v47 = vld [vmem:[%s7469_s26 + $0x18] sm:$0xff]  ;;  %v6463_v49 = vld [vmem:[#allocation3 + $0x320] ss:$36 sps:$4 sm:$0xff]   ;;  %v6466_v52 = vld [vmem:[#allocation3 + $0x36c] ss:$36 sps:$4 sm:$0xff]   ;;  %s7489_s10 = scalar_lea.vmem %s7722_s1, %s5963_s7 }
  0x57   : > { %3997 = vmatpush1.bf16.msra.mxu0 %v6420_v18  ;;  %4169 = vmatpush1.bf16.msra.mxu1 %v6421_v19  ;;  %v6462_v48 = vld [vmem:[#allocation3 + $0x318] ss:$36 sps:$4 sm:$0xff]   ;;  %v7473_v50 = vpack.c.bf16 %v320_v47, %v318_v46  ;;  %v6464_v51 = vld [vmem:[#allocation3 + $0x364] ss:$36 sps:$4 sm:$0xff]   ;;  %v6470_v55 = vld [vmem:[#allocation3 + $0x3ac] ss:$36 sps:$4 sm:$0xff]  }
  0x58   : > { %3998 = vmatprep.subr.bf16.mxu0 %v6422_v20  ;;  %4170 = vmatprep.subr.bf16.mxu1 %v6424_v21  ;;  %v6468_v53 = vld [vmem:[#allocation3 + $0x360] ss:$36 sps:$4 sm:$0xff]   ;;  %v6469_v54 = vld [vmem:[#allocation3 + $0x368] ss:$36 sps:$4 sm:$0xff]   ;;  %v6472_v56 = vld [vmem:[#allocation3 + $0x3b4] ss:$36 sps:$4 sm:$0xff]  }
  0x59   : > { %4020 = vmatprep.mubr.bf16.mxu0 %v7473_v50  ;;  %4192 = vmatprep.mubr.bf16.mxu1 %v7473_v50  ;;  %v6474_v57 = vld [vmem:[#allocation3 + $0x3a8] ss:$36 sps:$4 sm:$0xff]   ;;  %v6475_v58 = vld [vmem:[#allocation3 + $0x3b0] ss:$36 sps:$4 sm:$0xff]   ;;  %v6478_v60 = vld [vmem:[#allocation3 + $0x3fc] ss:$36 sps:$4 sm:$0xff]  }
  0x5a   : > { %v6476_v59 = vld [vmem:[#allocation3 + $0x3f4] ss:$36 sps:$4 sm:$0xff]   ;;  %v6482_v63 = vld [vmem:[#allocation3 + $0x43c] ss:$36 sps:$4 sm:$0xff]   ;;  %v6484_v0 = vld [vmem:[#allocation3 + $0x444] ss:$36 sps:$4 sm:$0xff]  }
  0x5b   : > { %3999 = vmatpush1.bf16.msra.mxu0 %v6426_v22  ;;  %4171 = vmatpush1.bf16.msra.mxu1 %v6427_v23  ;;  %v6480_v61 = vld [vmem:[#allocation3 + $0x3f0] ss:$36 sps:$4 sm:$0xff]   ;;  %v6481_v62 = vld [vmem:[#allocation3 + $0x3f8] ss:$36 sps:$4 sm:$0xff]   ;;  %v6487_v2 = vld [vmem:[#allocation3 + $0x440] ss:$36 sps:$4 sm:$0xff]  }
  0x5c   : > { %4000 = vmatprep.subr.bf16.mxu0 %v6428_v24  ;;  %4172 = vmatprep.subr.bf16.mxu1 %v6430_v25  ;;  %v6486_v1 = vld [vmem:[#allocation3 + $0x438] ss:$36 sps:$4 sm:$0xff]   ;;  %v6490_v3 = vld [vmem:[#allocation3 + $0x484] ss:$36 sps:$4 sm:$0xff]   ;;  %v319_v5 = vld [vmem:[%s7469_s26 + $0x10] sm:$0xff] }
  0x5d   : > { %v317_v4 = vld [vmem:[%s7469_s26] sm:$0xff]  ;;  %v6493_v6 = vld [vmem:[#allocation3 + $0x48c] ss:$36 sps:$4 sm:$0xff]   ;;  %v6499_v11 = vld [vmem:[#allocation3 + $0x4d4] ss:$36 sps:$4 sm:$0xff]  }
  0x5e   : > { %v6488_v7 = vld [vmem:[#allocation3 + $0x480] ss:$36 sps:$4 sm:$0xff]   ;;  %v6491_v8 = vld [vmem:[#allocation3 + $0x488] ss:$36 sps:$4 sm:$0xff]   ;;  %v7479_v9 = vpack.c.bf16 %v319_v5, %v317_v4  ;;  %v6497_v13 = vld [vmem:[#allocation3 + $0x4d0] ss:$36 sps:$4 sm:$0xff]  }
  0x5f   : > { %4001 = vmatpush1.bf16.msra.mxu0 %v6432_v26  ;;  %4173 = vmatpush1.bf16.msra.mxu1 %v6433_v27  ;;  %v6496_v10 = vld [vmem:[#allocation3 + $0x4cc] ss:$36 sps:$4 sm:$0xff]   ;;  %v6502_v14 = vld [vmem:[#allocation3 + $0x514] ss:$36 sps:$4 sm:$0xff]   ;;  %v6505_v15 = vld [vmem:[#allocation3 + $0x51c] ss:$36 sps:$4 sm:$0xff]  }
  0x60   : > { %4002 = vmatprep.subr.bf16.mxu0 %v6434_v28  ;;  %4174 = vmatprep.subr.bf16.mxu1 %v6436_v29  ;;  %v6494_v12 = vld [vmem:[#allocation3 + $0x4c8] ss:$36 sps:$4 sm:$0xff]   ;;  %v6500_v16 = vld [vmem:[#allocation3 + $0x510] ss:$36 sps:$4 sm:$0xff]   ;;  %v6503_v17 = vld [vmem:[#allocation3 + $0x518] ss:$36 sps:$4 sm:$0xff]  }
  0x61   : > { %v6508_v18 = vld [vmem:[#allocation3 + $0x55c] ss:$36 sps:$4 sm:$0xff]   ;;  %v6511_v19 = vld [vmem:[#allocation3 + $0x564] ss:$36 sps:$4 sm:$0xff]   ;;  %v6517_v23 = vld [vmem:[#allocation3 + $0x5ac] ss:$36 sps:$4 sm:$0xff]  }
  0x62   : > { %v6506_v20 = vld [vmem:[#allocation3 + $0x558] ss:$36 sps:$4 sm:$0xff]   ;;  %v6509_v21 = vld [vmem:[#allocation3 + $0x560] ss:$36 sps:$4 sm:$0xff]   ;;  %v6515_v25 = vld [vmem:[#allocation3 + $0x5a8] ss:$36 sps:$4 sm:$0xff]  }
  0x63   : > { %4003 = vmatpush1.bf16.msra.mxu0 %v6438_v30  ;;  %4175 = vmatpush1.bf16.msra.mxu1 %v6439_v31  ;;  %v6514_v22 = vld [vmem:[#allocation3 + $0x5a4] ss:$36 sps:$4 sm:$0xff]   ;;  %v6520_v26 = vld [vmem:[#allocation3 + $0x5ec] ss:$36 sps:$4 sm:$0xff]   ;;  %v6523_v27 = vld [vmem:[#allocation3 + $0x5f4] ss:$36 sps:$4 sm:$0xff]  }
  0x64   : > { %4004 = vmatprep.subr.bf16.mxu0 %v6440_v32  ;;  %4176 = vmatprep.subr.bf16.mxu1 %v6442_v33  ;;  %v6512_v24 = vld [vmem:[#allocation3 + $0x5a0] ss:$36 sps:$4 sm:$0xff]   ;;  %v345_v28 = vshll.u32 %v7473_v50, 16  ;;  %v6518_v29 = vld [vmem:[#allocation3 + $0x5e8] ss:$36 sps:$4 sm:$0xff]   ;;  %v343_v33 = vshrl.u32 %v7473_v50, 16 }
  0x65   : > { %v6521_v30 = vld [vmem:[#allocation3 + $0x5f0] ss:$36 sps:$4 sm:$0xff]   ;;  %v6529_v32 = vld [vmem:[#allocation3 + $0x63c] ss:$36 sps:$4 sm:$0xff]   ;;  %vm329_vm0 = vsmask.f32 7424 }
  0x66   : > { %v6526_v31 = vld [vmem:[#allocation3 + $0x634] ss:$36 sps:$4 sm:$0xff]   ;;  %v6538_v46 = vld [vmem:[#allocation3 + $0x6c4] ss:$36 sps:$4 sm:$0xff]   ;;  %v6541_v47 = vld [vmem:[#allocation3 + $0x6cc] ss:$36 sps:$4 sm:$0xff]  }
  0x67   : > { %4005 = vmatpush1.bf16.msra.mxu0 %v6444_v34  ;;  %4177 = vmatpush1.bf16.msra.mxu1 %v6445_v35  ;;  %v347_v34 = vrot.slane %v345_v28, 1  ;;  %v322_v35 = vld [vmem:[%s7489_s10 + $0x8] sm:$0xff]  ;;  %v6571_v5 = vld [vmem:[#allocation3 + $0x834] ss:$36 sps:$4 sm:$0xff]   ;;  %vm373_vm2 = vsmask.f32 6400 }
  0x68   : > { %4006 = vmatprep.subr.bf16.mxu0 %v6446_v36  ;;  %4178 = vmatprep.subr.bf16.mxu1 %v6448_v37  ;;  %v6524_v36 = vld [vmem:[#allocation3 + $0x630] ss:$36 sps:$4 sm:$0xff]   ;;  %v7495_v37 = vpack.c.bf16 %v322_v35, %v322_v35  ;;  %v6584_v35 = vld [vmem:[#allocation3 + $0x900] ss:$36 sps:$4 sm:$0xff]  }
  0x69   : > { %v6568_v4 = vld [vmem:[#allocation3 + $0x82c] ss:$36 sps:$4 sm:$0xff]  }
  0x6b   : > { %4007 = vmatpush1.bf16.msra.mxu0 %v6450_v38  ;;  %4179 = vmatpush1.bf16.msra.mxu1 %v6451_v39  ;;  %v6527_v38 = vld [vmem:[#allocation3 + $0x638] ss:$36 sps:$4 sm:$0xff]  }
  0x6c   : > { %4008 = vmatprep.subr.bf16.mxu0 %v6452_v40  ;;  %4180 = vmatprep.subr.bf16.mxu1 %v6454_v41  ;;  %v6532_v39 = vld [vmem:[#allocation3 + $0x67c] ss:$36 sps:$4 sm:$0xff]   ;;  %v6535_v40 = vld [vmem:[#allocation3 + $0x684] ss:$36 sps:$4 sm:$0xff]   ;;  %v348_v41 = vor.u32 %v347_v34, %v343_v33 }
  0x6f   : > { %4009 = vmatpush1.bf16.msra.mxu0 %v6456_v42  ;;  %4181 = vmatpush1.bf16.msra.mxu1 %v6457_v43  ;;  %v350_v42 = vshll.u32 %v7495_v37, 16 }
  0x70   : > { %4010 = vmatprep.subr.bf16.mxu0 %v6458_v44  ;;  %4182 = vmatprep.subr.bf16.mxu1 %v6460_v45  ;;  %v6530_v44 = vld [vmem:[#allocation3 + $0x678] ss:$36 sps:$4 sm:$0xff]   ;;  %v6533_v45 = vld [vmem:[#allocation3 + $0x680] ss:$36 sps:$4 sm:$0xff]  }
  0x71   : > { %v352_v43 = vrot.slane %v350_v42, 1  ;;  %v7525_v34 = vrot.slane %v350_v42, 2 }
  0x73   : > { %4011 = vmatpush1.bf16.msra.mxu0 %v6462_v48  ;;  %4183 = vmatpush1.bf16.msra.mxu1 %v6463_v49  ;;  %v7503_v48 = vsel %vm329_vm0, %v348_v41, %v352_v43  ;;  %v6536_v49 = vld [vmem:[#allocation3 + $0x6c0] ss:$36 sps:$4 sm:$0xff]  }
  0x74   : > { %4012 = vmatprep.subr.bf16.mxu0 %v6464_v51  ;;  %4184 = vmatprep.subr.bf16.mxu1 %v6466_v52  ;;  %v6539_v51 = vld [vmem:[#allocation3 + $0x6c8] ss:$36 sps:$4 sm:$0xff]  }
  0x75   : > { %v6544_v52 = vld [vmem:[#allocation3 + $0x70c] ss:$36 sps:$4 sm:$0xff]  }
  0x77   : > { %4013 = vmatpush1.bf16.msra.mxu0 %v6468_v53  ;;  %4185 = vmatpush1.bf16.msra.mxu1 %v6469_v54  ;;  %v6547_v53 = vld [vmem:[#allocation3 + $0x714] ss:$36 sps:$4 sm:$0xff]   ;;  %v6542_v54 = vld [vmem:[#allocation3 + $0x708] ss:$36 sps:$4 sm:$0xff]  }
  0x78   : > { %4014 = vmatprep.subr.bf16.mxu0 %v6470_v55  ;;  %4186 = vmatprep.subr.bf16.mxu1 %v6472_v56  ;;  %v6545_v55 = vld [vmem:[#allocation3 + $0x710] ss:$36 sps:$4 sm:$0xff]  }
  0x79   : > { %v6550_v56 = vld [vmem:[#allocation3 + $0x754] ss:$36 sps:$4 sm:$0xff]  }
  0x7b   : > { %4015 = vmatpush1.bf16.msra.mxu0 %v6474_v57  ;;  %4187 = vmatpush1.bf16.msra.mxu1 %v6475_v58  ;;  %v6553_v57 = vld [vmem:[#allocation3 + $0x75c] ss:$36 sps:$4 sm:$0xff]   ;;  %v6548_v58 = vld [vmem:[#allocation3 + $0x750] ss:$36 sps:$4 sm:$0xff]  }
  0x7c   : > { %4016 = vmatprep.subr.bf16.mxu0 %v6476_v59  ;;  %4188 = vmatprep.subr.bf16.mxu1 %v6478_v60  ;;  %v6551_v59 = vld [vmem:[#allocation3 + $0x758] ss:$36 sps:$4 sm:$0xff]  }
  0x7d   : > { %v6556_v60 = vld [vmem:[#allocation3 + $0x79c] ss:$36 sps:$4 sm:$0xff]  }
  0x7f   : > { %4017 = vmatpush1.bf16.msra.mxu0 %v6480_v61  ;;  %4189 = vmatpush1.bf16.msra.mxu1 %v6481_v62  ;;  %v6559_v61 = vld [vmem:[#allocation3 + $0x7a4] ss:$36 sps:$4 sm:$0xff]   ;;  %v6554_v62 = vld [vmem:[#allocation3 + $0x798] ss:$36 sps:$4 sm:$0xff]  }
  0x80   : > { %4018 = vmatprep.subr.bf16.mxu0 %v6482_v63  ;;  %4190 = vmatprep.subr.bf16.mxu1 %v6484_v0  ;;  %v6557_v63 = vld [vmem:[#allocation3 + $0x7a0] ss:$36 sps:$4 sm:$0xff]  }
  0x81   : > { %v6562_v0 = vld [vmem:[#allocation3 + $0x7e4] ss:$36 sps:$4 sm:$0xff]  }
  0x83   : > { %4019 = vmatpush1.bf16.msra.mxu0 %v6486_v1  ;;  %4191 = vmatpush1.bf16.msra.mxu1 %v6487_v2  ;;  %v6565_v1 = vld [vmem:[#allocation3 + $0x7ec] ss:$36 sps:$4 sm:$0xff]   ;;  %v6560_v2 = vld [vmem:[#allocation3 + $0x7e0] ss:$36 sps:$4 sm:$0xff]  }
  0x84   : > { %4031 = vmatprep.subr.bf16.mxu0 %v6490_v3  ;;  %4203 = vmatprep.subr.bf16.mxu1 %v6493_v6  ;;  %v6563_v3 = vld [vmem:[#allocation3 + $0x7e8] ss:$36 sps:$4 sm:$0xff]   ;;  %v321_v6 = vld [vmem:[%s7489_s10] sm:$0xff] }
  0x86   : > { %4021 = vmatmul.mubr.bf16.vlgmr.msra.gmra.mrb[0].mxu0 %v7479_v9  ;;  %4193 = vmatmul.mubr.bf16.vlgmr.msra.gmra.mrb[0].mxu1 %v7479_v9 }
  0x87   : > { %4032 = vmatpush1.bf16.msra.mxu0 %v6488_v7  ;;  %4204 = vmatpush1.bf16.msra.mxu1 %v6491_v8  ;;  %v333_v7 = vshll.u32 %v7479_v9, 16  ;;  %v6566_v8 = vld [vmem:[#allocation3 + $0x828] ss:$36 sps:$4 sm:$0xff]  }
  0x88   : > { %4033 = vmatprep.subr.bf16.mxu0 %v6496_v10  ;;  %4205 = vmatprep.subr.bf16.mxu1 %v6499_v11  ;;  %v6569_v10 = vld [vmem:[#allocation3 + $0x830] ss:$36 sps:$4 sm:$0xff]   ;;  %v7509_v11 = vpack.c.bf16 %v321_v6, %v321_v6  ;;  %v6631_v6 = vld [vmem:[#allocation3 + $0xb04] ss:$36 sps:$4 sm:$0xff]  }
  0x89   : > { %4063 = vmatprep.mubr.bf16.mxu0 %v7503_v48  ;;  %4235 = vmatprep.mubr.bf16.mxu1 %v7503_v48 }
  0x8b   : > { %4034 = vmatpush1.bf16.msra.mxu0 %v6494_v12  ;;  %4206 = vmatpush1.bf16.msra.mxu1 %v6497_v13  ;;  %v6574_v12 = vld [vmem:[#allocation3 + $0x874] ss:$36 sps:$4 sm:$0xff]   ;;  %v6577_v13 = vld [vmem:[#allocation3 + $0x87c] ss:$36 sps:$4 sm:$0xff]  }
  0x8c   : > { %4035 = vmatprep.subr.bf16.mxu0 %v6502_v14  ;;  %4207 = vmatprep.subr.bf16.mxu1 %v6505_v15  ;;  %v331_v14 = vshrl.u32 %v7479_v9, 16  ;;  %v335_v15 = vrot.slane %v333_v7, 1 }
  0x8f   : > { %4036 = vmatpush1.bf16.msra.mxu0 %v6500_v16  ;;  %4208 = vmatpush1.bf16.msra.mxu1 %v6503_v17  ;;  %v6572_v16 = vld [vmem:[#allocation3 + $0x870] ss:$36 sps:$4 sm:$0xff]   ;;  %v6575_v17 = vld [vmem:[#allocation3 + $0x878] ss:$36 sps:$4 sm:$0xff]  }
  0x90   : > { %4037 = vmatprep.subr.bf16.mxu0 %v6508_v18  ;;  %4209 = vmatprep.subr.bf16.mxu1 %v6511_v19  ;;  %v338_v18 = vshll.u32 %v7509_v11, 16  ;;  %v6580_v19 = vld [vmem:[#allocation3 + $0x8bc] ss:$36 sps:$4 sm:$0xff]  }
  0x92   : > { %v7539_v42 = vrot.slane %v338_v18, 2 }
  0x93   : > { %4038 = vmatpush1.bf16.msra.mxu0 %v6506_v20  ;;  %4210 = vmatpush1.bf16.msra.mxu1 %v6509_v21  ;;  %v6583_v20 = vld [vmem:[#allocation3 + $0x8c4] ss:$36 sps:$4 sm:$0xff]   ;;  %v386_v21 = vshrl.u32 %v7495_v37, 16 }
  0x94   : > { %4039 = vmatprep.subr.bf16.mxu0 %v6514_v22  ;;  %4211 = vmatprep.subr.bf16.mxu1 %v6517_v23  ;;  %v6578_v22 = vld [vmem:[#allocation3 + $0x8b8] ss:$36 sps:$4 sm:$0xff]   ;;  %v6581_v23 = vld [vmem:[#allocation3 + $0x8c0] ss:$36 sps:$4 sm:$0xff]  }
  0x97   : > { %4040 = vmatpush1.bf16.msra.mxu0 %v6512_v24  ;;  %4212 = vmatpush1.bf16.msra.mxu1 %v6515_v25  ;;  %v336_v24 = vor.u32 %v335_v15, %v331_v14  ;;  %v340_v25 = vrot.slane %v338_v18, 1  ;;  %v6632_v15 = vld [vmem:[#allocation3 + $0xb40] ss:$36 sps:$4 sm:$0xff]   ;;  %v6643_v18 = vld [vmem:[#allocation3 + $0xb94] ss:$36 sps:$4 sm:$0xff]  }
  0x98   : > { %4041 = vmatprep.subr.bf16.mxu0 %v6520_v26  ;;  %4213 = vmatprep.subr.bf16.mxu1 %v6523_v27  ;;  %v6586_v26 = vld [vmem:[#allocation3 + $0x904] ss:$36 sps:$4 sm:$0xff]   ;;  %v6589_v27 = vld [vmem:[#allocation3 + $0x90c] ss:$36 sps:$4 sm:$0xff]  }
  0x9b   : > { %4042 = vmatpush1.bf16.msra.mxu0 %v6518_v29  ;;  %4214 = vmatpush1.bf16.msra.mxu1 %v6521_v30  ;;  %v377_v29 = vshrl.u32 %v7509_v11, 16  ;;  %v7519_v30 = vrot.slane %v386_v21, 1  ;;  %v6646_v21 = vld [vmem:[#allocation3 + $0xbd4] ss:$36 sps:$4 sm:$0xff]  }
  0x9c   : > { %4043 = vmatprep.subr.bf16.mxu0 %v6526_v31  ;;  %4215 = vmatprep.subr.bf16.mxu1 %v6529_v32  ;;  %v366_v31 = vrot.slane %v7473_v50, 1  ;;  %v367_v32 = vrot.slane %v7495_v37, 1 }
  0x9d   : > { %v390_v41 = vor.u32 %v7525_v34, %v7519_v30  ;;  %v7532_v43 = vrot.slane %v377_v29, 1  ;;  %v6653_v29 = vld [vmem:[#allocation3 + $0xc20] ss:$36 sps:$4 sm:$0xff]  }
  0x9e   : > { %v7537_v37 = vsel %vm362_vm1, %v366_v31, %v367_v32  ;;  %v6658_v31 = vld [vmem:[#allocation3 + $0xc64] ss:$36 sps:$4 sm:$0xff]   ;;  %v6661_v32 = vld [vmem:[#allocation3 + $0xc6c] ss:$36 sps:$4 sm:$0xff]   ;;  %v6700_v30 = vld [vmem:[#allocation3 + $0xe5c] ss:$36 sps:$4 sm:$0xff]  }
  0x9f   : > { %4044 = vmatpush1.bf16.msra.mxu0 %v6524_v36  ;;  %4216 = vmatpush1.bf16.msra.mxu1 %v6527_v38  ;;  %v6587_v36 = vld [vmem:[#allocation3 + $0x908] ss:$36 sps:$4 sm:$0xff]   ;;  %v7528_v38 = vsel %vm329_vm0, %v336_v24, %v340_v25  ;;  %v6647_v24 = vld [vmem:[#allocation3 + $0xbd8] ss:$36 sps:$4 sm:$0xff]  }
  0xa0   : > { %4045 = vmatprep.subr.bf16.mxu0 %v6532_v39  ;;  %4217 = vmatprep.subr.bf16.mxu1 %v6535_v40  ;;  %v6592_v39 = vld [vmem:[#allocation3 + $0x94c] ss:$36 sps:$4 sm:$0xff]   ;;  %v6595_v40 = vld [vmem:[#allocation3 + $0x954] ss:$36 sps:$4 sm:$0xff]   ;;  %v6652_v25 = vld [vmem:[#allocation3 + $0xc1c] ss:$36 sps:$4 sm:$0xff]  }
  0xa1   : > { %v6703_v34 = vld [vmem:[#allocation3 + $0xe64] ss:$36 sps:$4 sm:$0xff]  }
  0xa3   : > { %4046 = vmatpush1.bf16.msra.mxu0 %v6530_v44  ;;  %4218 = vmatpush1.bf16.msra.mxu1 %v6533_v45  ;;  %v6590_v44 = vld [vmem:[#allocation3 + $0x948] ss:$36 sps:$4 sm:$0xff]   ;;  %v6593_v45 = vld [vmem:[#allocation3 + $0x950] ss:$36 sps:$4 sm:$0xff]  }
  0xa4   : > { %4047 = vmatprep.subr.bf16.mxu0 %v6538_v46  ;;  %4219 = vmatprep.subr.bf16.mxu1 %v6541_v47  ;;  %v6598_v46 = vld [vmem:[#allocation3 + $0x994] ss:$36 sps:$4 sm:$0xff]   ;;  %v6601_v47 = vld [vmem:[#allocation3 + $0x99c] ss:$36 sps:$4 sm:$0xff]  }
  0xa7   : > { %4048 = vmatpush1.bf16.msra.mxu0 %v6536_v49  ;;  %4220 = vmatpush1.bf16.msra.mxu1 %v6539_v51  ;;  %v381_v49 = vor.u32 %v7539_v42, %v7532_v43  ;;  %v6596_v51 = vld [vmem:[#allocation3 + $0x990] ss:$36 sps:$4 sm:$0xff]   ;;  %v6790_v43 = vld [vmem:[#allocation3 + $0xa4] ss:$36 sps:$4 sm:$0xff]  }
  0xa8   : > { %4049 = vmatprep.subr.bf16.mxu0 %v6544_v52  ;;  %4221 = vmatprep.subr.bf16.mxu1 %v6547_v53  ;;  %v6599_v52 = vld [vmem:[#allocation3 + $0x998] ss:$36 sps:$4 sm:$0xff]   ;;  %v6793_v42 = vld [vmem:[#allocation3 + $0xac] ss:$36 sps:$4 sm:$0xff]  }
  0xa9   : > { %v6604_v53 = vld [vmem:[#allocation3 + $0x9dc] ss:$36 sps:$4 sm:$0xff]  }
  0xab   : > { %4050 = vmatpush1.bf16.msra.mxu0 %v6542_v54  ;;  %4222 = vmatpush1.bf16.msra.mxu1 %v6545_v55  ;;  %v6607_v54 = vld [vmem:[#allocation3 + $0x9e4] ss:$36 sps:$4 sm:$0xff]   ;;  %v6602_v55 = vld [vmem:[#allocation3 + $0x9d8] ss:$36 sps:$4 sm:$0xff]  }
  0xac   : > { %4051 = vmatprep.subr.bf16.mxu0 %v6550_v56  ;;  %4223 = vmatprep.subr.bf16.mxu1 %v6553_v57  ;;  %v6605_v56 = vld [vmem:[#allocation3 + $0x9e0] ss:$36 sps:$4 sm:$0xff]  }
  0xad   : > { %v6610_v57 = vld [vmem:[#allocation3 + $0xa24] ss:$36 sps:$4 sm:$0xff]  }
  0xaf   : > { %4052 = vmatpush1.bf16.msra.mxu0 %v6548_v58  ;;  %4224 = vmatpush1.bf16.msra.mxu1 %v6551_v59  ;;  %v6613_v58 = vld [vmem:[#allocation3 + $0xa2c] ss:$36 sps:$4 sm:$0xff]   ;;  %v6608_v59 = vld [vmem:[#allocation3 + $0xa20] ss:$36 sps:$4 sm:$0xff]  }
  0xb0   : > { %4053 = vmatprep.subr.bf16.mxu0 %v6556_v60  ;;  %4225 = vmatprep.subr.bf16.mxu1 %v6559_v61  ;;  %v6611_v60 = vld [vmem:[#allocation3 + $0xa28] ss:$36 sps:$4 sm:$0xff]  }
  0xb1   : > { %v6616_v61 = vld [vmem:[#allocation3 + $0xa6c] ss:$36 sps:$4 sm:$0xff]  }
  0xb3   : > { %4054 = vmatpush1.bf16.msra.mxu0 %v6554_v62  ;;  %4226 = vmatpush1.bf16.msra.mxu1 %v6557_v63  ;;  %v6619_v62 = vld [vmem:[#allocation3 + $0xa74] ss:$36 sps:$4 sm:$0xff]   ;;  %v6614_v63 = vld [vmem:[#allocation3 + $0xa68] ss:$36 sps:$4 sm:$0xff]  }
  0xb4   : > { %4055 = vmatprep.subr.bf16.mxu0 %v6562_v0  ;;  %4227 = vmatprep.subr.bf16.mxu1 %v6565_v1  ;;  %v6617_v0 = vld [vmem:[#allocation3 + $0xa70] ss:$36 sps:$4 sm:$0xff]  }
  0xb5   : > { %v6622_v1 = vld [vmem:[#allocation3 + $0xab4] ss:$36 sps:$4 sm:$0xff]  }
  0xb7   : > { %4056 = vmatpush1.bf16.msra.mxu0 %v6560_v2  ;;  %4228 = vmatpush1.bf16.msra.mxu1 %v6563_v3  ;;  %v6625_v2 = vld [vmem:[#allocation3 + $0xabc] ss:$36 sps:$4 sm:$0xff]   ;;  %v6620_v3 = vld [vmem:[#allocation3 + $0xab0] ss:$36 sps:$4 sm:$0xff]  }
  0xb8   : > { %4057 = vmatprep.subr.bf16.mxu0 %v6568_v4  ;;  %4229 = vmatprep.subr.bf16.mxu1 %v6571_v5  ;;  %v6623_v4 = vld [vmem:[#allocation3 + $0xab8] ss:$36 sps:$4 sm:$0xff]  }
  0xb9   : > { %v6628_v5 = vld [vmem:[#allocation3 + $0xafc] ss:$36 sps:$4 sm:$0xff]  }
  0xbb   : > { %4058 = vmatpush1.bf16.msra.mxu0 %v6566_v8  ;;  %4230 = vmatpush1.bf16.msra.mxu1 %v6569_v10  ;;  %v6626_v8 = vld [vmem:[#allocation3 + $0xaf8] ss:$36 sps:$4 sm:$0xff]   ;;  %v6629_v10 = vld [vmem:[#allocation3 + $0xb00] ss:$36 sps:$4 sm:$0xff]  }
  0xbc   : > { %4059 = vmatprep.subr.bf16.mxu0 %v6574_v12  ;;  %4231 = vmatprep.subr.bf16.mxu1 %v6577_v13  ;;  %v6634_v12 = vld [vmem:[#allocation3 + $0xb44] ss:$36 sps:$4 sm:$0xff]   ;;  %v6637_v13 = vld [vmem:[#allocation3 + $0xb4c] ss:$36 sps:$4 sm:$0xff]  }
  0xbf   : > { %4060 = vmatpush1.bf16.msra.mxu0 %v6572_v16  ;;  %4232 = vmatpush1.bf16.msra.mxu1 %v6575_v17  ;;  %v6635_v16 = vld [vmem:[#allocation3 + $0xb48] ss:$36 sps:$4 sm:$0xff]  }
  0xc0   : > { %4061 = vmatprep.subr.bf16.mxu0 %v6580_v19  ;;  %4233 = vmatprep.subr.bf16.mxu1 %v6583_v20  ;;  %v6640_v17 = vld [vmem:[#allocation3 + $0xb8c] ss:$36 sps:$4 sm:$0xff]  }
  0xc1   : > { %v6638_v19 = vld [vmem:[#allocation3 + $0xb88] ss:$36 sps:$4 sm:$0xff]   ;;  %v6641_v20 = vld [vmem:[#allocation3 + $0xb90] ss:$36 sps:$4 sm:$0xff]  }
  0xc3   : > { %4062 = vmatpush1.bf16.msra.mxu0 %v6578_v22  ;;  %4234 = vmatpush1.bf16.msra.mxu1 %v6581_v23  ;;  %v6649_v22 = vld [vmem:[#allocation3 + $0xbdc] ss:$36 sps:$4 sm:$0xff]   ;;  %v6644_v23 = vld [vmem:[#allocation3 + $0xbd0] ss:$36 sps:$4 sm:$0xff]  }
  0xc4   : > { %4074 = vmatprep.subr.bf16.mxu0 %v6586_v26  ;;  %4246 = vmatprep.subr.bf16.mxu1 %v6589_v27  ;;  %v6655_v26 = vld [vmem:[#allocation3 + $0xc24] ss:$36 sps:$4 sm:$0xff]   ;;  %v6650_v27 = vld [vmem:[#allocation3 + $0xc18] ss:$36 sps:$4 sm:$0xff]  }
  0xc6   : > { %4064 = vmatmul.mubr.bf16.vlgmr.msra.gmra.mrb[0].mxu0 %v7528_v38  ;;  %4236 = vmatmul.mubr.bf16.vlgmr.msra.gmra.mrb[0].mxu1 %v7528_v38 }
  0xc7   : > { %4075 = vmatpush1.bf16.msra.mxu0 %v6584_v35  ;;  %4247 = vmatpush1.bf16.msra.mxu1 %v6587_v36  ;;  %v6656_v35 = vld [vmem:[#allocation3 + $0xc60] ss:$36 sps:$4 sm:$0xff]   ;;  %v6659_v36 = vld [vmem:[#allocation3 + $0xc68] ss:$36 sps:$4 sm:$0xff]  }
  0xc8   : > { %4076 = vmatprep.subr.bf16.mxu0 %v6592_v39  ;;  %4248 = vmatprep.subr.bf16.mxu1 %v6595_v40  ;;  %v6664_v39 = vld [vmem:[#allocation3 + $0xcac] ss:$36 sps:$4 sm:$0xff]   ;;  %v6667_v40 = vld [vmem:[#allocation3 + $0xcb4] ss:$36 sps:$4 sm:$0xff]  }
  0xc9   : > { %4106 = vmatprep.mubr.bf16.mxu0 %v7537_v37  ;;  %4278 = vmatprep.mubr.bf16.mxu1 %v7537_v37 }
  0xcb   : > { %4077 = vmatpush1.bf16.msra.mxu0 %v6590_v44  ;;  %4249 = vmatpush1.bf16.msra.mxu1 %v6593_v45  ;;  %v6662_v44 = vld [vmem:[#allocation3 + $0xca8] ss:$36 sps:$4 sm:$0xff]   ;;  %v6665_v45 = vld [vmem:[#allocation3 + $0xcb0] ss:$36 sps:$4 sm:$0xff]  }
  0xcc   : > { %4078 = vmatprep.subr.bf16.mxu0 %v6598_v46  ;;  %4250 = vmatprep.subr.bf16.mxu1 %v6601_v47  ;;  %v6670_v46 = vld [vmem:[#allocation3 + $0xcf4] ss:$36 sps:$4 sm:$0xff]   ;;  %v6673_v47 = vld [vmem:[#allocation3 + $0xcfc] ss:$36 sps:$4 sm:$0xff]  }
  0xcf   : > { %4079 = vmatpush1.bf16.msra.mxu0 %v6596_v51  ;;  %4251 = vmatpush1.bf16.msra.mxu1 %v6599_v52  ;;  %v6668_v51 = vld [vmem:[#allocation3 + $0xcf0] ss:$36 sps:$4 sm:$0xff]   ;;  %v6671_v52 = vld [vmem:[#allocation3 + $0xcf8] ss:$36 sps:$4 sm:$0xff]  }
  0xd0   : > { %4080 = vmatprep.subr.bf16.mxu0 %v6604_v53  ;;  %4252 = vmatprep.subr.bf16.mxu1 %v6607_v54  ;;  %v6676_v53 = vld [vmem:[#allocation3 + $0xd3c] ss:$36 sps:$4 sm:$0xff]   ;;  %v6679_v54 = vld [vmem:[#allocation3 + $0xd44] ss:$36 sps:$4 sm:$0xff]  }
  0xd3   : > { %4081 = vmatpush1.bf16.msra.mxu0 %v6602_v55  ;;  %4253 = vmatpush1.bf16.msra.mxu1 %v6605_v56  ;;  %v363_v55 = vrot.slane %v7479_v9, 1  ;;  %v383_v56 = vrot.slane %v343_v33, 1 }
  0xd4   : > { %4082 = vmatprep.subr.bf16.mxu0 %v6610_v57  ;;  %4254 = vmatprep.subr.bf16.mxu1 %v6613_v58  ;;  %v384_v57 = vrot.slane %v345_v28, 2  ;;  %v6674_v58 = vld [vmem:[#allocation3 + $0xd38] ss:$36 sps:$4 sm:$0xff]   ;;  %v6688_v28 = vld [vmem:[#allocation3 + $0xdcc] ss:$36 sps:$4 sm:$0xff]  }
  0xd7   : > { %4083 = vmatpush1.bf16.msra.mxu0 %v6608_v59  ;;  %4255 = vmatpush1.bf16.msra.mxu1 %v6611_v60  ;;  %v6677_v59 = vld [vmem:[#allocation3 + $0xd40] ss:$36 sps:$4 sm:$0xff]   ;;  %v364_v60 = vrot.slane %v7509_v11, 1 }
  0xd8   : > { %4084 = vmatprep.subr.bf16.mxu0 %v6616_v61  ;;  %4256 = vmatprep.subr.bf16.mxu1 %v6619_v62  ;;  %v6682_v61 = vld [vmem:[#allocation3 + $0xd84] ss:$36 sps:$4 sm:$0xff]   ;;  %v6685_v62 = vld [vmem:[#allocation3 + $0xd8c] ss:$36 sps:$4 sm:$0xff]  }
  0xd9   : > { %v7552_v33 = vsel %vm362_vm1, %v363_v55, %v364_v60  ;;  %v6751_v55 = vld [vmem:[#allocation3 + $0x10a4] ss:$36 sps:$4 sm:$0xff]  }
  0xda   : > { %v6752_v60 = vld [vmem:[#allocation3 + $0x10e0] ss:$36 sps:$4 sm:$0xff]  }
  0xdb   : > { %4085 = vmatpush1.bf16.msra.mxu0 %v6614_v63  ;;  %4257 = vmatpush1.bf16.msra.mxu1 %v6617_v0  ;;  %v6680_v63 = vld [vmem:[#allocation3 + $0xd80] ss:$36 sps:$4 sm:$0xff]   ;;  %v385_v0 = vor.u32 %v384_v57, %v383_v56  ;;  %v6746_v56 = vld [vmem:[#allocation3 + $0x1098] ss:$36 sps:$4 sm:$0xff]  }
  0xdc   : > { %4086 = vmatprep.subr.bf16.mxu0 %v6622_v1  ;;  %4258 = vmatprep.subr.bf16.mxu1 %v6625_v2  ;;  %v6683_v1 = vld [vmem:[#allocation3 + $0xd88] ss:$36 sps:$4 sm:$0xff]   ;;  %v6691_v2 = vld [vmem:[#allocation3 + $0xdd4] ss:$36 sps:$4 sm:$0xff]   ;;  %v6749_v57 = vld [vmem:[#allocation3 + $0x10a0] ss:$36 sps:$4 sm:$0xff]  }
  0xdd   : > { %v7560_v11 = vsel %vm373_vm2, %v385_v0, %v390_v41  ;;  %v6698_v41 = vld [vmem:[#allocation3 + $0xe58] ss:$36 sps:$4 sm:$0xff]   ;;  %v6758_v0 = vld [vmem:[#allocation3 + $0x1128] ss:$36 sps:$4 sm:$0xff]  }
  0xdf   : > { %4087 = vmatpush1.bf16.msra.mxu0 %v6620_v3  ;;  %4259 = vmatpush1.bf16.msra.mxu1 %v6623_v4  ;;  %v6686_v3 = vld [vmem:[#allocation3 + $0xdc8] ss:$36 sps:$4 sm:$0xff]   ;;  %v6689_v4 = vld [vmem:[#allocation3 + $0xdd0] ss:$36 sps:$4 sm:$0xff]  }
  0xe0   : > { %4088 = vmatprep.subr.bf16.mxu0 %v6628_v5  ;;  %4260 = vmatprep.subr.bf16.mxu1 %v6631_v6  ;;  %v6694_v5 = vld [vmem:[#allocation3 + $0xe14] ss:$36 sps:$4 sm:$0xff]   ;;  %v6697_v6 = vld [vmem:[#allocation3 + $0xe1c] ss:$36 sps:$4 sm:$0xff]  }
  0xe3   : > { %4089 = vmatpush1.bf16.msra.mxu0 %v6626_v8  ;;  %4261 = vmatpush1.bf16.msra.mxu1 %v6629_v10  ;;  %v6692_v8 = vld [vmem:[#allocation3 + $0xe10] ss:$36 sps:$4 sm:$0xff]   ;;  %v6695_v10 = vld [vmem:[#allocation3 + $0xe18] ss:$36 sps:$4 sm:$0xff]  }
  0xe4   : > { %4090 = vmatprep.subr.bf16.mxu0 %v6634_v12  ;;  %4262 = vmatprep.subr.bf16.mxu1 %v6637_v13  ;;  %v6701_v12 = vld [vmem:[#allocation3 + $0xe60] ss:$36 sps:$4 sm:$0xff]  }
  0xe5   : > { %v6706_v13 = vld [vmem:[#allocation3 + $0xea4] ss:$36 sps:$4 sm:$0xff]  }
  0xe7   : > { %4091 = vmatpush1.bf16.msra.mxu0 %v6632_v15  ;;  %4263 = vmatpush1.bf16.msra.mxu1 %v6635_v16  ;;  %v6709_v15 = vld [vmem:[#allocation3 + $0xeac] ss:$36 sps:$4 sm:$0xff]   ;;  %v6704_v16 = vld [vmem:[#allocation3 + $0xea0] ss:$36 sps:$4 sm:$0xff]  }
  0xe8   : > { %4092 = vmatprep.subr.bf16.mxu0 %v6640_v17  ;;  %4264 = vmatprep.subr.bf16.mxu1 %v6643_v18  ;;  %v6707_v17 = vld [vmem:[#allocation3 + $0xea8] ss:$36 sps:$4 sm:$0xff]  }
  0xe9   : > { %v6712_v18 = vld [vmem:[#allocation3 + $0xeec] ss:$36 sps:$4 sm:$0xff]  }
  0xeb   : > { %4093 = vmatpush1.bf16.msra.mxu0 %v6638_v19  ;;  %4265 = vmatpush1.bf16.msra.mxu1 %v6641_v20  ;;  %v6715_v19 = vld [vmem:[#allocation3 + $0xef4] ss:$36 sps:$4 sm:$0xff]   ;;  %v6710_v20 = vld [vmem:[#allocation3 + $0xee8] ss:$36 sps:$4 sm:$0xff]  }
  0xec   : > { %4094 = vmatprep.subr.bf16.mxu0 %v6646_v21  ;;  %4266 = vmatprep.subr.bf16.mxu1 %v6649_v22  ;;  %v6713_v21 = vld [vmem:[#allocation3 + $0xef0] ss:$36 sps:$4 sm:$0xff]  }
  0xed   : > { %v6718_v22 = vld [vmem:[#allocation3 + $0xf34] ss:$36 sps:$4 sm:$0xff]  }
  0xef   : > { %4095 = vmatpush1.bf16.msra.mxu0 %v6644_v23  ;;  %4267 = vmatpush1.bf16.msra.mxu1 %v6647_v24  ;;  %v6721_v23 = vld [vmem:[#allocation3 + $0xf3c] ss:$36 sps:$4 sm:$0xff]   ;;  %v6716_v24 = vld [vmem:[#allocation3 + $0xf30] ss:$36 sps:$4 sm:$0xff]  }
  0xf0   : > { %4096 = vmatprep.subr.bf16.mxu0 %v6652_v25  ;;  %4268 = vmatprep.subr.bf16.mxu1 %v6655_v26  ;;  %v6719_v25 = vld [vmem:[#allocation3 + $0xf38] ss:$36 sps:$4 sm:$0xff]  }
  0xf1   : > { %v6724_v26 = vld [vmem:[#allocation3 + $0xf7c] ss:$36 sps:$4 sm:$0xff]  }
  0xf3   : > { %4097 = vmatpush1.bf16.msra.mxu0 %v6650_v27  ;;  %4269 = vmatpush1.bf16.msra.mxu1 %v6653_v29  ;;  %v6727_v27 = vld [vmem:[#allocation3 + $0xf84] ss:$36 sps:$4 sm:$0xff]   ;;  %v6722_v29 = vld [vmem:[#allocation3 + $0xf78] ss:$36 sps:$4 sm:$0xff]  }
  0xf4   : > { %4098 = vmatprep.subr.bf16.mxu0 %v6658_v31  ;;  %4270 = vmatprep.subr.bf16.mxu1 %v6661_v32  ;;  %v6725_v31 = vld [vmem:[#allocation3 + $0xf80] ss:$36 sps:$4 sm:$0xff]  }
  0xf5   : > { %v6730_v32 = vld [vmem:[#allocation3 + $0xfc4] ss:$36 sps:$4 sm:$0xff]  }
  0xf7   : > { %4099 = vmatpush1.bf16.msra.mxu0 %v6656_v35  ;;  %4271 = vmatpush1.bf16.msra.mxu1 %v6659_v36  ;;  %v6733_v35 = vld [vmem:[#allocation3 + $0xfcc] ss:$36 sps:$4 sm:$0xff]   ;;  %v6728_v36 = vld [vmem:[#allocation3 + $0xfc0] ss:$36 sps:$4 sm:$0xff]  }
  0xf8   : > { %4100 = vmatprep.subr.bf16.mxu0 %v6664_v39  ;;  %4272 = vmatprep.subr.bf16.mxu1 %v6667_v40  ;;  %v6731_v39 = vld [vmem:[#allocation3 + $0xfc8] ss:$36 sps:$4 sm:$0xff]  }
  0xf9   : > { %v6736_v40 = vld [vmem:[#allocation3 + $0x100c] ss:$36 sps:$4 sm:$0xff]  }
  0xfb   : > { %4101 = vmatpush1.bf16.msra.mxu0 %v6662_v44  ;;  %4273 = vmatpush1.bf16.msra.mxu1 %v6665_v45  ;;  %v6739_v44 = vld [vmem:[#allocation3 + $0x1014] ss:$36 sps:$4 sm:$0xff]   ;;  %v6734_v45 = vld [vmem:[#allocation3 + $0x1008] ss:$36 sps:$4 sm:$0xff]  }
  0xfc   : > { %4102 = vmatprep.subr.bf16.mxu0 %v6670_v46  ;;  %4274 = vmatprep.subr.bf16.mxu1 %v6673_v47  ;;  %v6737_v46 = vld [vmem:[#allocation3 + $0x1010] ss:$36 sps:$4 sm:$0xff]  }
  0xfd   : > { %v6742_v47 = vld [vmem:[#allocation3 + $0x1054] ss:$36 sps:$4 sm:$0xff]  }
  0xff   : > { %4103 = vmatpush1.bf16.msra.mxu0 %v6668_v51  ;;  %4275 = vmatpush1.bf16.msra.mxu1 %v6671_v52  ;;  %v6745_v51 = vld [vmem:[#allocation3 + $0x105c] ss:$36 sps:$4 sm:$0xff]   ;;  %v6740_v52 = vld [vmem:[#allocation3 + $0x1050] ss:$36 sps:$4 sm:$0xff]  }
 0x100   : > { %4104 = vmatprep.subr.bf16.mxu0 %v6676_v53  ;;  %4276 = vmatprep.subr.bf16.mxu1 %v6679_v54  ;;  %v6743_v53 = vld [vmem:[#allocation3 + $0x1058] ss:$36 sps:$4 sm:$0xff]  }
 0x101   : > { %v6748_v54 = vld [vmem:[#allocation3 + $0x109c] ss:$36 sps:$4 sm:$0xff]  }
 0x103   : > { %4105 = vmatpush1.bf16.msra.mxu0 %v6674_v58  ;;  %4277 = vmatpush1.bf16.msra.mxu1 %v6677_v59  ;;  %v6754_v58 = vld [vmem:[#allocation3 + $0x10e4] ss:$36 sps:$4 sm:$0xff]   ;;  %v6757_v59 = vld [vmem:[#allocation3 + $0x10ec] ss:$36 sps:$4 sm:$0xff]  }
 0x104   : > { %4117 = vmatprep.subr.bf16.mxu0 %v6682_v61  ;;  %4289 = vmatprep.subr.bf16.mxu1 %v6685_v62  ;;  %v6755_v61 = vld [vmem:[#allocation3 + $0x10e8] ss:$36 sps:$4 sm:$0xff]  }
 0x105   : > { %v6760_v62 = vld [vmem:[#allocation3 + $0x112c] ss:$36 sps:$4 sm:$0xff]  }
 0x106   : > { %4107 = vmatmul.mubr.bf16.vlgmr.msra.gmra.mrb[0].mxu0 %v7552_v33  ;;  %4279 = vmatmul.mubr.bf16.vlgmr.msra.gmra.mrb[0].mxu1 %v7552_v33 }
 0x107   : > { %4118 = vmatpush1.bf16.msra.mxu0 %v6680_v63  ;;  %4290 = vmatpush1.bf16.msra.mxu1 %v6683_v1  ;;  %v6763_v63 = vld [vmem:[#allocation3 + $0x1134] ss:$36 sps:$4 sm:$0xff]  }
 0x108   : > { %4119 = vmatprep.subr.bf16.mxu0 %v6688_v28  ;;  %4291 = vmatprep.subr.bf16.mxu1 %v6691_v2  ;;  %v6761_v1 = vld [vmem:[#allocation3 + $0x1130] ss:$36 sps:$4 sm:$0xff]   ;;  %v6769_v2 = vld [vmem:[#allocation3 + $0x117c] ss:$36 sps:$4 sm:$0xff]  }
 0x109   : > { %4149 = vmatprep.mubr.bf16.mxu0 %v7560_v11  ;;  %4321 = vmatprep.mubr.bf16.mxu1 %v7560_v11  ;;  %v6766_v28 = vld [vmem:[#allocation3 + $0x1174] ss:$36 sps:$4 sm:$0xff]  }
 0x10b   : > { %4120 = vmatpush1.bf16.msra.mxu0 %v6686_v3  ;;  %4292 = vmatpush1.bf16.msra.mxu1 %v6689_v4  ;;  %v374_v3 = vrot.slane %v331_v14, 1  ;;  %v6764_v4 = vld [vmem:[#allocation3 + $0x1170] ss:$36 sps:$4 sm:$0xff]   ;;  %v6781_v14 = vld [vmem:[#allocation3 + $0x1c] ss:$36 sps:$4 sm:$0xff]  }
 0x10c   : > { %4121 = vmatprep.subr.bf16.mxu0 %v6694_v5  ;;  %4293 = vmatprep.subr.bf16.mxu1 %v6697_v6  ;;  %v6767_v5 = vld [vmem:[#allocation3 + $0x1178] ss:$36 sps:$4 sm:$0xff]   ;;  %v375_v6 = vrot.slane %v333_v7, 2 }
 0x10f   : > { %4122 = vmatpush1.bf16.msra.mxu0 %v6692_v8  ;;  %4294 = vmatpush1.bf16.msra.mxu1 %v6695_v10  ;;  %v6772_v8 = vld [vmem:[#allocation3 + $0x11bc] ss:$36 sps:$4 sm:$0xff]   ;;  %v6775_v10 = vld [vmem:[#allocation3 + $0x11c4] ss:$36 sps:$4 sm:$0xff]  }
 0x110   : > { %4123 = vmatprep.subr.bf16.mxu0 %v6700_v30  ;;  %4295 = vmatprep.subr.bf16.mxu1 %v6703_v34  ;;  %v6770_v30 = vld [vmem:[#allocation3 + $0x11b8] ss:$36 sps:$4 sm:$0xff]   ;;  %v6773_v34 = vld [vmem:[#allocation3 + $0x11c0] ss:$36 sps:$4 sm:$0xff]  }
 0x113   : > { %4124 = vmatpush1.bf16.msra.mxu0 %v6698_v41  ;;  %4296 = vmatpush1.bf16.msra.mxu1 %v6701_v12  ;;  %v376_v41 = vor.u32 %v375_v6, %v374_v3  ;;  %v6778_v12 = vld [vmem:[#allocation3 + $0x14] ss:$36 sps:$4 sm:$0xff]  }
 0x114   : > { %4125 = vmatprep.subr.bf16.mxu0 %v6706_v13  ;;  %4297 = vmatprep.subr.bf16.mxu1 %v6709_v15  ;;  %v6776_v13 = vld [vmem:[#allocation3 + $0x10] ss:$36 sps:$4 sm:$0xff]   ;;  %v6779_v15 = vld [vmem:[#allocation3 + $0x18] ss:$36 sps:$4 sm:$0xff]  }
 0x115   : > { %v7572_v7 = vsel %vm373_vm2, %v376_v41, %v381_v49  ;;  %v6788_v49 = vld [vmem:[#allocation3 + $0xa0] ss:$36 sps:$4 sm:$0xff]   ;;  %v6845_v3 = vld [vmem:[#allocation3 + $0x330] ss:$36 sps:$4 sm:$0xff]  }
 0x116   : > { %v6848_v6 = vld [vmem:[#allocation3 + $0x370] ss:$36 sps:$4 sm:$0xff]   ;;  %v6857_v41 = vld [vmem:[#allocation3 + $0x3c0] ss:$36 sps:$4 sm:$0xff]  }
 0x117   : > { %4126 = vmatpush1.bf16.msra.mxu0 %v6704_v16  ;;  %4298 = vmatpush1.bf16.msra.mxu1 %v6707_v17  ;;  %v6784_v16 = vld [vmem:[#allocation3 + $0x5c] ss:$36 sps:$4 sm:$0xff]   ;;  %v6787_v17 = vld [vmem:[#allocation3 + $0x64] ss:$36 sps:$4 sm:$0xff]  }
 0x118   : > { %4127 = vmatprep.subr.bf16.mxu0 %v6712_v18  ;;  %4299 = vmatprep.subr.bf16.mxu1 %v6715_v19  ;;  %v6782_v18 = vld [vmem:[#allocation3 + $0x58] ss:$36 sps:$4 sm:$0xff]   ;;  %v6785_v19 = vld [vmem:[#allocation3 + $0x60] ss:$36 sps:$4 sm:$0xff]  }
 0x11b   : > { %4128 = vmatpush1.bf16.msra.mxu0 %v6710_v20  ;;  %4300 = vmatpush1.bf16.msra.mxu1 %v6713_v21  ;;  %v6791_v20 = vld [vmem:[#allocation3 + $0xa8] ss:$36 sps:$4 sm:$0xff]  }
 0x11c   : > { %4129 = vmatprep.subr.bf16.mxu0 %v6718_v22  ;;  %4301 = vmatprep.subr.bf16.mxu1 %v6721_v23  ;;  %v6796_v21 = vld [vmem:[#allocation3 + $0xec] ss:$36 sps:$4 sm:$0xff]   ;;  %v6799_v22 = vld [vmem:[#allocation3 + $0xf4] ss:$36 sps:$4 sm:$0xff]  }
 0x11d   : > { %v6794_v23 = vld [vmem:[#allocation3 + $0xe8] ss:$36 sps:$4 sm:$0xff]  }
 0x11f   : > { %4130 = vmatpush1.bf16.msra.mxu0 %v6716_v24  ;;  %4302 = vmatpush1.bf16.msra.mxu1 %v6719_v25  ;;  %v6797_v24 = vld [vmem:[#allocation3 + $0xf0] ss:$36 sps:$4 sm:$0xff]  }
 0x120   : > { %4131 = vmatprep.subr.bf16.mxu0 %v6724_v26  ;;  %4303 = vmatprep.subr.bf16.mxu1 %v6727_v27  ;;  %v6802_v25 = vld [vmem:[#allocation3 + $0x134] ss:$36 sps:$4 sm:$0xff]   ;;  %v6805_v26 = vld [vmem:[#allocation3 + $0x13c] ss:$36 sps:$4 sm:$0xff]  }
 0x121   : > { %v6800_v27 = vld [vmem:[#allocation3 + $0x130] ss:$36 sps:$4 sm:$0xff]  }
 0x123   : > { %4132 = vmatpush1.bf16.msra.mxu0 %v6722_v29  ;;  %4304 = vmatpush1.bf16.msra.mxu1 %v6725_v31  ;;  %v6803_v29 = vld [vmem:[#allocation3 + $0x138] ss:$36 sps:$4 sm:$0xff]  }
 0x124   : > { %4133 = vmatprep.subr.bf16.mxu0 %v6730_v32  ;;  %4305 = vmatprep.subr.bf16.mxu1 %v6733_v35  ;;  %v6808_v31 = vld [vmem:[#allocation3 + $0x17c] ss:$36 sps:$4 sm:$0xff]   ;;  %v6811_v32 = vld [vmem:[#allocation3 + $0x184] ss:$36 sps:$4 sm:$0xff]  }
 0x125   : > { %v6806_v35 = vld [vmem:[#allocation3 + $0x178] ss:$36 sps:$4 sm:$0xff]  }
 0x127   : > { %4134 = vmatpush1.bf16.msra.mxu0 %v6728_v36  ;;  %4306 = vmatpush1.bf16.msra.mxu1 %v6731_v39  ;;  %v6809_v36 = vld [vmem:[#allocation3 + $0x180] ss:$36 sps:$4 sm:$0xff]  }
 0x128   : > { %4135 = vmatprep.subr.bf16.mxu0 %v6736_v40  ;;  %4307 = vmatprep.subr.bf16.mxu1 %v6739_v44  ;;  %v6814_v39 = vld [vmem:[#allocation3 + $0x1c4] ss:$36 sps:$4 sm:$0xff]   ;;  %v6817_v40 = vld [vmem:[#allocation3 + $0x1cc] ss:$36 sps:$4 sm:$0xff]  }
 0x129   : > { %v6812_v44 = vld [vmem:[#allocation3 + $0x1c0] ss:$36 sps:$4 sm:$0xff]  }
 0x12b   : > { %4136 = vmatpush1.bf16.msra.mxu0 %v6734_v45  ;;  %4308 = vmatpush1.bf16.msra.mxu1 %v6737_v46  ;;  %v6815_v45 = vld [vmem:[#allocation3 + $0x1c8] ss:$36 sps:$4 sm:$0xff]  }
 0x12c   : > { %4137 = vmatprep.subr.bf16.mxu0 %v6742_v47  ;;  %4309 = vmatprep.subr.bf16.mxu1 %v6745_v51  ;;  %v6820_v46 = vld [vmem:[#allocation3 + $0x20c] ss:$36 sps:$4 sm:$0xff]   ;;  %v6823_v47 = vld [vmem:[#allocation3 + $0x214] ss:$36 sps:$4 sm:$0xff]  }
 0x12d   : > { %v6818_v51 = vld [vmem:[#allocation3 + $0x208] ss:$36 sps:$4 sm:$0xff]  }
 0x12f   : > { %4138 = vmatpush1.bf16.msra.mxu0 %v6740_v52  ;;  %4310 = vmatpush1.bf16.msra.mxu1 %v6743_v53  ;;  %v6821_v52 = vld [vmem:[#allocation3 + $0x210] ss:$36 sps:$4 sm:$0xff]  }
 0x130   : > { %4139 = vmatprep.subr.bf16.mxu0 %v6748_v54  ;;  %4311 = vmatprep.subr.bf16.mxu1 %v6751_v55  ;;  %v6826_v53 = vld [vmem:[#allocation3 + $0x254] ss:$36 sps:$4 sm:$0xff]   ;;  %v6829_v54 = vld [vmem:[#allocation3 + $0x25c] ss:$36 sps:$4 sm:$0xff]  }
 0x131   : > { %v6824_v55 = vld [vmem:[#allocation3 + $0x250] ss:$36 sps:$4 sm:$0xff]  }
 0x133   : > { %4140 = vmatpush1.bf16.msra.mxu0 %v6746_v56  ;;  %4312 = vmatpush1.bf16.msra.mxu1 %v6749_v57  ;;  %v6827_v56 = vld [vmem:[#allocation3 + $0x258] ss:$36 sps:$4 sm:$0xff]  }
 0x134   : > { %4141 = vmatprep.subr.bf16.mxu0 %v6754_v58  ;;  %4313 = vmatprep.subr.bf16.mxu1 %v6757_v59  ;;  %v6832_v57 = vld [vmem:[#allocation3 + $0x29c] ss:$36 sps:$4 sm:$0xff]   ;;  %v6835_v58 = vld [vmem:[#allocation3 + $0x2a4] ss:$36 sps:$4 sm:$0xff]  }
 0x135   : > { %v6830_v59 = vld [vmem:[#allocation3 + $0x298] ss:$36 sps:$4 sm:$0xff]  }
 0x137   : > { %4142 = vmatpush1.bf16.msra.mxu0 %v6752_v60  ;;  %4314 = vmatpush1.bf16.msra.mxu1 %v6755_v61  ;;  %v6833_v60 = vld [vmem:[#allocation3 + $0x2a0] ss:$36 sps:$4 sm:$0xff]  }
 0x138   : > { %4143 = vmatprep.subr.bf16.mxu0 %v6760_v62  ;;  %4315 = vmatprep.subr.bf16.mxu1 %v6763_v63  ;;  %v6838_v61 = vld [vmem:[#allocation3 + $0x2e4] ss:$36 sps:$4 sm:$0xff]   ;;  %v6841_v62 = vld [vmem:[#allocation3 + $0x2ec] ss:$36 sps:$4 sm:$0xff]  }
 0x139   : > { %v6836_v63 = vld [vmem:[#allocation3 + $0x2e0] ss:$36 sps:$4 sm:$0xff]  }
 0x13b   : > { %4144 = vmatpush1.bf16.msra.mxu0 %v6758_v0  ;;  %4316 = vmatpush1.bf16.msra.mxu1 %v6761_v1  ;;  %v6839_v0 = vld [vmem:[#allocation3 + $0x2e8] ss:$36 sps:$4 sm:$0xff]  }
 0x13c   : > { %4145 = vmatprep.subr.bf16.mxu0 %v6766_v28  ;;  %4317 = vmatprep.subr.bf16.mxu1 %v6769_v2  ;;  %v6844_v1 = vld [vmem:[#allocation3 + $0x32c] ss:$36 sps:$4 sm:$0xff]   ;;  %v6847_v28 = vld [vmem:[#allocation3 + $0x334] ss:$36 sps:$4 sm:$0xff]  }
 0x13d   : > { %v6842_v2 = vld [vmem:[#allocation3 + $0x328] ss:$36 sps:$4 sm:$0xff]  }
 0x13f   : > { %4146 = vmatpush1.bf16.msra.mxu0 %v6764_v4  ;;  %4318 = vmatpush1.bf16.msra.mxu1 %v6767_v5  ;;  %v6850_v4 = vld [vmem:[#allocation3 + $0x374] ss:$36 sps:$4 sm:$0xff]   ;;  %v6853_v5 = vld [vmem:[#allocation3 + $0x37c] ss:$36 sps:$4 sm:$0xff]  }
 0x140   : > { %4147 = vmatprep.subr.bf16.mxu0 %v6772_v8  ;;  %4319 = vmatprep.subr.bf16.mxu1 %v6775_v10  ;;  %v6851_v8 = vld [vmem:[#allocation3 + $0x378] ss:$36 sps:$4 sm:$0xff]  }
 0x141   : > { %v6856_v10 = vld [vmem:[#allocation3 + $0x3bc] ss:$36 sps:$4 sm:$0xff]  }
 0x143   : > { %4148 = vmatpush1.bf16.msra.mxu0 %v6770_v30  ;;  %4320 = vmatpush1.bf16.msra.mxu1 %v6773_v34  ;;  %v6859_v30 = vld [vmem:[#allocation3 + $0x3c4] ss:$36 sps:$4 sm:$0xff]   ;;  %v6854_v34 = vld [vmem:[#allocation3 + $0x3b8] ss:$36 sps:$4 sm:$0xff]  }
 0x144   : > { %4332 = vmatprep.subr.bf16.mxu0 %v6778_v12  ;;  %4504 = vmatprep.subr.bf16.mxu1 %v6781_v14  ;;  %v6862_v12 = vld [vmem:[#allocation3 + $0x404] ss:$36 sps:$4 sm:$0xff]   ;;  %v6865_v14 = vld [vmem:[#allocation3 + $0x40c] ss:$36 sps:$4 sm:$0xff]  }
 0x146   : > { %4150 = vmatmul.mubr.bf16.vlgmr.msra.gmra.mrb[0].mxu0 %v7572_v7  ;;  %4322 = vmatmul.mubr.bf16.vlgmr.msra.gmra.mrb[0].mxu1 %v7572_v7 }
 0x147   : > { %4333 = vmatpush1.bf16.msra.mxu0 %v6776_v13  ;;  %4505 = vmatpush1.bf16.msra.mxu1 %v6779_v15  ;;  %v6860_v13 = vld [vmem:[#allocation3 + $0x400] ss:$36 sps:$4 sm:$0xff]   ;;  %v6863_v15 = vld [vmem:[#allocation3 + $0x408] ss:$36 sps:$4 sm:$0xff]  }
 0x148   : > { %4334 = vmatprep.subr.bf16.mxu0 %v6784_v16  ;;  %4506 = vmatprep.subr.bf16.mxu1 %v6787_v17  ;;  %v6868_v16 = vld [vmem:[#allocation3 + $0x44c] ss:$36 sps:$4 sm:$0xff]   ;;  %v6871_v17 = vld [vmem:[#allocation3 + $0x454] ss:$36 sps:$4 sm:$0xff]  }
 0x149   : > { %4364 = vmatprep.mubr.bf16.mxu0 %v7473_v50  ;;  %4536 = vmatprep.mubr.bf16.mxu1 %v7473_v50 }
 0x14b   : > { %4335 = vmatpush1.bf16.msra.mxu0 %v6782_v18  ;;  %4507 = vmatpush1.bf16.msra.mxu1 %v6785_v19  ;;  %v6866_v18 = vld [vmem:[#allocation3 + $0x448] ss:$36 sps:$4 sm:$0xff]   ;;  %v6869_v19 = vld [vmem:[#allocation3 + $0x450] ss:$36 sps:$4 sm:$0xff]  }
 0x14c   : > { %4336 = vmatprep.subr.bf16.mxu0 %v6790_v43  ;;  %4508 = vmatprep.subr.bf16.mxu1 %v6793_v42  ;;  %v6874_v43 = vld [vmem:[#allocation3 + $0x494] ss:$36 sps:$4 sm:$0xff]   ;;  %v6877_v42 = vld [vmem:[#allocation3 + $0x49c] ss:$36 sps:$4 sm:$0xff]  }
 0x14f   : > { %4337 = vmatpush1.bf16.msra.mxu0 %v6788_v49  ;;  %4509 = vmatpush1.bf16.msra.mxu1 %v6791_v20  ;;  %v6872_v49 = vld [vmem:[#allocation3 + $0x490] ss:$36 sps:$4 sm:$0xff]   ;;  %v6875_v20 = vld [vmem:[#allocation3 + $0x498] ss:$36 sps:$4 sm:$0xff]  }
 0x150   : > { %4338 = vmatprep.subr.bf16.mxu0 %v6796_v21  ;;  %4510 = vmatprep.subr.bf16.mxu1 %v6799_v22  ;;  %v6880_v21 = vld [vmem:[#allocation3 + $0x4dc] ss:$36 sps:$4 sm:$0xff]   ;;  %v6883_v22 = vld [vmem:[#allocation3 + $0x4e4] ss:$36 sps:$4 sm:$0xff]  }
 0x153   : > { %4339 = vmatpush1.bf16.msra.mxu0 %v6794_v23  ;;  %4511 = vmatpush1.bf16.msra.mxu1 %v6797_v24  ;;  %v6878_v23 = vld [vmem:[#allocation3 + $0x4d8] ss:$36 sps:$4 sm:$0xff]   ;;  %v6881_v24 = vld [vmem:[#allocation3 + $0x4e0] ss:$36 sps:$4 sm:$0xff]  }
 0x154   : > { %4340 = vmatprep.subr.bf16.mxu0 %v6802_v25  ;;  %4512 = vmatprep.subr.bf16.mxu1 %v6805_v26  ;;  %v6886_v25 = vld [vmem:[#allocation3 + $0x524] ss:$36 sps:$4 sm:$0xff]   ;;  %v6889_v26 = vld [vmem:[#allocation3 + $0x52c] ss:$36 sps:$4 sm:$0xff]  }
 0x157   : > { %4341 = vmatpush1.bf16.msra.mxu0 %v6800_v27  ;;  %4513 = vmatpush1.bf16.msra.mxu1 %v6803_v29  ;;  %v6884_v27 = vld [vmem:[#allocation3 + $0x520] ss:$36 sps:$4 sm:$0xff]   ;;  %v6887_v29 = vld [vmem:[#allocation3 + $0x528] ss:$36 sps:$4 sm:$0xff]  }
 0x158   : > { %4342 = vmatprep.subr.bf16.mxu0 %v6808_v31  ;;  %4514 = vmatprep.subr.bf16.mxu1 %v6811_v32  ;;  %v6892_v31 = vld [vmem:[#allocation3 + $0x56c] ss:$36 sps:$4 sm:$0xff]   ;;  %v6895_v32 = vld [vmem:[#allocation3 + $0x574] ss:$36 sps:$4 sm:$0xff]  }
 0x15b   : > { %4343 = vmatpush1.bf16.msra.mxu0 %v6806_v35  ;;  %4515 = vmatpush1.bf16.msra.mxu1 %v6809_v36  ;;  %v6890_v35 = vld [vmem:[#allocation3 + $0x568] ss:$36 sps:$4 sm:$0xff]   ;;  %v6893_v36 = vld [vmem:[#allocation3 + $0x570] ss:$36 sps:$4 sm:$0xff]  }
 0x15c   : > { %4344 = vmatprep.subr.bf16.mxu0 %v6814_v39  ;;  %4516 = vmatprep.subr.bf16.mxu1 %v6817_v40  ;;  %v6898_v39 = vld [vmem:[#allocation3 + $0x5b4] ss:$36 sps:$4 sm:$0xff]   ;;  %v6901_v40 = vld [vmem:[#allocation3 + $0x5bc] ss:$36 sps:$4 sm:$0xff]  }
 0x15f   : > { %4345 = vmatpush1.bf16.msra.mxu0 %v6812_v44  ;;  %4517 = vmatpush1.bf16.msra.mxu1 %v6815_v45  ;;  %v6896_v44 = vld [vmem:[#allocation3 + $0x5b0] ss:$36 sps:$4 sm:$0xff]   ;;  %v6899_v45 = vld [vmem:[#allocation3 + $0x5b8] ss:$36 sps:$4 sm:$0xff]  }
 0x160   : > { %4346 = vmatprep.subr.bf16.mxu0 %v6820_v46  ;;  %4518 = vmatprep.subr.bf16.mxu1 %v6823_v47  ;;  %v6904_v46 = vld [vmem:[#allocation3 + $0x5fc] ss:$36 sps:$4 sm:$0xff]   ;;  %v6907_v47 = vld [vmem:[#allocation3 + $0x604] ss:$36 sps:$4 sm:$0xff]  }
 0x163   : > { %4347 = vmatpush1.bf16.msra.mxu0 %v6818_v51  ;;  %4519 = vmatpush1.bf16.msra.mxu1 %v6821_v52  ;;  %v6902_v51 = vld [vmem:[#allocation3 + $0x5f8] ss:$36 sps:$4 sm:$0xff]   ;;  %v6905_v52 = vld [vmem:[#allocation3 + $0x600] ss:$36 sps:$4 sm:$0xff]  }
 0x164   : > { %4348 = vmatprep.subr.bf16.mxu0 %v6826_v53  ;;  %4520 = vmatprep.subr.bf16.mxu1 %v6829_v54  ;;  %v6910_v53 = vld [vmem:[#allocation3 + $0x644] ss:$36 sps:$4 sm:$0xff]   ;;  %v6913_v54 = vld [vmem:[#allocation3 + $0x64c] ss:$36 sps:$4 sm:$0xff]  }
 0x167   : > { %4349 = vmatpush1.bf16.msra.mxu0 %v6824_v55  ;;  %4521 = vmatpush1.bf16.msra.mxu1 %v6827_v56  ;;  %v6908_v55 = vld [vmem:[#allocation3 + $0x640] ss:$36 sps:$4 sm:$0xff]   ;;  %v6911_v56 = vld [vmem:[#allocation3 + $0x648] ss:$36 sps:$4 sm:$0xff]  }
 0x168   : > { %4350 = vmatprep.subr.bf16.mxu0 %v6832_v57  ;;  %4522 = vmatprep.subr.bf16.mxu1 %v6835_v58  ;;  %v6916_v57 = vld [vmem:[#allocation3 + $0x68c] ss:$36 sps:$4 sm:$0xff]   ;;  %v6919_v58 = vld [vmem:[#allocation3 + $0x694] ss:$36 sps:$4 sm:$0xff]  }
 0x16b   : > { %4351 = vmatpush1.bf16.msra.mxu0 %v6830_v59  ;;  %4523 = vmatpush1.bf16.msra.mxu1 %v6833_v60  ;;  %v6914_v59 = vld [vmem:[#allocation3 + $0x688] ss:$36 sps:$4 sm:$0xff]   ;;  %v6917_v60 = vld [vmem:[#allocation3 + $0x690] ss:$36 sps:$4 sm:$0xff]  }
 0x16c   : > { %4352 = vmatprep.subr.bf16.mxu0 %v6838_v61  ;;  %4524 = vmatprep.subr.bf16.mxu1 %v6841_v62  ;;  %v6922_v61 = vld [vmem:[#allocation3 + $0x6d4] ss:$36 sps:$4 sm:$0xff]   ;;  %v6925_v62 = vld [vmem:[#allocation3 + $0x6dc] ss:$36 sps:$4 sm:$0xff]  }
 0x16f   : > { %4353 = vmatpush1.bf16.msra.mxu0 %v6836_v63  ;;  %4525 = vmatpush1.bf16.msra.mxu1 %v6839_v0  ;;  %v6920_v63 = vld [vmem:[#allocation3 + $0x6d0] ss:$36 sps:$4 sm:$0xff]   ;;  %v6923_v0 = vld [vmem:[#allocation3 + $0x6d8] ss:$36 sps:$4 sm:$0xff]  }
 0x170   : > { %4354 = vmatprep.subr.bf16.mxu0 %v6844_v1  ;;  %4526 = vmatprep.subr.bf16.mxu1 %v6847_v28  ;;  %v6928_v1 = vld [vmem:[#allocation3 + $0x71c] ss:$36 sps:$4 sm:$0xff]   ;;  %v6931_v28 = vld [vmem:[#allocation3 + $0x724] ss:$36 sps:$4 sm:$0xff]  }
 0x173   : > { %4355 = vmatpush1.bf16.msra.mxu0 %v6842_v2  ;;  %4527 = vmatpush1.bf16.msra.mxu1 %v6845_v3  ;;  %v6926_v2 = vld [vmem:[#allocation3 + $0x718] ss:$36 sps:$4 sm:$0xff]   ;;  %v6929_v3 = vld [vmem:[#allocation3 + $0x720] ss:$36 sps:$4 sm:$0xff]  }
 0x174   : > { %4356 = vmatprep.subr.bf16.mxu0 %v6850_v4  ;;  %4528 = vmatprep.subr.bf16.mxu1 %v6853_v5  ;;  %v6934_v4 = vld [vmem:[#allocation3 + $0x764] ss:$36 sps:$4 sm:$0xff]   ;;  %v6937_v5 = vld [vmem:[#allocation3 + $0x76c] ss:$36 sps:$4 sm:$0xff]  }
 0x177   : > { %4357 = vmatpush1.bf16.msra.mxu0 %v6848_v6  ;;  %4529 = vmatpush1.bf16.msra.mxu1 %v6851_v8  ;;  %v6932_v6 = vld [vmem:[#allocation3 + $0x760] ss:$36 sps:$4 sm:$0xff]   ;;  %v6935_v8 = vld [vmem:[#allocation3 + $0x768] ss:$36 sps:$4 sm:$0xff]  }
 0x178   : > { %4358 = vmatprep.subr.bf16.mxu0 %v6856_v10  ;;  %4530 = vmatprep.subr.bf16.mxu1 %v6859_v30  ;;  %v6940_v10 = vld [vmem:[#allocation3 + $0x7ac] ss:$36 sps:$4 sm:$0xff]   ;;  %v6943_v30 = vld [vmem:[#allocation3 + $0x7b4] ss:$36 sps:$4 sm:$0xff]  }
 0x17b   : > { %4359 = vmatpush1.bf16.msra.mxu0 %v6854_v34  ;;  %4531 = vmatpush1.bf16.msra.mxu1 %v6857_v41  ;;  %v6938_v34 = vld [vmem:[#allocation3 + $0x7a8] ss:$36 sps:$4 sm:$0xff]   ;;  %v6941_v41 = vld [vmem:[#allocation3 + $0x7b0] ss:$36 sps:$4 sm:$0xff]  }
 0x17c   : > { %4360 = vmatprep.subr.bf16.mxu0 %v6862_v12  ;;  %4532 = vmatprep.subr.bf16.mxu1 %v6865_v14  ;;  %v6946_v12 = vld [vmem:[#allocation3 + $0x7f4] ss:$36 sps:$4 sm:$0xff]   ;;  %v6949_v14 = vld [vmem:[#allocation3 + $0x7fc] ss:$36 sps:$4 sm:$0xff]  }
 0x17f   : > { %4361 = vmatpush1.bf16.msra.mxu0 %v6860_v13  ;;  %4533 = vmatpush1.bf16.msra.mxu1 %v6863_v15  ;;  %v6944_v13 = vld [vmem:[#allocation3 + $0x7f0] ss:$36 sps:$4 sm:$0xff]   ;;  %v6947_v15 = vld [vmem:[#allocation3 + $0x7f8] ss:$36 sps:$4 sm:$0xff]  }
 0x180   : > { %4362 = vmatprep.subr.bf16.mxu0 %v6868_v16  ;;  %4534 = vmatprep.subr.bf16.mxu1 %v6871_v17  ;;  %v6952_v16 = vld [vmem:[#allocation3 + $0x83c] ss:$36 sps:$4 sm:$0xff]   ;;  %v6955_v17 = vld [vmem:[#allocation3 + $0x844] ss:$36 sps:$4 sm:$0xff]  }
 0x183   : > { %4363 = vmatpush1.bf16.msra.mxu0 %v6866_v18  ;;  %4535 = vmatpush1.bf16.msra.mxu1 %v6869_v19  ;;  %v6950_v18 = vld [vmem:[#allocation3 + $0x838] ss:$36 sps:$4 sm:$0xff]   ;;  %v6953_v19 = vld [vmem:[#allocation3 + $0x840] ss:$36 sps:$4 sm:$0xff]  }
 0x184   : > { %4375 = vmatprep.subr.bf16.mxu0 %v6874_v43  ;;  %4547 = vmatprep.subr.bf16.mxu1 %v6877_v42  ;;  %v6958_v43 = vld [vmem:[#allocation3 + $0x884] ss:$36 sps:$4 sm:$0xff]   ;;  %v6961_v42 = vld [vmem:[#allocation3 + $0x88c] ss:$36 sps:$4 sm:$0xff]  }
 0x186   : > { %4365 = vmatmul.mubr.bf16.vlgmr.msra.gmra.mrb[4].mxu0 %v7479_v9  ;;  %4537 = vmatmul.mubr.bf16.vlgmr.msra.gmra.mrb[4].mxu1 %v7479_v9 }
 0x187   : > { %4376 = vmatpush1.bf16.msra.mxu0 %v6872_v49  ;;  %4548 = vmatpush1.bf16.msra.mxu1 %v6875_v20  ;;  %v6956_v49 = vld [vmem:[#allocation3 + $0x880] ss:$36 sps:$4 sm:$0xff]   ;;  %v6959_v20 = vld [vmem:[#allocation3 + $0x888] ss:$36 sps:$4 sm:$0xff]  }
 0x188   : > { %4377 = vmatprep.subr.bf16.mxu0 %v6880_v21  ;;  %4549 = vmatprep.subr.bf16.mxu1 %v6883_v22  ;;  %v6964_v21 = vld [vmem:[#allocation3 + $0x8cc] ss:$36 sps:$4 sm:$0xff]   ;;  %v6967_v22 = vld [vmem:[#allocation3 + $0x8d4] ss:$36 sps:$4 sm:$0xff]  }
 0x189   : > { %4407 = vmatprep.mubr.bf16.mxu0 %v7503_v48  ;;  %4579 = vmatprep.mubr.bf16.mxu1 %v7503_v48 }
 0x18b   : > { %4378 = vmatpush1.bf16.msra.mxu0 %v6878_v23  ;;  %4550 = vmatpush1.bf16.msra.mxu1 %v6881_v24  ;;  %v6962_v23 = vld [vmem:[#allocation3 + $0x8c8] ss:$36 sps:$4 sm:$0xff]   ;;  %v6965_v24 = vld [vmem:[#allocation3 + $0x8d0] ss:$36 sps:$4 sm:$0xff]  }
 0x18c   : > { %4379 = vmatprep.subr.bf16.mxu0 %v6886_v25  ;;  %4551 = vmatprep.subr.bf16.mxu1 %v6889_v26  ;;  %v6970_v25 = vld [vmem:[#allocation3 + $0x914] ss:$36 sps:$4 sm:$0xff]   ;;  %v6973_v26 = vld [vmem:[#allocation3 + $0x91c] ss:$36 sps:$4 sm:$0xff]  }
 0x18f   : > { %4380 = vmatpush1.bf16.msra.mxu0 %v6884_v27  ;;  %4552 = vmatpush1.bf16.msra.mxu1 %v6887_v29  ;;  %v6968_v27 = vld [vmem:[#allocation3 + $0x910] ss:$36 sps:$4 sm:$0xff]   ;;  %v6971_v29 = vld [vmem:[#allocation3 + $0x918] ss:$36 sps:$4 sm:$0xff]  }
 0x190   : > { %4381 = vmatprep.subr.bf16.mxu0 %v6892_v31  ;;  %4553 = vmatprep.subr.bf16.mxu1 %v6895_v32  ;;  %v6976_v31 = vld [vmem:[#allocation3 + $0x95c] ss:$36 sps:$4 sm:$0xff]   ;;  %v6979_v32 = vld [vmem:[#allocation3 + $0x964] ss:$36 sps:$4 sm:$0xff]  }
 0x193   : > { %4382 = vmatpush1.bf16.msra.mxu0 %v6890_v35  ;;  %4554 = vmatpush1.bf16.msra.mxu1 %v6893_v36  ;;  %v6974_v35 = vld [vmem:[#allocation3 + $0x958] ss:$36 sps:$4 sm:$0xff]   ;;  %v6977_v36 = vld [vmem:[#allocation3 + $0x960] ss:$36 sps:$4 sm:$0xff]  }
 0x194   : > { %4383 = vmatprep.subr.bf16.mxu0 %v6898_v39  ;;  %4555 = vmatprep.subr.bf16.mxu1 %v6901_v40  ;;  %v6982_v39 = vld [vmem:[#allocation3 + $0x9a4] ss:$36 sps:$4 sm:$0xff]   ;;  %v6985_v40 = vld [vmem:[#allocation3 + $0x9ac] ss:$36 sps:$4 sm:$0xff]  }
 0x197   : > { %4384 = vmatpush1.bf16.msra.mxu0 %v6896_v44  ;;  %4556 = vmatpush1.bf16.msra.mxu1 %v6899_v45  ;;  %v6980_v44 = vld [vmem:[#allocation3 + $0x9a0] ss:$36 sps:$4 sm:$0xff]   ;;  %v6983_v45 = vld [vmem:[#allocation3 + $0x9a8] ss:$36 sps:$4 sm:$0xff]  }
 0x198   : > { %4385 = vmatprep.subr.bf16.mxu0 %v6904_v46  ;;  %4557 = vmatprep.subr.bf16.mxu1 %v6907_v47  ;;  %v6988_v46 = vld [vmem:[#allocation3 + $0x9ec] ss:$36 sps:$4 sm:$0xff]   ;;  %v6991_v47 = vld [vmem:[#allocation3 + $0x9f4] ss:$36 sps:$4 sm:$0xff]  }
 0x19b   : > { %4386 = vmatpush1.bf16.msra.mxu0 %v6902_v51  ;;  %4558 = vmatpush1.bf16.msra.mxu1 %v6905_v52  ;;  %v6986_v51 = vld [vmem:[#allocation3 + $0x9e8] ss:$36 sps:$4 sm:$0xff]   ;;  %v6989_v52 = vld [vmem:[#allocation3 + $0x9f0] ss:$36 sps:$4 sm:$0xff]  }
 0x19c   : > { %4387 = vmatprep.subr.bf16.mxu0 %v6910_v53  ;;  %4559 = vmatprep.subr.bf16.mxu1 %v6913_v54  ;;  %v6994_v53 = vld [vmem:[#allocation3 + $0xa34] ss:$36 sps:$4 sm:$0xff]   ;;  %v6997_v54 = vld [vmem:[#allocation3 + $0xa3c] ss:$36 sps:$4 sm:$0xff]  }
 0x19f   : > { %4388 = vmatpush1.bf16.msra.mxu0 %v6908_v55  ;;  %4560 = vmatpush1.bf16.msra.mxu1 %v6911_v56  ;;  %v6992_v55 = vld [vmem:[#allocation3 + $0xa30] ss:$36 sps:$4 sm:$0xff]   ;;  %v6995_v56 = vld [vmem:[#allocation3 + $0xa38] ss:$36 sps:$4 sm:$0xff]  }
 0x1a0   : > { %4389 = vmatprep.subr.bf16.mxu0 %v6916_v57  ;;  %4561 = vmatprep.subr.bf16.mxu1 %v6919_v58  ;;  %v7000_v57 = vld [vmem:[#allocation3 + $0xa7c] ss:$36 sps:$4 sm:$0xff]   ;;  %v7003_v58 = vld [vmem:[#allocation3 + $0xa84] ss:$36 sps:$4 sm:$0xff]  }
 0x1a3   : > { %4390 = vmatpush1.bf16.msra.mxu0 %v6914_v59  ;;  %4562 = vmatpush1.bf16.msra.mxu1 %v6917_v60  ;;  %v6998_v59 = vld [vmem:[#allocation3 + $0xa78] ss:$36 sps:$4 sm:$0xff]   ;;  %v7001_v60 = vld [vmem:[#allocation3 + $0xa80] ss:$36 sps:$4 sm:$0xff]  }
 0x1a4   : > { %4391 = vmatprep.subr.bf16.mxu0 %v6922_v61  ;;  %4563 = vmatprep.subr.bf16.mxu1 %v6925_v62  ;;  %v7006_v61 = vld [vmem:[#allocation3 + $0xac4] ss:$36 sps:$4 sm:$0xff]   ;;  %v7009_v62 = vld [vmem:[#allocation3 + $0xacc] ss:$36 sps:$4 sm:$0xff]  }
 0x1a7   : > { %4392 = vmatpush1.bf16.msra.mxu0 %v6920_v63  ;;  %4564 = vmatpush1.bf16.msra.mxu1 %v6923_v0  ;;  %v7004_v63 = vld [vmem:[#allocation3 + $0xac0] ss:$36 sps:$4 sm:$0xff]   ;;  %v7007_v0 = vld [vmem:[#allocation3 + $0xac8] ss:$36 sps:$4 sm:$0xff]  }
 0x1a8   : > { %4393 = vmatprep.subr.bf16.mxu0 %v6928_v1  ;;  %4565 = vmatprep.subr.bf16.mxu1 %v6931_v28  ;;  %v7012_v1 = vld [vmem:[#allocation3 + $0xb0c] ss:$36 sps:$4 sm:$0xff]   ;;  %v7015_v28 = vld [vmem:[#allocation3 + $0xb14] ss:$36 sps:$4 sm:$0xff]  }
 0x1ab   : > { %4394 = vmatpush1.bf16.msra.mxu0 %v6926_v2  ;;  %4566 = vmatpush1.bf16.msra.mxu1 %v6929_v3  ;;  %v7010_v2 = vld [vmem:[#allocation3 + $0xb08] ss:$36 sps:$4 sm:$0xff]   ;;  %v7013_v3 = vld [vmem:[#allocation3 + $0xb10] ss:$36 sps:$4 sm:$0xff]  }
 0x1ac   : > { %4395 = vmatprep.subr.bf16.mxu0 %v6934_v4  ;;  %4567 = vmatprep.subr.bf16.mxu1 %v6937_v5  ;;  %v7018_v4 = vld [vmem:[#allocation3 + $0xb54] ss:$36 sps:$4 sm:$0xff]   ;;  %v7021_v5 = vld [vmem:[#allocation3 + $0xb5c] ss:$36 sps:$4 sm:$0xff]  }
 0x1af   : > { %4396 = vmatpush1.bf16.msra.mxu0 %v6932_v6  ;;  %4568 = vmatpush1.bf16.msra.mxu1 %v6935_v8  ;;  %v7016_v6 = vld [vmem:[#allocation3 + $0xb50] ss:$36 sps:$4 sm:$0xff]   ;;  %v7019_v8 = vld [vmem:[#allocation3 + $0xb58] ss:$36 sps:$4 sm:$0xff]  }
 0x1b0   : > { %4397 = vmatprep.subr.bf16.mxu0 %v6940_v10  ;;  %4569 = vmatprep.subr.bf16.mxu1 %v6943_v30  ;;  %v7024_v10 = vld [vmem:[#allocation3 + $0xb9c] ss:$36 sps:$4 sm:$0xff]   ;;  %v7027_v30 = vld [vmem:[#allocation3 + $0xba4] ss:$36 sps:$4 sm:$0xff]  }
 0x1b3   : > { %4398 = vmatpush1.bf16.msra.mxu0 %v6938_v34  ;;  %4570 = vmatpush1.bf16.msra.mxu1 %v6941_v41  ;;  %v7022_v34 = vld [vmem:[#allocation3 + $0xb98] ss:$36 sps:$4 sm:$0xff]   ;;  %v7025_v41 = vld [vmem:[#allocation3 + $0xba0] ss:$36 sps:$4 sm:$0xff]  }
 0x1b4   : > { %4399 = vmatprep.subr.bf16.mxu0 %v6946_v12  ;;  %4571 = vmatprep.subr.bf16.mxu1 %v6949_v14  ;;  %v7030_v12 = vld [vmem:[#allocation3 + $0xbe4] ss:$36 sps:$4 sm:$0xff]   ;;  %v7033_v14 = vld [vmem:[#allocation3 + $0xbec] ss:$36 sps:$4 sm:$0xff]  }
 0x1b7   : > { %4400 = vmatpush1.bf16.msra.mxu0 %v6944_v13  ;;  %4572 = vmatpush1.bf16.msra.mxu1 %v6947_v15  ;;  %v7028_v13 = vld [vmem:[#allocation3 + $0xbe0] ss:$36 sps:$4 sm:$0xff]   ;;  %v7031_v15 = vld [vmem:[#allocation3 + $0xbe8] ss:$36 sps:$4 sm:$0xff]  }
 0x1b8   : > { %4401 = vmatprep.subr.bf16.mxu0 %v6952_v16  ;;  %4573 = vmatprep.subr.bf16.mxu1 %v6955_v17  ;;  %v7036_v16 = vld [vmem:[#allocation3 + $0xc2c] ss:$36 sps:$4 sm:$0xff]   ;;  %v7039_v17 = vld [vmem:[#allocation3 + $0xc34] ss:$36 sps:$4 sm:$0xff]  }
 0x1bb   : > { %4402 = vmatpush1.bf16.msra.mxu0 %v6950_v18  ;;  %4574 = vmatpush1.bf16.msra.mxu1 %v6953_v19  ;;  %v7034_v18 = vld [vmem:[#allocation3 + $0xc28] ss:$36 sps:$4 sm:$0xff]   ;;  %v7037_v19 = vld [vmem:[#allocation3 + $0xc30] ss:$36 sps:$4 sm:$0xff]  }
 0x1bc   : > { %4403 = vmatprep.subr.bf16.mxu0 %v6958_v43  ;;  %4575 = vmatprep.subr.bf16.mxu1 %v6961_v42  ;;  %v7042_v43 = vld [vmem:[#allocation3 + $0xc74] ss:$36 sps:$4 sm:$0xff]   ;;  %v7045_v42 = vld [vmem:[#allocation3 + $0xc7c] ss:$36 sps:$4 sm:$0xff]  }
 0x1bf   : > { %4404 = vmatpush1.bf16.msra.mxu0 %v6956_v49  ;;  %4576 = vmatpush1.bf16.msra.mxu1 %v6959_v20  ;;  %v7040_v49 = vld [vmem:[#allocation3 + $0xc70] ss:$36 sps:$4 sm:$0xff]   ;;  %v7043_v20 = vld [vmem:[#allocation3 + $0xc78] ss:$36 sps:$4 sm:$0xff]  }
 0x1c0   : > { %4405 = vmatprep.subr.bf16.mxu0 %v6964_v21  ;;  %4577 = vmatprep.subr.bf16.mxu1 %v6967_v22  ;;  %v7048_v21 = vld [vmem:[#allocation3 + $0xcbc] ss:$36 sps:$4 sm:$0xff]   ;;  %v7051_v22 = vld [vmem:[#allocation3 + $0xcc4] ss:$36 sps:$4 sm:$0xff]  }
 0x1c3   : > { %4406 = vmatpush1.bf16.msra.mxu0 %v6962_v23  ;;  %4578 = vmatpush1.bf16.msra.mxu1 %v6965_v24  ;;  %v7046_v23 = vld [vmem:[#allocation3 + $0xcb8] ss:$36 sps:$4 sm:$0xff]   ;;  %v7049_v24 = vld [vmem:[#allocation3 + $0xcc0] ss:$36 sps:$4 sm:$0xff]  }
 0x1c4   : > { %4418 = vmatprep.subr.bf16.mxu0 %v6970_v25  ;;  %4590 = vmatprep.subr.bf16.mxu1 %v6973_v26  ;;  %v7054_v25 = vld [vmem:[#allocation3 + $0xd04] ss:$36 sps:$4 sm:$0xff]   ;;  %v7057_v26 = vld [vmem:[#allocation3 + $0xd0c] ss:$36 sps:$4 sm:$0xff]  }
 0x1c6   : > { %4408 = vmatmul.mubr.bf16.vlgmr.msra.gmra.mrb[4].mxu0 %v7528_v38  ;;  %4580 = vmatmul.mubr.bf16.vlgmr.msra.gmra.mrb[4].mxu1 %v7528_v38 }
 0x1c7   : > { %4419 = vmatpush1.bf16.msra.mxu0 %v6968_v27  ;;  %4591 = vmatpush1.bf16.msra.mxu1 %v6971_v29  ;;  %v7052_v27 = vld [vmem:[#allocation3 + $0xd00] ss:$36 sps:$4 sm:$0xff]   ;;  %v7055_v29 = vld [vmem:[#allocation3 + $0xd08] ss:$36 sps:$4 sm:$0xff]  }
 0x1c8   : > { %4420 = vmatprep.subr.bf16.mxu0 %v6976_v31  ;;  %4592 = vmatprep.subr.bf16.mxu1 %v6979_v32  ;;  %v7060_v31 = vld [vmem:[#allocation3 + $0xd4c] ss:$36 sps:$4 sm:$0xff]   ;;  %v7063_v32 = vld [vmem:[#allocation3 + $0xd54] ss:$36 sps:$4 sm:$0xff]  }
 0x1c9   : > { %4450 = vmatprep.mubr.bf16.mxu0 %v7537_v37  ;;  %4622 = vmatprep.mubr.bf16.mxu1 %v7537_v37 }
 0x1cb   : > { %4421 = vmatpush1.bf16.msra.mxu0 %v6974_v35  ;;  %4593 = vmatpush1.bf16.msra.mxu1 %v6977_v36  ;;  %v7058_v35 = vld [vmem:[#allocation3 + $0xd48] ss:$36 sps:$4 sm:$0xff]   ;;  %v7061_v36 = vld [vmem:[#allocation3 + $0xd50] ss:$36 sps:$4 sm:$0xff]  }
 0x1cc   : > { %4422 = vmatprep.subr.bf16.mxu0 %v6982_v39  ;;  %4594 = vmatprep.subr.bf16.mxu1 %v6985_v40  ;;  %v7066_v39 = vld [vmem:[#allocation3 + $0xd94] ss:$36 sps:$4 sm:$0xff]   ;;  %v7069_v40 = vld [vmem:[#allocation3 + $0xd9c] ss:$36 sps:$4 sm:$0xff]  }
 0x1cf   : > { %4423 = vmatpush1.bf16.msra.mxu0 %v6980_v44  ;;  %4595 = vmatpush1.bf16.msra.mxu1 %v6983_v45  ;;  %v7064_v44 = vld [vmem:[#allocation3 + $0xd90] ss:$36 sps:$4 sm:$0xff]   ;;  %v7067_v45 = vld [vmem:[#allocation3 + $0xd98] ss:$36 sps:$4 sm:$0xff]  }
 0x1d0   : > { %4424 = vmatprep.subr.bf16.mxu0 %v6988_v46  ;;  %4596 = vmatprep.subr.bf16.mxu1 %v6991_v47  ;;  %v7072_v46 = vld [vmem:[#allocation3 + $0xddc] ss:$36 sps:$4 sm:$0xff]   ;;  %v7075_v47 = vld [vmem:[#allocation3 + $0xde4] ss:$36 sps:$4 sm:$0xff]  }
 0x1d3   : > { %4425 = vmatpush1.bf16.msra.mxu0 %v6986_v51  ;;  %4597 = vmatpush1.bf16.msra.mxu1 %v6989_v52  ;;  %v7070_v51 = vld [vmem:[#allocation3 + $0xdd8] ss:$36 sps:$4 sm:$0xff]   ;;  %v7073_v52 = vld [vmem:[#allocation3 + $0xde0] ss:$36 sps:$4 sm:$0xff]  }
 0x1d4   : > { %4426 = vmatprep.subr.bf16.mxu0 %v6994_v53  ;;  %4598 = vmatprep.subr.bf16.mxu1 %v6997_v54  ;;  %v7078_v53 = vld [vmem:[#allocation3 + $0xe24] ss:$36 sps:$4 sm:$0xff]   ;;  %v7081_v54 = vld [vmem:[#allocation3 + $0xe2c] ss:$36 sps:$4 sm:$0xff]  }
 0x1d7   : > { %4427 = vmatpush1.bf16.msra.mxu0 %v6992_v55  ;;  %4599 = vmatpush1.bf16.msra.mxu1 %v6995_v56  ;;  %v7076_v55 = vld [vmem:[#allocation3 + $0xe20] ss:$36 sps:$4 sm:$0xff]   ;;  %v7079_v56 = vld [vmem:[#allocation3 + $0xe28] ss:$36 sps:$4 sm:$0xff]  }
 0x1d8   : > { %4428 = vmatprep.subr.bf16.mxu0 %v7000_v57  ;;  %4600 = vmatprep.subr.bf16.mxu1 %v7003_v58  ;;  %v7084_v57 = vld [vmem:[#allocation3 + $0xe6c] ss:$36 sps:$4 sm:$0xff]   ;;  %v7087_v58 = vld [vmem:[#allocation3 + $0xe74] ss:$36 sps:$4 sm:$0xff]  }
 0x1db   : > { %4429 = vmatpush1.bf16.msra.mxu0 %v6998_v59  ;;  %4601 = vmatpush1.bf16.msra.mxu1 %v7001_v60  ;;  %v7082_v59 = vld [vmem:[#allocation3 + $0xe68] ss:$36 sps:$4 sm:$0xff]   ;;  %v7085_v60 = vld [vmem:[#allocation3 + $0xe70] ss:$36 sps:$4 sm:$0xff]  }
 0x1dc   : > { %4430 = vmatprep.subr.bf16.mxu0 %v7006_v61  ;;  %4602 = vmatprep.subr.bf16.mxu1 %v7009_v62  ;;  %v7090_v61 = vld [vmem:[#allocation3 + $0xeb4] ss:$36 sps:$4 sm:$0xff]   ;;  %v7093_v62 = vld [vmem:[#allocation3 + $0xebc] ss:$36 sps:$4 sm:$0xff]  }
 0x1df   : > { %4431 = vmatpush1.bf16.msra.mxu0 %v7004_v63  ;;  %4603 = vmatpush1.bf16.msra.mxu1 %v7007_v0  ;;  %v7088_v63 = vld [vmem:[#allocation3 + $0xeb0] ss:$36 sps:$4 sm:$0xff]   ;;  %v7091_v0 = vld [vmem:[#allocation3 + $0xeb8] ss:$36 sps:$4 sm:$0xff]  }
 0x1e0   : > { %4432 = vmatprep.subr.bf16.mxu0 %v7012_v1  ;;  %4604 = vmatprep.subr.bf16.mxu1 %v7015_v28  ;;  %v7096_v1 = vld [vmem:[#allocation3 + $0xefc] ss:$36 sps:$4 sm:$0xff]   ;;  %v7099_v28 = vld [vmem:[#allocation3 + $0xf04] ss:$36 sps:$4 sm:$0xff]  }
 0x1e3   : > { %4433 = vmatpush1.bf16.msra.mxu0 %v7010_v2  ;;  %4605 = vmatpush1.bf16.msra.mxu1 %v7013_v3  ;;  %v7094_v2 = vld [vmem:[#allocation3 + $0xef8] ss:$36 sps:$4 sm:$0xff]   ;;  %v7097_v3 = vld [vmem:[#allocation3 + $0xf00] ss:$36 sps:$4 sm:$0xff]  }
 0x1e4   : > { %4434 = vmatprep.subr.bf16.mxu0 %v7018_v4  ;;  %4606 = vmatprep.subr.bf16.mxu1 %v7021_v5  ;;  %v7102_v4 = vld [vmem:[#allocation3 + $0xf44] ss:$36 sps:$4 sm:$0xff]   ;;  %v7105_v5 = vld [vmem:[#allocation3 + $0xf4c] ss:$36 sps:$4 sm:$0xff]  }
 0x1e7   : > { %4435 = vmatpush1.bf16.msra.mxu0 %v7016_v6  ;;  %4607 = vmatpush1.bf16.msra.mxu1 %v7019_v8 }
 0x1e8   : > { %4436 = vmatprep.subr.bf16.mxu0 %v7024_v10  ;;  %4608 = vmatprep.subr.bf16.mxu1 %v7027_v30 }
 0x1eb   : > { %4437 = vmatpush1.bf16.msra.mxu0 %v7022_v34  ;;  %4609 = vmatpush1.bf16.msra.mxu1 %v7025_v41 }
 0x1ec   : > { %4438 = vmatprep.subr.bf16.mxu0 %v7030_v12  ;;  %4610 = vmatprep.subr.bf16.mxu1 %v7033_v14  ;;  %v7100_v12 = vld [vmem:[#allocation3 + $0xf40] ss:$36 sps:$4 sm:$0xff]   ;;  %v7103_v14 = vld [vmem:[#allocation3 + $0xf48] ss:$36 sps:$4 sm:$0xff]  }
 0x1ef   : > { %4439 = vmatpush1.bf16.msra.mxu0 %v7028_v13  ;;  %4611 = vmatpush1.bf16.msra.mxu1 %v7031_v15 }
 0x1f0   : > { %4440 = vmatprep.subr.bf16.mxu0 %v7036_v16  ;;  %4612 = vmatprep.subr.bf16.mxu1 %v7039_v17  ;;  %v7108_v16 = vld [vmem:[#allocation3 + $0xf8c] ss:$36 sps:$4 sm:$0xff]   ;;  %v7111_v17 = vld [vmem:[#allocation3 + $0xf94] ss:$36 sps:$4 sm:$0xff]  }
 0x1f3   : > { %4441 = vmatpush1.bf16.msra.mxu0 %v7034_v18  ;;  %4613 = vmatpush1.bf16.msra.mxu1 %v7037_v19  ;;  %v7106_v18 = vld [vmem:[#allocation3 + $0xf88] ss:$36 sps:$4 sm:$0xff]   ;;  %v7109_v19 = vld [vmem:[#allocation3 + $0xf90] ss:$36 sps:$4 sm:$0xff]  }
 0x1f4   : > { %4442 = vmatprep.subr.bf16.mxu0 %v7042_v43  ;;  %4614 = vmatprep.subr.bf16.mxu1 %v7045_v42  ;;  %v7114_v43 = vld [vmem:[#allocation3 + $0xfd4] ss:$36 sps:$4 sm:$0xff]   ;;  %v7117_v42 = vld [vmem:[#allocation3 + $0xfdc] ss:$36 sps:$4 sm:$0xff]  }
 0x1f7   : > { %4443 = vmatpush1.bf16.msra.mxu0 %v7040_v49  ;;  %4615 = vmatpush1.bf16.msra.mxu1 %v7043_v20  ;;  %v7112_v49 = vld [vmem:[#allocation3 + $0xfd0] ss:$36 sps:$4 sm:$0xff]   ;;  %v7115_v20 = vld [vmem:[#allocation3 + $0xfd8] ss:$36 sps:$4 sm:$0xff]  }
 0x1f8   : > { %4444 = vmatprep.subr.bf16.mxu0 %v7048_v21  ;;  %4616 = vmatprep.subr.bf16.mxu1 %v7051_v22  ;;  %v7120_v21 = vld [vmem:[#allocation3 + $0x101c] ss:$36 sps:$4 sm:$0xff]   ;;  %v7123_v22 = vld [vmem:[#allocation3 + $0x1024] ss:$36 sps:$4 sm:$0xff]  }
 0x1fb   : > { %4445 = vmatpush1.bf16.msra.mxu0 %v7046_v23  ;;  %4617 = vmatpush1.bf16.msra.mxu1 %v7049_v24  ;;  %v7118_v23 = vld [vmem:[#allocation3 + $0x1018] ss:$36 sps:$4 sm:$0xff]   ;;  %v7121_v24 = vld [vmem:[#allocation3 + $0x1020] ss:$36 sps:$4 sm:$0xff]  }
 0x1fc   : > { %4446 = vmatprep.subr.bf16.mxu0 %v7054_v25  ;;  %4618 = vmatprep.subr.bf16.mxu1 %v7057_v26  ;;  %v7126_v25 = vld [vmem:[#allocation3 + $0x1064] ss:$36 sps:$4 sm:$0xff]   ;;  %v7129_v26 = vld [vmem:[#allocation3 + $0x106c] ss:$36 sps:$4 sm:$0xff]  }
 0x1ff   : > { %4447 = vmatpush1.bf16.msra.mxu0 %v7052_v27  ;;  %4619 = vmatpush1.bf16.msra.mxu1 %v7055_v29  ;;  %v7124_v27 = vld [vmem:[#allocation3 + $0x1060] ss:$36 sps:$4 sm:$0xff]   ;;  %v7127_v29 = vld [vmem:[#allocation3 + $0x1068] ss:$36 sps:$4 sm:$0xff]  }
 0x200   : > { %4448 = vmatprep.subr.bf16.mxu0 %v7060_v31  ;;  %4620 = vmatprep.subr.bf16.mxu1 %v7063_v32  ;;  %v7132_v31 = vld [vmem:[#allocation3 + $0x10ac] ss:$36 sps:$4 sm:$0xff]   ;;  %v7135_v32 = vld [vmem:[#allocation3 + $0x10b4] ss:$36 sps:$4 sm:$0xff]  }
 0x203   : > { %4449 = vmatpush1.bf16.msra.mxu0 %v7058_v35  ;;  %4621 = vmatpush1.bf16.msra.mxu1 %v7061_v36  ;;  %v7130_v35 = vld [vmem:[#allocation3 + $0x10a8] ss:$36 sps:$4 sm:$0xff]   ;;  %v7133_v36 = vld [vmem:[#allocation3 + $0x10b0] ss:$36 sps:$4 sm:$0xff]  }
 0x204   : > { %4461 = vmatprep.subr.bf16.mxu0 %v7066_v39  ;;  %4633 = vmatprep.subr.bf16.mxu1 %v7069_v40  ;;  %v7138_v39 = vld [vmem:[#allocation3 + $0x10f4] ss:$36 sps:$4 sm:$0xff]   ;;  %v7141_v40 = vld [vmem:[#allocation3 + $0x10fc] ss:$36 sps:$4 sm:$0xff]  }
 0x206   : > { %4451 = vmatmul.mubr.bf16.vlgmr.msra.gmra.mrb[4].mxu0 %v7552_v33  ;;  %4623 = vmatmul.mubr.bf16.vlgmr.msra.gmra.mrb[4].mxu1 %v7552_v33 }
 0x207   : > { %4462 = vmatpush1.bf16.msra.mxu0 %v7064_v44  ;;  %4634 = vmatpush1.bf16.msra.mxu1 %v7067_v45  ;;  %v7136_v44 = vld [vmem:[#allocation3 + $0x10f0] ss:$36 sps:$4 sm:$0xff]   ;;  %v7139_v45 = vld [vmem:[#allocation3 + $0x10f8] ss:$36 sps:$4 sm:$0xff]  }
 0x208   : > { %4463 = vmatprep.subr.bf16.mxu0 %v7072_v46  ;;  %4635 = vmatprep.subr.bf16.mxu1 %v7075_v47  ;;  %v7144_v46 = vld [vmem:[#allocation3 + $0x113c] ss:$36 sps:$4 sm:$0xff]   ;;  %v7147_v47 = vld [vmem:[#allocation3 + $0x1144] ss:$36 sps:$4 sm:$0xff]  }
 0x209   : > { %4493 = vmatprep.mubr.bf16.mxu0 %v7560_v11  ;;  %4665 = vmatprep.mubr.bf16.mxu1 %v7560_v11 }
 0x20b   : > { %4464 = vmatpush1.bf16.msra.mxu0 %v7070_v51  ;;  %4636 = vmatpush1.bf16.msra.mxu1 %v7073_v52  ;;  %v7142_v51 = vld [vmem:[#allocation3 + $0x1138] ss:$36 sps:$4 sm:$0xff]   ;;  %v7145_v52 = vld [vmem:[#allocation3 + $0x1140] ss:$36 sps:$4 sm:$0xff]  }
 0x20c   : > { %4465 = vmatprep.subr.bf16.mxu0 %v7078_v53  ;;  %4637 = vmatprep.subr.bf16.mxu1 %v7081_v54  ;;  %v7150_v53 = vld [vmem:[#allocation3 + $0x1184] ss:$36 sps:$4 sm:$0xff]   ;;  %v7153_v54 = vld [vmem:[#allocation3 + $0x118c] ss:$36 sps:$4 sm:$0xff]  }
 0x20f   : > { %4466 = vmatpush1.bf16.msra.mxu0 %v7076_v55  ;;  %4638 = vmatpush1.bf16.msra.mxu1 %v7079_v56  ;;  %v7148_v55 = vld [vmem:[#allocation3 + $0x1180] ss:$36 sps:$4 sm:$0xff]   ;;  %v7151_v56 = vld [vmem:[#allocation3 + $0x1188] ss:$36 sps:$4 sm:$0xff]  }
 0x210   : > { %4467 = vmatprep.subr.bf16.mxu0 %v7084_v57  ;;  %4639 = vmatprep.subr.bf16.mxu1 %v7087_v58  ;;  %v7156_v57 = vld [vmem:[#allocation3 + $0x11cc] ss:$36 sps:$4 sm:$0xff]   ;;  %v7159_v58 = vld [vmem:[#allocation3 + $0x11d4] ss:$36 sps:$4 sm:$0xff]  }
 0x213   : > { %4468 = vmatpush1.bf16.msra.mxu0 %v7082_v59  ;;  %4640 = vmatpush1.bf16.msra.mxu1 %v7085_v60  ;;  %v7154_v59 = vld [vmem:[#allocation3 + $0x11c8] ss:$36 sps:$4 sm:$0xff]   ;;  %v7157_v60 = vld [vmem:[#allocation3 + $0x11d0] ss:$36 sps:$4 sm:$0xff]  }
 0x214   : > { %4469 = vmatprep.subr.bf16.mxu0 %v7090_v61  ;;  %4641 = vmatprep.subr.bf16.mxu1 %v7093_v62  ;;  %v7160_v61 = vld [vmem:[#allocation3 + $0x260] ss:$36 sps:$4 sm:$0xff]  }
 0x215   : > { %v7161_v62 = vld [vmem:[#allocation3 + $0x6e0] ss:$36 sps:$4 sm:$0xff]  }
 0x217   : > { %4470 = vmatpush1.bf16.msra.mxu0 %v7088_v63  ;;  %4642 = vmatpush1.bf16.msra.mxu1 %v7091_v0  ;;  %v7162_v63 = vld [vmem:[#allocation3 + $0x20] ss:$36 sps:$4 sm:$0xff]  }
 0x218   : > { %4471 = vmatprep.subr.bf16.mxu0 %v7096_v1  ;;  %4643 = vmatprep.subr.bf16.mxu1 %v7099_v28  ;;  %v7163_v0 = vld [vmem:[#allocation3 + $0x4a0] ss:$36 sps:$4 sm:$0xff]   ;;  %v7164_v1 = vld [vmem:[#allocation3 + $0x2a8] ss:$36 sps:$4 sm:$0xff]  }
 0x219   : > { %v7590_v6 = vpop.f32.mrb[0].mxu0  ;;  %v7592_v8 = vpop.f32.mrb[0].mxu1  ;;  %v7165_v28 = vld [vmem:[#allocation3 + $0x728] ss:$36 sps:$4 sm:$0xff]  }
 0x21a   : > { %v7594_v10 = vpop.f32.mrb[1].mxu0  ;;  %v7596_v30 = vpop.f32.mrb[1].mxu1 }
 0x21b   : > { %v7598_v34 = vpop.f32.mrb[2].mxu0  ;;  %v7600_v41 = vpop.f32.mrb[2].mxu1  ;;  %4472 = vmatpush1.bf16.msra.mxu0 %v7094_v2  ;;  %4644 = vmatpush1.bf16.msra.mxu1 %v7097_v3  ;;  %v7166_v2 = vld [vmem:[#allocation3 + $0x68] ss:$36 sps:$4 sm:$0xff]  }
 0x21c   : > { %v7602_v13 = vpop.f32.mrb[3].mxu0  ;;  %v7604_v15 = vpop.f32.mrb[3].mxu1  ;;  %4473 = vmatprep.subr.bf16.mxu0 %v7102_v4  ;;  %4645 = vmatprep.subr.bf16.mxu1 %v7105_v5  ;;  %v7167_v3 = vld [vmem:[#allocation3 + $0x4e8] ss:$36 sps:$4 sm:$0xff]   ;;  %v7168_v4 = vld [vmem:[#allocation3 + $0x2f0] ss:$36 sps:$4 sm:$0xff]  }
 0x21d   : > { %v7169_v5 = vld [vmem:[#allocation3 + $0x770] ss:$36 sps:$4 sm:$0xff]  }
 0x21f   : > { %4474 = vmatpush1.bf16.msra.mxu0 %v7100_v12  ;;  %4646 = vmatpush1.bf16.msra.mxu1 %v7103_v14  ;;  %v7170_v12 = vld [vmem:[#allocation3 + $0xb0] ss:$36 sps:$4 sm:$0xff]  }
 0x220   : > { %4475 = vmatprep.subr.bf16.mxu0 %v7108_v16  ;;  %4647 = vmatprep.subr.bf16.mxu1 %v7111_v17  ;;  %v7171_v14 = vld [vmem:[#allocation3 + $0x530] ss:$36 sps:$4 sm:$0xff]   ;;  %v7172_v16 = vld [vmem:[#allocation3 + $0x338] ss:$36 sps:$4 sm:$0xff]  }
 0x221   : > { %v7173_v17 = vld [vmem:[#allocation3 + $0x7b8] ss:$36 sps:$4 sm:$0xff]  }
 0x223   : > { %4476 = vmatpush1.bf16.msra.mxu0 %v7106_v18  ;;  %4648 = vmatpush1.bf16.msra.mxu1 %v7109_v19  ;;  %v7174_v18 = vld [vmem:[#allocation3 + $0xf8] ss:$36 sps:$4 sm:$0xff]  }
 0x224   : > { %4477 = vmatprep.subr.bf16.mxu0 %v7114_v43  ;;  %4649 = vmatprep.subr.bf16.mxu1 %v7117_v42  ;;  %v7175_v19 = vld [vmem:[#allocation3 + $0x578] ss:$36 sps:$4 sm:$0xff]   ;;  %v7176_v43 = vld [vmem:[#allocation3 + $0x380] ss:$36 sps:$4 sm:$0xff]  }
 0x225   : > { %v7177_v42 = vld [vmem:[#allocation3 + $0x800] ss:$36 sps:$4 sm:$0xff]  }
 0x227   : > { %4478 = vmatpush1.bf16.msra.mxu0 %v7112_v49  ;;  %4650 = vmatpush1.bf16.msra.mxu1 %v7115_v20  ;;  %v7180_v49 = vld [vmem:[#allocation3 + $0x3c8] ss:$36 sps:$4 sm:$0xff]  }
 0x228   : > { %4479 = vmatprep.subr.bf16.mxu0 %v7120_v21  ;;  %4651 = vmatprep.subr.bf16.mxu1 %v7123_v22  ;;  %v7181_v20 = vld [vmem:[#allocation3 + $0x848] ss:$36 sps:$4 sm:$0xff]  }
 0x229   : > { %v7182_v21 = vld [vmem:[#allocation3 + $0x188] ss:$36 sps:$4 sm:$0xff]  }
 0x22a   : > { %v7183_v22 = vld [vmem:[#allocation3 + $0x608] ss:$36 sps:$4 sm:$0xff]  }
 0x22b   : > { %4480 = vmatpush1.bf16.msra.mxu0 %v7118_v23  ;;  %4652 = vmatpush1.bf16.msra.mxu1 %v7121_v24  ;;  %v7184_v23 = vld [vmem:[#allocation3 + $0x410] ss:$36 sps:$4 sm:$0xff]  }
 0x22c   : > { %4481 = vmatprep.subr.bf16.mxu0 %v7126_v25  ;;  %4653 = vmatprep.subr.bf16.mxu1 %v7129_v26  ;;  %v7185_v24 = vld [vmem:[#allocation3 + $0x890] ss:$36 sps:$4 sm:$0xff]  }
 0x22d   : > { %v7186_v25 = vld [vmem:[#allocation3 + $0x1d0] ss:$36 sps:$4 sm:$0xff]  }
 0x22e   : > { %v7187_v26 = vld [vmem:[#allocation3 + $0x650] ss:$36 sps:$4 sm:$0xff]  }
 0x22f   : > { %4482 = vmatpush1.bf16.msra.mxu0 %v7124_v27  ;;  %4654 = vmatpush1.bf16.msra.mxu1 %v7127_v29  ;;  %v7188_v27 = vld [vmem:[#allocation3 + $0x458] ss:$36 sps:$4 sm:$0xff]  }
 0x230   : > { %4483 = vmatprep.subr.bf16.mxu0 %v7132_v31  ;;  %4655 = vmatprep.subr.bf16.mxu1 %v7135_v32  ;;  %v7189_v29 = vld [vmem:[#allocation3 + $0x8d8] ss:$36 sps:$4 sm:$0xff]  }
 0x231   : > { %v7190_v31 = vld [vmem:[#allocation3 + $0x218] ss:$36 sps:$4 sm:$0xff]  }
 0x232   : > { %v7191_v32 = vld [vmem:[#allocation3 + $0x698] ss:$36 sps:$4 sm:$0xff]  }
 0x233   : > { %4484 = vmatpush1.bf16.msra.mxu0 %v7130_v35  ;;  %4656 = vmatpush1.bf16.msra.mxu1 %v7133_v36  ;;  %v7192_v35 = vld [vmem:[#allocation3 + $0xb60] ss:$36 sps:$4 sm:$0xff]  }
 0x234   : > { %4485 = vmatprep.subr.bf16.mxu0 %v7138_v39  ;;  %4657 = vmatprep.subr.bf16.mxu1 %v7141_v40  ;;  %v7193_v36 = vld [vmem:[#allocation3 + $0xfe0] ss:$36 sps:$4 sm:$0xff]  }
 0x235   : > { %v7194_v39 = vld [vmem:[#allocation3 + $0x920] ss:$36 sps:$4 sm:$0xff]  }
 0x236   : > { %v7195_v40 = vld [vmem:[#allocation3 + $0xda0] ss:$36 sps:$4 sm:$0xff]  }
 0x237   : > { %4486 = vmatpush1.bf16.msra.mxu0 %v7136_v44  ;;  %4658 = vmatpush1.bf16.msra.mxu1 %v7139_v45  ;;  %v7196_v44 = vld [vmem:[#allocation3 + $0xba8] ss:$36 sps:$4 sm:$0xff]  }
 0x238   : > { %4487 = vmatprep.subr.bf16.mxu0 %v7144_v46  ;;  %4659 = vmatprep.subr.bf16.mxu1 %v7147_v47  ;;  %v7197_v45 = vld [vmem:[#allocation3 + $0x1028] ss:$36 sps:$4 sm:$0xff]  }
 0x239   : > { %v7198_v46 = vld [vmem:[#allocation3 + $0x968] ss:$36 sps:$4 sm:$0xff]  }
 0x23a   : > { %v7199_v47 = vld [vmem:[#allocation3 + $0xde8] ss:$36 sps:$4 sm:$0xff]  }
 0x23b   : > { %4488 = vmatpush1.bf16.msra.mxu0 %v7142_v51  ;;  %4660 = vmatpush1.bf16.msra.mxu1 %v7145_v52  ;;  %v7200_v51 = vld [vmem:[#allocation3 + $0xbf0] ss:$36 sps:$4 sm:$0xff]  }
 0x23c   : > { %4489 = vmatprep.subr.bf16.mxu0 %v7150_v53  ;;  %4661 = vmatprep.subr.bf16.mxu1 %v7153_v54  ;;  %v7201_v52 = vld [vmem:[#allocation3 + $0x1070] ss:$36 sps:$4 sm:$0xff]  }
 0x23d   : > { %v7202_v53 = vld [vmem:[#allocation3 + $0x9b0] ss:$36 sps:$4 sm:$0xff]  }
 0x23e   : > { %v7203_v54 = vld [vmem:[#allocation3 + $0xe30] ss:$36 sps:$4 sm:$0xff]  }
 0x23f   : > { %4490 = vmatpush1.bf16.msra.mxu0 %v7148_v55  ;;  %4662 = vmatpush1.bf16.msra.mxu1 %v7151_v56  ;;  %v7206_v55 = vld [vmem:[#allocation3 + $0x9f8] ss:$36 sps:$4 sm:$0xff]  }
 0x240   : > { %4491 = vmatprep.subr.bf16.mxu0 %v7156_v57  ;;  %4663 = vmatprep.subr.bf16.mxu1 %v7159_v58  ;;  %v7207_v56 = vld [vmem:[#allocation3 + $0xe78] ss:$36 sps:$4 sm:$0xff]   ;;  %v7208_v57 = vld [vmem:[#allocation3 + $0xc80] ss:$36 sps:$4 sm:$0xff]  }
 0x241   : > { %v7209_v58 = vld [vmem:[#allocation3 + $0x1100] ss:$36 sps:$4 sm:$0xff]  }
 0x243   : > { %4492 = vmatpush1.bf16.msra.mxu0 %v7154_v59  ;;  %4664 = vmatpush1.bf16.msra.mxu1 %v7157_v60  ;;  %v7212_v59 = vld [vmem:[#allocation3 + $0xcc8] ss:$36 sps:$4 sm:$0xff]  }
 0x244   : > { %5966 = vmatprep.subr.bf16.mxu0 %v7160_v61  ;;  %5988 = vmatprep.subr.bf16.mxu1 %v7161_v62  ;;  %v7213_v60 = vld [vmem:[#allocation3 + $0x1148] ss:$36 sps:$4 sm:$0xff]  }
 0x245   : > { %v7214_v61 = vld [vmem:[#allocation3 + $0xa88] ss:$36 sps:$4 sm:$0xff]  }
 0x246   : > { %4494 = vmatmul.mubr.bf16.vlgmr.msra.gmra.mrb[4].mxu0 %v7572_v7  ;;  %4666 = vmatmul.mubr.bf16.vlgmr.msra.gmra.mrb[4].mxu1 %v7572_v7  ;;  %v7215_v62 = vld [vmem:[#allocation3 + $0xf08] ss:$36 sps:$4 sm:$0xff]  }
 0x247   : > { %5967 = vmatpush3.bf16.msra.mxu0 %v7162_v63  ;;  %5989 = vmatpush3.bf16.msra.mxu1 %v7163_v0  ;;  %v7216_v63 = vld [vmem:[#allocation3 + $0xd10] ss:$36 sps:$4 sm:$0xff]  }
 0x248   : > { %5968 = vmatprep.subr.bf16.mxu0 %v7164_v1  ;;  %5990 = vmatprep.subr.bf16.mxu1 %v7165_v28  ;;  %v7217_v0 = vld [vmem:[#allocation3 + $0x1190] ss:$36 sps:$4 sm:$0xff]  }
 0x249   : > { %4708 = vmatprep.mubr.bf16.mxu0 %v7473_v50  ;;  %4749 = vmatprep.mubr.bf16.mxu1 %v7503_v48  ;;  %v7178_v50 = vld [vmem:[#allocation3 + $0x140] ss:$36 sps:$4 sm:$0xff]   ;;  %v7218_v1 = vld [vmem:[#allocation3 + $0xad0] ss:$36 sps:$4 sm:$0xff]  }
 0x24a   : > { %v7179_v48 = vld [vmem:[#allocation3 + $0x5c0] ss:$36 sps:$4 sm:$0xff]   ;;  %v7219_v28 = vld [vmem:[#allocation3 + $0xf50] ss:$36 sps:$4 sm:$0xff]  }
 0x24b   : > { %5969 = vmatpush3.bf16.msra.mxu0 %v7166_v2  ;;  %5991 = vmatpush3.bf16.msra.mxu1 %v7167_v3  ;;  %v7220_v2 = vld [vmem:[#allocation3 + $0xd58] ss:$36 sps:$4 sm:$0xff]  }
 0x24c   : > { %5970 = vmatprep.subr.bf16.mxu0 %v7168_v4  ;;  %5992 = vmatprep.subr.bf16.mxu1 %v7169_v5  ;;  %v7221_v3 = vld [vmem:[#allocation3 + $0x11d8] ss:$36 sps:$4 sm:$0xff]   ;;  %v4986_v4 = vld [vmem:[#allocation5 + $0x200] sm:$0xff]  ;;  %v4987_v5 = vld [vmem:[#allocation5 + $0x208] sm:$0xff] }
 0x24f   : > { %5971 = vmatpush3.bf16.msra.mxu0 %v7170_v12  ;;  %5993 = vmatpush3.bf16.msra.mxu1 %v7171_v14  ;;  %v4938_v12 = vld [vmem:[#allocation5 + $0x80] sm:$0xff]  ;;  %v4939_v14 = vld [vmem:[#allocation5 + $0x88] sm:$0xff] }
 0x250   : > { %5972 = vmatprep.subr.bf16.mxu0 %v7172_v16  ;;  %5994 = vmatprep.subr.bf16.mxu1 %v7173_v17  ;;  %v7222_v16 = vld [vmem:[#allocation3 + $0xb18] ss:$36 sps:$4 sm:$0xff]  }
 0x251   : > { %v7223_v17 = vld [vmem:[#allocation3 + $0xf98] ss:$36 sps:$4 sm:$0xff]  }
 0x253   : > { %5973 = vmatpush3.bf16.msra.mxu0 %v7174_v18  ;;  %5995 = vmatpush3.bf16.msra.mxu1 %v7175_v19  ;;  %v6183_v18 = vpack.c.bf16 %v4987_v5, %v4986_v4  ;;  %v4988_v19 = vld [vmem:[#allocation5 + $0x210] sm:$0xff]  ;;  %v4949_v5 = vld [vmem:[#allocation5 + $0xd8] sm:$0xff] }
 0x254   : > { %5974 = vmatprep.subr.bf16.mxu0 %v7176_v43  ;;  %5996 = vmatprep.subr.bf16.mxu1 %v7177_v42  ;;  %v6215_v43 = vpack.c.bf16 %v4939_v14, %v4938_v12  ;;  %v4922_v42 = vld [vmem:[#allocation5] sm:$0xff]  ;;  %v4948_v4 = vld [vmem:[#allocation5 + $0xd0] sm:$0xff] }
 0x255   : > { %v6235_v12 = vpack.c.bf16 %v4949_v5, %v4948_v4  ;;  %v4932_v14 = vld [vmem:[#allocation5 + $0x50] sm:$0xff]  ;;  %v4959_v4 = vld [vmem:[#allocation5 + $0x128] sm:$0xff] }
 0x256   : > { %v4976_v5 = vld [vmem:[#allocation5 + $0x1b0] sm:$0xff] }
 0x257   : > { %5975 = vmatpush3.bf16.msra.mxu0 %v7178_v50  ;;  %5997 = vmatpush3.bf16.msra.mxu1 %v7179_v48  ;;  %v4923_v50 = vld [vmem:[#allocation5 + $0x8] sm:$0xff]  ;;  %v4989_v48 = vld [vmem:[#allocation5 + $0x218] sm:$0xff] }
 0x258   : > { %5976 = vmatprep.subr.bf16.mxu0 %v7180_v49  ;;  %5998 = vmatprep.subr.bf16.mxu1 %v7181_v20  ;;  %v4940_v49 = vld [vmem:[#allocation5 + $0x90] sm:$0xff]  ;;  %v4941_v20 = vld [vmem:[#allocation5 + $0x98] sm:$0xff] }
 0x25b   : > { %5977 = vmatpush3.bf16.msra.mxu0 %v7182_v21  ;;  %5999 = vmatpush3.bf16.msra.mxu1 %v7183_v22  ;;  %v6217_v21 = vpack.c.bf16 %v4923_v50, %v4922_v42  ;;  %v6187_v22 = vpack.c.bf16 %v4989_v48, %v4988_v19  ;;  %v4951_v19 = vld [vmem:[#allocation5 + $0xe8] sm:$0xff]  ;;  %v4952_v48 = vld [vmem:[#allocation5 + $0xf0] sm:$0xff] }
 0x25c   : > { %5978 = vmatprep.subr.bf16.mxu0 %v7184_v23  ;;  %6000 = vmatprep.subr.bf16.mxu1 %v7185_v24  ;;  %v4990_v23 = vld [vmem:[#allocation5 + $0x220] sm:$0xff]  ;;  %v6219_v24 = vpack.c.bf16 %v4941_v20, %v4940_v49  ;;  %v4935_v42 = vld [vmem:[#allocation5 + $0x68] sm:$0xff]  ;;  %v4953_v49 = vld [vmem:[#allocation5 + $0xf8] sm:$0xff] }
 0x25f   : > { %5979 = vmatpush3.bf16.msra.mxu0 %v7186_v25  ;;  %6001 = vmatpush3.bf16.msra.mxu1 %v7187_v26  ;;  %v4924_v25 = vld [vmem:[#allocation5 + $0x10] sm:$0xff]  ;;  %v4925_v26 = vld [vmem:[#allocation5 + $0x18] sm:$0xff] }
 0x260   : > { %5980 = vmatprep.subr.bf16.mxu0 %v7188_v27  ;;  %6002 = vmatprep.subr.bf16.mxu1 %v7189_v29  ;;  %v4991_v27 = vld [vmem:[#allocation5 + $0x228] sm:$0xff]  ;;  %v4942_v29 = vld [vmem:[#allocation5 + $0xa0] sm:$0xff] }
 0x263   : > { %5981 = vmatpush3.bf16.msra.mxu0 %v7190_v31  ;;  %6003 = vmatpush3.bf16.msra.mxu1 %v7191_v32  ;;  %v4943_v31 = vld [vmem:[#allocation5 + $0xa8] sm:$0xff]  ;;  %v6221_v32 = vpack.c.bf16 %v4925_v26, %v4924_v25  ;;  %v4970_v25 = vld [vmem:[#allocation5 + $0x180] sm:$0xff] }
 0x264   : > { %6010 = vmatprep.subr.bf16.mxu0 %v7192_v35  ;;  %6032 = vmatprep.subr.bf16.mxu1 %v7193_v36  ;;  %v6191_v35 = vpack.c.bf16 %v4991_v27, %v4990_v23  ;;  %v6223_v36 = vpack.c.bf16 %v4943_v31, %v4942_v29  ;;  %v4937_v23 = vld [vmem:[#allocation5 + $0x78] sm:$0xff]  ;;  %v4971_v26 = vld [vmem:[#allocation5 + $0x188] sm:$0xff]  ;;  %v4954_v29 = vld [vmem:[#allocation5 + $0x100] sm:$0xff] }
 0x265   : > { %v6247_v27 = vpack.c.bf16 %v4971_v26, %v4970_v25  ;;  %v4955_v31 = vld [vmem:[#allocation5 + $0x108] sm:$0xff] }
 0x266   : > { %4709 = vmatmul.mubr.bf16.vlgmr.msra.gmra.mrb[8].mxu0 %v7479_v9  ;;  %4750 = vmatmul.mubr.bf16.vlgmr.msra.gmra.mrb[8].mxu1 %v7528_v38  ;;  %v7204_v9 = vld [vmem:[#allocation3 + $0xc38] ss:$36 sps:$4 sm:$0xff]  }
 0x267   : > { %6011 = vmatpush3.bf16.msra.mxu0 %v7194_v39  ;;  %6033 = vmatpush3.bf16.msra.mxu1 %v7195_v40  ;;  %v7205_v38 = vld [vmem:[#allocation3 + $0x10b8] ss:$36 sps:$4 sm:$0xff]   ;;  %v4926_v39 = vld [vmem:[#allocation5 + $0x20] sm:$0xff]  ;;  %v4927_v40 = vld [vmem:[#allocation5 + $0x28] sm:$0xff] }
 0x268   : > { %6012 = vmatprep.subr.bf16.mxu0 %v7196_v44  ;;  %6034 = vmatprep.subr.bf16.mxu1 %v7197_v45  ;;  %v4992_v44 = vld [vmem:[#allocation5 + $0x230] sm:$0xff]  ;;  %v4993_v45 = vld [vmem:[#allocation5 + $0x238] sm:$0xff] }
 0x269   : > { %4790 = vmatprep.mubr.bf16.mxu0 %v7537_v37  ;;  %4831 = vmatprep.mubr.bf16.mxu1 %v7560_v11  ;;  %v7210_v37 = vld [vmem:[#allocation3 + $0xa40] ss:$36 sps:$4 sm:$0xff]  }
 0x26a   : > { %v7211_v11 = vld [vmem:[#allocation3 + $0xec0] ss:$36 sps:$4 sm:$0xff]  }
 0x26b   : > { %6013 = vmatpush3.bf16.msra.mxu0 %v7198_v46  ;;  %6035 = vmatpush3.bf16.msra.mxu1 %v7199_v47  ;;  %v6225_v46 = vpack.c.bf16 %v4927_v40, %v4926_v39  ;;  %v6195_v47 = vpack.c.bf16 %v4993_v45, %v4992_v44  ;;  %v4972_v44 = vld [vmem:[#allocation5 + $0x190] sm:$0xff]  ;;  %v4973_v45 = vld [vmem:[#allocation5 + $0x198] sm:$0xff] }
 0x26c   : > { %6014 = vmatprep.subr.bf16.mxu0 %v7200_v51  ;;  %6036 = vmatprep.subr.bf16.mxu1 %v7201_v52  ;;  %v4995_v51 = vld [vmem:[#allocation5 + $0x248] sm:$0xff]  ;;  %v4996_v52 = vld [vmem:[#allocation5 + $0x250] sm:$0xff] }
 0x26f   : > { %6015 = vmatpush3.bf16.msra.mxu0 %v7202_v53  ;;  %6037 = vmatpush3.bf16.msra.mxu1 %v7203_v54  ;;  %v4997_v53 = vld [vmem:[#allocation5 + $0x258] sm:$0xff] }
 0x270   : > { %6016 = vmatprep.subr.bf16.mxu0 %v7204_v9  ;;  %6038 = vmatprep.subr.bf16.mxu1 %v7205_v38  ;;  %v6203_v54 = vpack.c.bf16 %v4997_v53, %v4996_v52  ;;  %v4998_v9 = vld [vmem:[#allocation5 + $0x260] sm:$0xff]  ;;  %v4999_v38 = vld [vmem:[#allocation5 + $0x268] sm:$0xff] }
 0x273   : > { %6017 = vmatpush3.bf16.msra.mxu0 %v7206_v55  ;;  %6039 = vmatpush3.bf16.msra.mxu1 %v7207_v56  ;;  %v6207_v55 = vpack.c.bf16 %v4999_v38, %v4998_v9  ;;  %v5000_v56 = vld [vmem:[#allocation5 + $0x270] sm:$0xff]  ;;  %v7628_v9 = vpack.c.bf16 %v4955_v31, %v4954_v29 }
 0x274   : > { %6018 = vmatprep.subr.bf16.mxu0 %v7208_v57  ;;  %6040 = vmatprep.subr.bf16.mxu1 %v7209_v58  ;;  %v5001_v57 = vld [vmem:[#allocation5 + $0x278] sm:$0xff]  ;;  %v4944_v58 = vld [vmem:[#allocation5 + $0xb0] sm:$0xff] }
 0x277   : > { %6019 = vmatpush3.bf16.msra.mxu0 %v7210_v37  ;;  %6041 = vmatpush3.bf16.msra.mxu1 %v7211_v11  ;;  %v4945_v37 = vld [vmem:[#allocation5 + $0xb8] sm:$0xff]  ;;  %v4928_v11 = vld [vmem:[#allocation5 + $0x30] sm:$0xff] }
 0x278   : > { %6020 = vmatprep.subr.bf16.mxu0 %v7212_v59  ;;  %6042 = vmatprep.subr.bf16.mxu1 %v7213_v60  ;;  %v4929_v59 = vld [vmem:[#allocation5 + $0x38] sm:$0xff]  ;;  %v6227_v60 = vpack.c.bf16 %v4945_v37, %v4944_v58  ;;  %v4956_v58 = vld [vmem:[#allocation5 + $0x110] sm:$0xff] }
 0x279   : > { %v4957_v37 = vld [vmem:[#allocation5 + $0x118] sm:$0xff] }
 0x27b   : > { %6021 = vmatpush3.bf16.msra.mxu0 %v7214_v61  ;;  %6043 = vmatpush3.bf16.msra.mxu1 %v7215_v62  ;;  %v6229_v61 = vpack.c.bf16 %v4929_v59, %v4928_v11  ;;  %v6211_v62 = vpack.c.bf16 %v5001_v57, %v5000_v56 }
 0x27c   : > { %6022 = vmatprep.subr.bf16.mxu0 %v7216_v63  ;;  %6044 = vmatprep.subr.bf16.mxu1 %v7217_v0  ;;  %v4946_v63 = vld [vmem:[#allocation5 + $0xc0] sm:$0xff]  ;;  %v4947_v0 = vld [vmem:[#allocation5 + $0xc8] sm:$0xff] }
 0x27f   : > { %6023 = vmatpush3.bf16.msra.mxu0 %v7218_v1  ;;  %6045 = vmatpush3.bf16.msra.mxu1 %v7219_v28  ;;  %v6231_v1 = vpack.c.bf16 %v4947_v0, %v4946_v63  ;;  %v4930_v28 = vld [vmem:[#allocation5 + $0x40] sm:$0xff] }
 0x280   : > { %6024 = vmatprep.subr.bf16.mxu0 %v7220_v2  ;;  %6046 = vmatprep.subr.bf16.mxu1 %v7221_v3  ;;  %v4931_v2 = vld [vmem:[#allocation5 + $0x48] sm:$0xff] }
 0x281   : > { %v6233_v3 = vpack.c.bf16 %v4931_v2, %v4930_v28  ;;  %v7644_v28 = vpack.c.bf16 %v4957_v37, %v4956_v58  ;;  %v4985_v58 = vld [vmem:[#allocation5 + $0x1f8] sm:$0xff] }
 0x283   : > { %6025 = vmatpush3.bf16.msra.mxu0 %v7222_v16  ;;  %6047 = vmatpush3.bf16.msra.mxu1 %v7223_v17  ;;  %v4933_v16 = vld [vmem:[#allocation5 + $0x58] sm:$0xff]  ;;  %v4950_v17 = vld [vmem:[#allocation5 + $0xe0] sm:$0xff] }
 0x284   : > { %6184 = vmatprep.subr.bf16.mxu0 %v6183_v18  ;;  %6216 = vmatprep.subr.bf16.mxu1 %v6215_v43  ;;  %v4934_v43 = vld [vmem:[#allocation5 + $0x60] sm:$0xff]  ;;  %v6239_v50 = vpack.c.bf16 %v4951_v19, %v4950_v17  ;;  %v4960_v17 = vld [vmem:[#allocation5 + $0x130] sm:$0xff] }
 0x285   : > { %v6241_v20 = vpack.c.bf16 %v4935_v42, %v4934_v43  ;;  %v4978_v19 = vld [vmem:[#allocation5 + $0x1c0] sm:$0xff]  ;;  %v4979_v43 = vld [vmem:[#allocation5 + $0x1c8] sm:$0xff] }
 0x286   : > { %4791 = vmatmul.mubr.bf16.vlgmr.msra.gmra.mrb[12].mxu0 %v7552_v33  ;;  %4832 = vmatmul.mubr.bf16.vlgmr.msra.gmra.mrb[12].mxu1 %v7572_v7  ;;  %v4994_v33 = vld [vmem:[#allocation5 + $0x240] sm:$0xff] }
 0x287   : > { %6186 = vmatpush3.bf16.msra.mxu0 %v6183_v18  ;;  %6218 = vmatpush3.bf16.msra.mxu1 %v6217_v21  ;;  %v6199_v7 = vpack.c.bf16 %v4995_v51, %v4994_v33  ;;  %v6237_v18 = vpack.c.bf16 %v4933_v16, %v4932_v14  ;;  %v6243_v21 = vpack.c.bf16 %v4953_v49, %v4952_v48  ;;  %v4963_v48 = vld [vmem:[#allocation5 + $0x148] sm:$0xff] }
 0x288   : > { %6188 = vmatprep.subr.bf16.mxu0 %v6187_v22  ;;  %6220 = vmatprep.subr.bf16.mxu1 %v6219_v24 }
 0x28b   : > { %6190 = vmatpush3.bf16.msra.mxu0 %v6187_v22  ;;  %6222 = vmatpush3.bf16.msra.mxu1 %v6221_v32  ;;  %v4936_v22 = vld [vmem:[#allocation5 + $0x70] sm:$0xff]  ;;  %v4840_v32 = vmul.f32 %v7590_v6, %v7590_v6 }
 0x28c   : > { %6192 = vmatprep.subr.bf16.mxu0 %v6191_v35  ;;  %6224 = vmatprep.subr.bf16.mxu1 %v6223_v36  ;;  %v6245_v24 = vpack.c.bf16 %v4937_v23, %v4936_v22  ;;  %v4841_v36 = vmul.f32 %v7594_v10, %v7594_v10  ;;  %v4980_v23 = vld [vmem:[#allocation5 + $0x1d0] sm:$0xff] }
 0x28f   : > { %6194 = vmatpush3.bf16.msra.mxu0 %v6191_v35  ;;  %6226 = vmatpush3.bf16.msra.mxu1 %v6225_v46  ;;  %v4842_v35 = vmul.f32 %v7592_v8, %v7592_v8  ;;  %v4844_v46 = vmul.f32 %v7598_v34, %v7598_v34  ;;  %v4845_v8 = vmul.f32 %v7602_v13, %v7602_v13 }
 0x290   : > { %6196 = vmatprep.subr.bf16.mxu0 %v6195_v47  ;;  %6228 = vmatprep.subr.bf16.mxu1 %v6227_v60 }
 0x293   : > { %6198 = vmatpush3.bf16.msra.mxu0 %v6195_v47  ;;  %6230 = vmatpush3.bf16.msra.mxu1 %v6229_v61  ;;  %v4846_v47 = vmul.f32 %v7600_v41, %v7600_v41  ;;  %v7632_v41 = vpack.c.bf16 %v4973_v45, %v4972_v44  ;;  %v4974_v61 = vld [vmem:[#allocation5 + $0x1a0] sm:$0xff] }
 0x294   : > { %6200 = vmatprep.subr.bf16.mxu0 %v6199_v7  ;;  %6232 = vmatprep.subr.bf16.mxu1 %v6231_v1 }
 0x297   : > { %6202 = vmatpush3.bf16.msra.mxu0 %v6199_v7  ;;  %6234 = vmatpush3.bf16.msra.mxu1 %v6233_v3  ;;  %v4958_v3 = vld [vmem:[#allocation5 + $0x120] sm:$0xff] }
 0x298   : > { %6204 = vmatprep.subr.bf16.mxu0 %v6203_v54  ;;  %6236 = vmatprep.subr.bf16.mxu1 %v6235_v12  ;;  %v4977_v12 = vld [vmem:[#allocation5 + $0x1b8] sm:$0xff]  ;;  %v7652_v14 = vpack.c.bf16 %v4959_v4, %v4958_v3 }
 0x299   : > { %v7655_v16 = vpack.c.bf16 %v4977_v12, %v4976_v5 }
 0x29b   : > { %6206 = vmatpush3.bf16.msra.mxu0 %v6203_v54  ;;  %6238 = vmatpush3.bf16.msra.mxu1 %v6237_v18  ;;  %v4961_v18 = vld [vmem:[#allocation5 + $0x138] sm:$0xff] }
 0x29c   : > { %6208 = vmatprep.subr.bf16.mxu0 %v6207_v55  ;;  %6240 = vmatprep.subr.bf16.mxu1 %v6239_v50  ;;  %v7658_v42 = vpack.c.bf16 %v4961_v18, %v4960_v17  ;;  %v4962_v50 = vld [vmem:[#allocation5 + $0x140] sm:$0xff] }
 0x29f   : > { %6210 = vmatpush3.bf16.msra.mxu0 %v6207_v55  ;;  %6242 = vmatpush3.bf16.msra.mxu1 %v6241_v20  ;;  %v7661_v20 = vpack.c.bf16 %v4979_v43, %v4978_v19 }
 0x2a0   : > { %6212 = vmatprep.subr.bf16.mxu0 %v6211_v62  ;;  %6244 = vmatprep.subr.bf16.mxu1 %v6243_v21 }
 0x2a3   : > { %6214 = vmatpush3.bf16.msra.mxu0 %v6211_v62  ;;  %6246 = vmatpush3.bf16.msra.mxu1 %v6245_v24  ;;  %v4975_v62 = vld [vmem:[#allocation5 + $0x1a8] sm:$0xff]  ;;  %v4981_v24 = vld [vmem:[#allocation5 + $0x1d8] sm:$0xff] }
 0x2a4   : > { %6248 = vmatprep.subr.bf16.mxu0 %v6247_v27  ;;  %6279 = vmatprep.subr.bf16.mxu1 %v6247_v27  ;;  %v7647_v2 = vpack.c.bf16 %v4975_v62, %v4974_v61  ;;  %v7666_v27 = vpack.c.bf16 %v4963_v48, %v4962_v50  ;;  %v6267_v44 = vpack.c.bf16 %v4981_v24, %v4980_v23 }
 0x319   : > { %v4495_v39 = vpop.f32.mrb[4].mxu0  ;;  %v4667_v40 = vpop.f32.mrb[4].mxu1 }
 0x31a   : > { %v4920_v33 = vand.u32 2147483647, %v4495_v39  ;;  %v4849_v51 = vmul.f32 %v4667_v40, %v4667_v40  ;;  %v4497_v7 = vpop.f32.mrb[5].mxu0  ;;  %v4669_v6 = vpop.f32.mrb[5].mxu1 }
 0x31b   : > { %v4848_v52 = vmul.f32 %v4497_v7, %v4497_v7  ;;  %v4850_v53 = vmul.f32 %v4669_v6, %v4669_v6  ;;  %v4499_v10 = vpop.f32.mrb[6].mxu0  ;;  %v4671_v54 = vpop.f32.mrb[6].mxu1 }
 0x31c   : > { %v7630_v38 = vadd.f32 %v4849_v51, %v4841_v36  ;;  %v4921_v55 = vand.u32 2147483647, %v4499_v10  ;;  %v4853_v34 = vmul.f32 %v4671_v54, %v4671_v54  ;;  %v4501_v56 = vpop.f32.mrb[7].mxu0  ;;  %v4673_v57 = vpop.f32.mrb[7].mxu1  ;;  %6180 = vmatprep.mubr.f32.mxu0 %v4920_v33  ;;  %v4982_v33 = vld [vmem:[#allocation5 + $0x1e0] sm:$0xff]  ;;  %v4983_v51 = vld [vmem:[#allocation5 + $0x1e8] sm:$0xff] }
 0x31d   : > { %v4856_v11 = vadd.f32 %v4848_v52, %v4840_v32  ;;  %v7634_v59 = vadd.f32 %v4850_v53, %v4842_v35  ;;  %v4852_v13 = vmul.f32 %v4501_v56, %v4501_v56  ;;  %v4854_v60 = vmul.f32 %v4673_v57, %v4673_v57  ;;  %v4964_v32 = vld [vmem:[#allocation5 + $0x150] sm:$0xff]  ;;  %v4965_v35 = vld [vmem:[#allocation5 + $0x158] sm:$0xff] }
 0x31e   : > { %v7636_v63 = vadd.f32 %v4853_v34, %v4845_v8  ;;  %6181 = vmatmul.mubr.f32.vlgmr.msra.gmra.mrb[16].mxu0 %v4921_v55  ;;  %7224 = vrsqrt.f32 %v7630_v38  ;;  %vm4873_vm3 = vcmp.eq.f32.partialorder %v7630_v38, inf  ;;  %v4876_v25 = vand.u32 2147483648, %v7630_v38  ;;  %v4966_v55 = vld [vmem:[#allocation5 + $0x160] sm:$0xff]  ;;  %v4967_v34 = vld [vmem:[#allocation5 + $0x168] sm:$0xff]  ;;  %v4984_v57 = vld [vmem:[#allocation5 + $0x1f0] sm:$0xff] }
 0x31f   : > { %7226 = vrsqrt.f32 %v4856_v11  ;;  %v7639_v0 = vadd.f32 %v4852_v13, %v4844_v46  ;;  %v7641_v1 = vadd.f32 %v4854_v60, %v4846_v47  ;;  %6250 = vmatpush3.bf16.msra.mxu0 %v7628_v9  ;;  %vm4875_vm4 = vcmp.eq.f32.partialorder %v7630_v38, 0.0  ;;  %v4969_v13 = vld [vmem:[#allocation5 + $0x178] sm:$0xff] }
 0x320   : > { %6252 = vmatprep.subr.bf16.mxu0 %v7632_v41  ;;  %7228 = vrsqrt.f32 %v7636_v63  ;;  %vm4866_vm5 = vcmp.eq.f32.partialorder %v4856_v11, inf  ;;  %v4869_v31 = vand.u32 2147483648, %v4856_v11  ;;  %vm4868_vm6 = vcmp.eq.f32.partialorder %v4856_v11, 0.0 }
 0x321   : > { %7230 = vrsqrt.f32 %v7639_v0  ;;  %vm4901_vm7 = vcmp.eq.f32.partialorder %v7636_v63, inf  ;;  %v4904_v7 = vand.u32 2147483648, %v7636_v63  ;;  %v6269_v8 = vpack.c.bf16 %v4965_v35, %v4964_v32 }
 0x322   : > { %vm4903_vm8 = vcmp.eq.f32.partialorder %v7636_v63, 0.0  ;;  %vm4894_vm9 = vcmp.eq.f32.partialorder %v7639_v0, inf  ;;  %v4897_v53 = vand.u32 2147483648, %v7639_v0  ;;  %vm4896_vm10 = vcmp.eq.f32.partialorder %v7639_v0, 0.0 }
 0x323   : > { %6254 = vmatpush3.bf16.msra.mxu0 %v7644_v28  ;;  %v6275_v37 = vpack.c.bf16 %v4985_v58, %v4984_v57  ;;  %7232 = vrsqrt.f32 %v7634_v59  ;;  %v4847_v35 = vmul.f32 %v7604_v15, %v7604_v15  ;;  %vm4880_vm11 = vcmp.eq.f32.partialorder %v7634_v59, inf }
 0x324   : > { %6256 = vmatprep.subr.bf16.mxu0 %v7647_v2  ;;  %7234 = vrsqrt.f32 %v7641_v1  ;;  %vm4882_vm12 = vcmp.eq.f32.partialorder %v7634_v59, 0.0  ;;  %vm4908_vm15 = vcmp.eq.f32.partialorder %v7641_v1, inf  ;;  %vm4910_vm2 = vcmp.eq.f32.partialorder %v7641_v1, 0.0 }
 0x327   : > { %6258 = vmatpush3.bf16.msra.mxu0 %v7652_v14 }
 0x328   : > { %v7225_v49 = vpop.eup %7224  ;;  %6260 = vmatprep.subr.bf16.mxu0 %v7655_v16 }
 0x329   : > { %v7227_v21 = vpop.eup %7226  ;;  %v4872_v22 = vmul.f32 %v7225_v49, %v7630_v38 }
 0x32a   : > { %v4865_v26 = vmul.f32 %v7227_v21, %v4856_v11  ;;  %v7229_v36 = vpop.eup %7228 }
 0x32b   : > { %v4874_v29 = vsel %vm4873_vm3, %v7630_v38, %v4872_v22  ;;  %6262 = vmatpush3.bf16.msra.mxu0 %v7658_v42  ;;  %v7231_v45 = vpop.eup %7230  ;;  %v4900_v47 = vmul.f32 %v7229_v36, %v7636_v63  ;;  %v6271_v38 = vpack.c.bf16 %v4983_v51, %v4982_v33 }
 0x32c   : > { %v4877_v39 = vsel %vm4875_vm4, %v4876_v25, %v4874_v29  ;;  %v4867_v40 = vsel %vm4866_vm5, %v4856_v11, %v4865_v26  ;;  %6264 = vmatprep.subr.bf16.mxu0 %v7661_v20  ;;  %v4893_v6 = vmul.f32 %v7231_v45, %v7639_v0  ;;  %v4968_v11 = vld [vmem:[#allocation5 + $0x170] sm:$0xff]  ;;  %v4843_v29 = vmul.f32 %v7596_v30, %v7596_v30 }
 0x32d   : > { %5141 = vmatprep.mubr.f32.mxu1 %v4877_v39  ;;  %v4870_v46 = vsel %vm4868_vm6, %v4869_v31, %v4867_v40  ;;  %v4902_v52 = vsel %vm4901_vm7, %v7636_v63, %v4900_v47 }
 0x32e   : > { %5142 = vmatmul.mubr.f32.vlgmr.msra.gmra.mrb[16].mxu1 %v4870_v46  ;;  %v4905_v10 = vsel %vm4903_vm8, %v4904_v7, %v4902_v52  ;;  %v4895_v54 = vsel %vm4894_vm9, %v7639_v0, %v4893_v6  ;;  %v4883_v6 = vand.u32 2147483648, %v7634_v59 }
 0x32f   : > { %6287 = vmatpush3.bf16.msra.mxu1 %v7628_v9  ;;  %6266 = vmatpush3.bf16.msra.mxu0 %v7666_v27  ;;  %v4898_v56 = vsel %vm4896_vm10, %v4897_v53, %v4895_v54  ;;  %v6273_v9 = vpack.c.bf16 %v4967_v34, %v4966_v55  ;;  %v4911_v34 = vand.u32 2147483648, %v7641_v1 }
 0x330   : > { %6280 = vmatprep.subr.bf16.mxu1 %v7632_v41  ;;  %6268 = vmatprep.subr.bf16.mxu0 %v6267_v44  ;;  %v6277_v41 = vpack.c.bf16 %v4969_v13, %v4968_v11 }
 0x331   : > { %5146 = vmatprep.mubr.f32.mxu1 %v4905_v10 }
 0x332   : > { %5147 = vmatmul.mubr.f32.gmra.mrb[18].mxu1 %v4898_v56 }
 0x333   : > { %6288 = vmatpush3.bf16.msra.mxu1 %v7644_v28  ;;  %6270 = vmatpush3.bf16.msra.mxu0 %v6269_v8 }
 0x334   : > { %6281 = vmatprep.subr.bf16.mxu1 %v7647_v2  ;;  %6272 = vmatprep.subr.bf16.mxu0 %v6271_v38 }
 0x337   : > { %6289 = vmatpush3.bf16.msra.mxu1 %v7652_v14  ;;  %6274 = vmatpush3.bf16.msra.mxu0 %v6273_v9 }
 0x338   : > { %6282 = vmatprep.subr.bf16.mxu1 %v7655_v16  ;;  %6276 = vmatprep.subr.bf16.mxu0 %v6275_v37 }
 0x339   : > { %v5982_v60 = vpop.f32.mrb[8].mxu0  ;;  %v6004_v61 = vpop.f32.mrb[8].mxu1 }
 0x33a   : > { %v5983_v62 = vpop.f32.mrb[9].mxu0  ;;  %v6005_v63 = vpop.f32.mrb[9].mxu1 }
 0x33b   : > { %v5984_v0 = vadd.f32 %v5983_v62, %v5982_v60  ;;  %v6006_v28 = vadd.f32 %v6005_v63, %v6004_v61  ;;  %v5985_v3 = vpop.f32.mrb[10].mxu0  ;;  %v6007_v4 = vpop.f32.mrb[10].mxu1  ;;  %6290 = vmatpush3.bf16.msra.mxu1 %v7658_v42  ;;  %6278 = vmatpush3.bf16.msra.mxu0 %v6277_v41 }
 0x33c   : > { %v5986_v2 = vpop.f32.mrb[11].mxu0  ;;  %v6008_v5 = vpop.f32.mrb[11].mxu1  ;;  %6283 = vmatprep.subr.bf16.mxu1 %v7661_v20 }
 0x33d   : > { %v4752_v12 = vadd.f32 %v6006_v28, %v5984_v0  ;;  %v5987_v14 = vadd.f32 %v5986_v2, %v5985_v3  ;;  %v6009_v17 = vadd.f32 %v6008_v5, %v6007_v4 }
 0x33f   : > { %v4755_v16 = vadd.f32 %v6009_v17, %v5987_v14  ;;  %6291 = vmatpush3.bf16.msra.mxu1 %v7666_v27 }
 0x340   : > { %6284 = vmatprep.subr.bf16.mxu1 %v6267_v44  ;;  %v7233_v44 = vpop.eup %7232 }
 0x341   : > { %v7235_v45 = vpop.eup %7234  ;;  %v4879_v46 = vmul.f32 %v7233_v44, %v7634_v59 }
 0x342   : > { %v4907_v33 = vmul.f32 %v7235_v45, %v7641_v1 }
 0x343   : > { %6292 = vmatpush3.bf16.msra.mxu1 %v6269_v8  ;;  %v4881_v7 = vsel %vm4880_vm11, %v7634_v59, %v4879_v46 }
 0x344   : > { %6285 = vmatprep.subr.bf16.mxu1 %v6271_v38  ;;  %v4909_v54 = vsel %vm4908_vm15, %v7641_v1, %v4907_v33  ;;  %v4884_v38 = vsel %vm4882_vm12, %v4883_v6, %v4881_v7 }
 0x345   : > { %v4912_v59 = vsel %vm4910_vm2, %v4911_v34, %v4909_v54 }
 0x347   : > { %6293 = vmatpush3.bf16.msra.mxu1 %v6273_v9 }
 0x348   : > { %6286 = vmatprep.subr.bf16.mxu1 %v6275_v37 }
 0x34b   : > { %6294 = vmatpush3.bf16.msra.mxu1 %v6277_v41 }
 0x359   : > { %v6026_v18 = vpop.f32.mrb[12].mxu0  ;;  %v6048_v19 = vpop.f32.mrb[12].mxu1 }
 0x35a   : > { %v6027_v43 = vpop.f32.mrb[13].mxu0  ;;  %v6049_v42 = vpop.f32.mrb[13].mxu1 }
 0x35b   : > { %v6028_v50 = vadd.f32 %v6027_v43, %v6026_v18  ;;  %v6050_v48 = vadd.f32 %v6049_v42, %v6048_v19  ;;  %v6029_v49 = vpop.f32.mrb[14].mxu0  ;;  %v6051_v20 = vpop.f32.mrb[14].mxu1 }
 0x35c   : > { %v6030_v21 = vpop.f32.mrb[15].mxu0  ;;  %v6052_v22 = vpop.f32.mrb[15].mxu1 }
 0x35d   : > { %v4793_v23 = vadd.f32 %v6028_v50, %v4752_v12  ;;  %v6031_v24 = vadd.f32 %v6030_v21, %v6029_v49  ;;  %v6053_v25 = vadd.f32 %v6052_v22, %v6051_v20 }
 0x35f   : > { %v4834_v26 = vadd.f32 %v6050_v48, %v4793_v23  ;;  %v4796_v27 = vadd.f32 %v6031_v24, %v4755_v16 }
 0x361   : > { %v4851_v31 = vmul.f32 %v4834_v26, %v4834_v26  ;;  %v4837_v32 = vadd.f32 %v6053_v25, %v4796_v27 }
 0x363   : > { %v4859_v36 = vadd.f32 %v4851_v31, %v4843_v29  ;;  %v4855_v39 = vmul.f32 %v4837_v32, %v4837_v32 }
 0x365   : > { %v4863_v40 = vadd.f32 %v4855_v39, %v4847_v35  ;;  %7236 = vrsqrt.f32 %v4859_v36  ;;  %vm4887_vm13 = vcmp.eq.f32.partialorder %v4859_v36, inf  ;;  %v4890_v15 = vand.u32 2147483648, %v4859_v36 }
 0x366   : > { %vm4889_vm14 = vcmp.eq.f32.partialorder %v4859_v36, 0.0 }
 0x367   : > { %7238 = vrsqrt.f32 %v4863_v40  ;;  %vm4915_vm0 = vcmp.eq.f32.partialorder %v4863_v40, inf  ;;  %v4918_v10 = vand.u32 2147483648, %v4863_v40  ;;  %vm4917_vm1 = vcmp.eq.f32.partialorder %v4863_v40, 0.0 }
 0x36f   : > { %v7237_v47 = vpop.eup %7236 }
 0x370   : > { %v4886_v30 = vmul.f32 %v7237_v47, %v4859_v36 }
 0x371   : > { %v7239_v51 = vpop.eup %7238 }
 0x372   : > { %v4888_v8 = vsel %vm4887_vm13, %v4859_v36, %v4886_v30  ;;  %v4914_v52 = vmul.f32 %v7239_v51, %v4863_v40 }
 0x373   : > { %v4891_v53 = vsel %vm4889_vm14, %v4890_v15, %v4888_v8 }
 0x374   : > { %5216 = vmatprep.mubr.f32.mxu0 %v4891_v53  ;;  %v4916_v55 = vsel %vm4915_vm0, %v4863_v40, %v4914_v52 }
 0x375   : > { %5217 = vmatmul.mubr.f32.vlgmr.msra.gmra.mrb[18].mxu0 %v4884_v38  ;;  %v4919_v56 = vsel %vm4917_vm1, %v4918_v10, %v4916_v55 }
 0x376   : > { %5221 = vmatprep.mubr.f32.mxu1 %v4919_v56 }
 0x377   : > { %5222 = vmatmul.mubr.f32.vlgmr.msra.gmra.mrb[20].mxu1 %v4912_v59 }
 0x3f1   : > { %v6182_v57 = vpop.f32.mrb[16].mxu0 }
 0x3f2   : > { %v5068_v58 = vpop.f32.mrb[17].mxu0 }
 0x401   : > { %v6104_v9 = vpop.f32.mrb[16].mxu1 }
 0x402   : > { %v6105_v37 = vpop.f32.mrb[17].mxu1 }
 0x403   : > { %v6106_v11 = vadd.f32 %v6105_v37, %v6104_v9 }
 0x405   : > { %v5144_v13 = vadd.f32 %v6106_v11, %v5068_v58  ;;  %v6107_v41 = vpop.f32.mrb[18].mxu1 }
 0x406   : > { %v6108_v60 = vpop.f32.mrb[19].mxu1 }
 0x407   : > { %v6109_v61 = vadd.f32 %v6108_v60, %v6107_v41 }
 0x409   : > { %v5149_v62 = vadd.f32 %v6182_v57, %v6109_v61 }
 0x448   : > { %v6142_v63 = vpop.f32.mrb[18].mxu0 }
 0x449   : > { %v6143_v0 = vpop.f32.mrb[19].mxu0 }
 0x44a   : > { %v6144_v28 = vadd.f32 %v6143_v0, %v6142_v63  ;;  %v6145_v3 = vpop.f32.mrb[20].mxu1 }
 0x44b   : > { %v6146_v4 = vpop.f32.mrb[21].mxu1 }
 0x44c   : > { %v5219_v1 = vadd.f32 %v6144_v28, %v5144_v13  ;;  %v6147_v2 = vadd.f32 %v6146_v4, %v6145_v3 }
 0x44e   : > { %v5227_v5 = vmax.f32 %v5219_v1, 1e-07  ;;  %v5224_v12 = vadd.f32 %v6147_v2, %v5149_v62 }
 0x450   : > { %7240 = vlog2.f32 %v5227_v5  ;;  %v5228_v14 = vmax.f32 %v5224_v12, 1e-07 }
 0x452   : > { %7242 = vlog2.f32 %v5228_v14 }
 0x45a   : > { %v7241_v17 = vpop.eup %7240 }
 0x45b   : > { %v5230_v16 = vmul.f32 0.6931472, %v7241_v17 }
 0x45c   : > { %v7243_v18 = vpop.eup %7242 }
 0x45d   : > { %5233 = vst [vmem:[%s314_s14] sm:$0xff] %v5230_v16  ;;  %v5232_v19 = vmul.f32 0.6931472, %v7243_v18 }
 0x45f   : > { %5234 = vst [vmem:[%s314_s14 + $0x8] sm:$0xff] %v5232_v19 }
 0x460 PF: > { %s16_s17 = sadd.s32 1, %s7330_s17   ;;  %s7734_s15 = smov %s7326_s16 }
 0x461   : > { %p13_p3 = scmp.ge.s32.totalorder %s16_s17, 4   ;;  %s7735_s16 = smov %s7737_s19 }
 0x463   :  { %15 = sbr.rel (!%p13_p3) target bundleno = 3 (0x3), region = 78 }
 0x46a   :  { %5265 = vsyncpa [#allocation4], 1 }
 0x46b   :  { %5267 = vsyncpa [#allocation4 + $0x1], 1 }
 0x46c   :  { %5268 = vsyncpa [#allocation6], 1 }

</bundles_post_ra>
